<compile_context>
chip_gen: v7x
topology: tpu7x:2x2x1
jax: 0.10.0
libtpu: 0.0.40
codegen_flags: <defaults>
</compile_context>

<pallas_src>
import functools

import numpy as np

import jax
import jax.numpy as jnp
from jax.experimental import pallas as pl
from jax.experimental.pallas import tpu as pltpu


def _bottleneck_kernel(H, W, width,
                       xpad_ref, mask_ref, w1_ref, w2_ref, w3_ref,
                       b1_ref, b2_ref, b3_ref,
                       out_ref, mid_ref, acc_ref):
    Wp = W + 2
    Hw = H * Wp

    # ---- conv1 (1x1) + bn1 + relu over the whole padded grid ----
    # The mask zeroes spatial-padding rows so bn1's bias does not leak into the
    # zero padding that conv2 relies on.
    h1 = jnp.dot(xpad_ref[0], w1_ref[...], preferred_element_type=jnp.float32)
    mid_ref[...] = jnp.maximum(h1 + b1_ref[...], 0.0) * mask_ref[...]

    # ---- conv2 (3x3, stride 1, pad 1) as 9 shifted matmuls ----
    # Operands come from VMEM refs; partial sums live in a VMEM scratch
    # accumulator (initialized with the folded bn2 bias) to keep vreg pressure low.
    acc_ref[...] = jnp.broadcast_to(b2_ref[...], (Hw, width))
    for dy in range(3):
        for dx in range(3):
            off = dy * Wp + dx
            acc_ref[...] += jnp.dot(mid_ref[pl.ds(off, Hw), :],
                                    w2_ref[dy * 3 + dx],
                                    preferred_element_type=jnp.float32)
    y2 = jnp.maximum(acc_ref[...], 0.0)

    # ---- conv3 (1x1) + bn3 + residual + relu ----
    # The identity slab is exactly the interior window of the padded input.
    z = jnp.dot(y2, w3_ref[...], preferred_element_type=jnp.float32)
    resid = xpad_ref[0, pl.ds(Wp + 1, Hw), :]
    out_ref[0] = jnp.maximum(z + b3_ref[...] + resid, 0.0)


def bottleneck_forward(x_nchw, w1_oihw, bn1, w2_oihw, bn2, w3_oihw, bn3, eps=1e-5):
    N, Cin, H, W = x_nchw.shape
    width = w1_oihw.shape[0]
    Cout = w3_oihw.shape[0]
    assert Cout == Cin, "downsample=None requires in_channel == out_channel*expansion"
    Hp, Wp = H + 2, W + 2
    Hw = H * Wp
    P = Hp * Wp + 2  # +2 trailing zero rows so every 3x3 tap slice stays in bounds

    x = jnp.transpose(x_nchw, (0, 2, 3, 1)).astype(jnp.float32)  # NHWC

    # Zero-padded input, flattened row-major, channels on the lane axis.
    xpad = jnp.pad(x, ((0, 0), (1, 1), (1, 1), (0, 0))).reshape(N, Hp * Wp, Cin)
    xpad = jnp.pad(xpad, ((0, 0), (0, 2), (0, 0)))

    # Trace-time interior mask (1 on real pixels, 0 on spatial padding rows/cols).
    m = np.zeros((Hp, Wp), np.float32)
    m[1:H + 1, 1:W + 1] = 1.0
    mask = jnp.asarray(np.concatenate([m.reshape(-1, 1),
                                       np.zeros((2, 1), np.float32)], axis=0))

    # Fold BN (eval-mode running stats): scale goes into conv weights, bias stays.
    def fold(p):
        s = p["gamma"] / jnp.sqrt(p["var"] + eps)
        b = p["beta"] - p["mean"] * s
        return s.astype(jnp.float32), b.astype(jnp.float32)

    s1, b1 = fold(bn1)
    s2, b2 = fold(bn2)
    s3, b3 = fold(bn3)

    # conv1: OIHW (width, Cin, 1, 1) -> (Cin, width), bn1 scale folded into columns.
    w1s = (w1_oihw[:, :, 0, 0] * s1[:, None]).T.astype(jnp.float32)
    # conv2: OIHW (width, width, 3, 3) -> (tap = dy*3+dx, Cin=width, Cout=width).
    w2s = (jnp.transpose(w2_oihw, (2, 3, 1, 0)).reshape(9, width, width)
           * s2[None, None, :]).astype(jnp.float32)
    # conv3: OIHW (Cout, width, 1, 1) -> (width, Cout), bn3 scale folded into columns.
    w3s = (w3_oihw[:, :, 0, 0] * s3[:, None]).T.astype(jnp.float32)

    b1 = b1.reshape(1, width)
    b2 = b2.reshape(1, width)
    b3 = b3.reshape(1, Cout)

    kernel = functools.partial(_bottleneck_kernel, H, W, width)
    out_flat = pl.pallas_call(
        kernel,
        out_shape=jax.ShapeDtypeStruct((N, Hw, Cout), jnp.float32),
        grid_spec=pltpu.PrefetchScalarGridSpec(
            num_scalar_prefetch=0,
            grid=(N,),
            in_specs=[
                pl.BlockSpec((1, P, Cin), lambda n: (n, 0, 0)),        # padded input
                pl.BlockSpec((P, 1), lambda n: (0, 0)),                # interior mask
                pl.BlockSpec((Cin, width), lambda n: (0, 0)),          # w1 (bn1 folded)
                pl.BlockSpec((9, width, width), lambda n: (0, 0, 0)),  # w2 (bn2 folded)
                pl.BlockSpec((width, Cout), lambda n: (0, 0)),         # w3 (bn3 folded)
                pl.BlockSpec((1, width), lambda n: (0, 0)),            # bn1 bias
                pl.BlockSpec((1, width), lambda n: (0, 0)),            # bn2 bias
                pl.BlockSpec((1, Cout), lambda n: (0, 0)),             # bn3 bias
            ],
            out_specs=pl.BlockSpec((1, Hw, Cout), lambda n: (n, 0, 0)),
            scratch_shapes=[pltpu.VMEM((P, width), jnp.float32),   # conv1 output (padded grid)
                            pltpu.VMEM((Hw, width), jnp.float32)], # conv2 accumulator
        ),
        compiler_params=pltpu.CompilerParams(dimension_semantics=("parallel",)),
    )(xpad, mask, w1s, w2s, w3s, b1, b2, b3)

    # Unflatten, drop the 2 wrap columns, back to NCHW.
    out = out_flat.reshape(N, H, Wp, Cout)[:, :, :W, :]
    return jnp.transpose(out, (0, 3, 1, 2))


def _reference(x_nchw, w1, bn1, w2, bn2, w3, bn3, eps=1e-5):
    x = jnp.transpose(x_nchw, (0, 2, 3, 1)).astype(jnp.float32)

    def conv(xx, w_oihw):
        w = jnp.transpose(w_oihw, (2, 3, 1, 0)).astype(jnp.float32)
        return jax.lax.conv_general_dilated(
            xx, w, (1, 1), "SAME",
            dimension_numbers=("NHWC", "HWIO", "NHWC"),
            precision=jax.lax.Precision.HIGHEST)

    def bn(xx, p):
        s = p["gamma"] / jnp.sqrt(p["var"] + eps)
        b = p["beta"] - p["mean"] * s
        return xx * s + b

    out = jnp.maximum(bn(conv(x, w1), bn1), 0.0)
    out = jnp.maximum(bn(conv(out, w2), bn2), 0.0)
    out = bn(conv(out, w3), bn3) + x
    return jnp.transpose(jnp.maximum(out, 0.0), (0, 3, 1, 2))


if __name__ == "__main__":
    N, H, W = 2, 16, 16
    out_channel, expansion = 32, 4
    width = out_channel                 # width_per_group=64, groups=1 -> width == out_channel
    Cin = out_channel * expansion       # downsample=None => in_channel == out_channel * 4
    Cout = out_channel * expansion

    key = jax.random.PRNGKey(0)
    ks = jax.random.split(key, 16)
    x = jax.random.normal(ks[0], (N, Cin, H, W), jnp.float32)
    w1 = jax.random.normal(ks[1], (width, Cin, 1, 1), jnp.float32) * 0.1
    w2 = jax.random.normal(ks[2], (width, width, 3, 3), jnp.float32) * 0.1
    w3 = jax.random.normal(ks[3], (Cout, width, 1, 1), jnp.float32) * 0.1

    def mk_bn(c, k0, k1, k2, k3):
        return dict(gamma=jax.random.uniform(k0, (c,), minval=0.5, maxval=1.5),
                    beta=jax.random.normal(k1, (c,)) * 0.1,
                    mean=jax.random.normal(k2, (c,)) * 0.1,
                    var=jax.random.uniform(k3, (c,), minval=0.5, maxval=1.5))

    bn1 = mk_bn(width, ks[4], ks[5], ks[6], ks[7])
    bn2 = mk_bn(width, ks[8], ks[9], ks[10], ks[11])
    bn3 = mk_bn(Cout, ks[12], ks[13], ks[14], ks[15])

    out = jax.block_until_ready(bottleneck_forward(x, w1, bn1, w2, bn2, w3, bn3))
    ref = jax.block_until_ready(_reference(x, w1, bn1, w2, bn2, w3, bn3))

    assert out.shape == (N, Cout, H, W), out.shape
    max_err = float(jnp.max(jnp.abs(out - ref)))
    assert jnp.allclose(out, ref, atol=2e-3, rtol=2e-3), f"max_err={max_err}"
    print("KERNEL_OK")
</pallas_src>

<mosaic_0001>
module attributes {stable_mosaic.version = 11 : i64} {
  func.func @_bottleneck_kernel(%arg0: i32, %arg1: memref<1x326x128xf32, #tpu.memory_space<vmem>>, %arg2: memref<326x1xf32, #tpu.memory_space<vmem>>, %arg3: memref<128x32xf32, #tpu.memory_space<vmem>>, %arg4: memref<9x32x32xf32, #tpu.memory_space<vmem>>, %arg5: memref<32x128xf32, #tpu.memory_space<vmem>>, %arg6: memref<1x32xf32, #tpu.memory_space<vmem>>, %arg7: memref<1x32xf32, #tpu.memory_space<vmem>>, %arg8: memref<1x128xf32, #tpu.memory_space<vmem>>, %arg9: memref<1x288x128xf32, #tpu.memory_space<vmem>>, %arg10: memref<326x32xf32, #tpu.memory_space<vmem>>, %arg11: memref<288x32xf32, #tpu.memory_space<vmem>>) attributes {dimension_semantics = [#tpu.dimension_semantics<parallel>], iteration_bounds = array<i64: 2>, scalar_prefetch = 0 : i64, scratch_operands = 2 : i64, tpu.core_type = #tpu.core_type<tc>, window_params = [{transform_indices = @transform_0, window_bounds = array<i64: 1, 326, 128>}, {pipeline_mode = #tpu.pipeline_mode<synchronous>, transform_indices = @transform_1, window_bounds = array<i64: 326, 1>}, {pipeline_mode = #tpu.pipeline_mode<synchronous>, transform_indices = @transform_2, window_bounds = array<i64: 128, 32>}, {pipeline_mode = #tpu.pipeline_mode<synchronous>, transform_indices = @transform_3, window_bounds = array<i64: 9, 32, 32>}, {pipeline_mode = #tpu.pipeline_mode<synchronous>, transform_indices = @transform_4, window_bounds = array<i64: 32, 128>}, {pipeline_mode = #tpu.pipeline_mode<synchronous>, transform_indices = @transform_5, window_bounds = array<i64: 1, 32>}, {pipeline_mode = #tpu.pipeline_mode<synchronous>, transform_indices = @transform_6, window_bounds = array<i64: 1, 32>}, {pipeline_mode = #tpu.pipeline_mode<synchronous>, transform_indices = @transform_7, window_bounds = array<i64: 1, 128>}, {transform_indices = @transform_8, window_bounds = array<i64: 1, 288, 128>}]} {
    %c0 = arith.constant 0 : index
    %c0_0 = arith.constant 0 : index
    %c0_1 = arith.constant 0 : index
    %0 = vector.load %arg1[%c0, %c0_0, %c0_1] : memref<1x326x128xf32, #tpu.memory_space<vmem>>, vector<1x326x128xf32>
    %1 = vector.shape_cast %0 : vector<1x326x128xf32> to vector<326x128xf32>
    %c0_2 = arith.constant 0 : index
    %c0_3 = arith.constant 0 : index
    %2 = vector.load %arg3[%c0_2, %c0_3] : memref<128x32xf32, #tpu.memory_space<vmem>>, vector<128x32xf32>
    %cst = arith.constant dense<0.000000e+00> : vector<326x32xf32>
    %3 = tpu.matmul %1, %2, %cst {dimension_numbers = #tpu.dot_dimension_numbers<[1], [0], [0], [1], [0, 0, 1, 1], [], []>} : vector<326x128xf32>, vector<128x32xf32>, vector<326x32xf32> -> vector<326x32xf32>
    %c0_4 = arith.constant 0 : index
    %c0_5 = arith.constant 0 : index
    %4 = vector.load %arg6[%c0_4, %c0_5] : memref<1x32xf32, #tpu.memory_space<vmem>>, vector<1x32xf32>
    %5 = vector.broadcast %4 : vector<1x32xf32> to vector<326x32xf32>
    %6 = arith.addf %3, %5 : vector<326x32xf32>
    %cst_6 = arith.constant 0.000000e+00 : f32
    %7 = vector.broadcast %cst_6 : f32 to vector<326x32xf32>
    %8 = arith.maximumf %6, %7 : vector<326x32xf32>
    %c0_7 = arith.constant 0 : index
    %c0_8 = arith.constant 0 : index
    %9 = vector.load %arg2[%c0_7, %c0_8] : memref<326x1xf32, #tpu.memory_space<vmem>>, vector<326x1xf32>
    %10 = vector.broadcast %9 : vector<326x1xf32> to vector<326x32xf32>
    %11 = arith.mulf %8, %10 : vector<326x32xf32>
    %c0_9 = arith.constant 0 : index
    %c0_10 = arith.constant 0 : index
    %12 = vector.load %arg10[%c0_9, %c0_10] : memref<326x32xf32, #tpu.memory_space<vmem>>, vector<326x32xf32>
    tpu.vector_store %arg10[%c0_9, %c0_10], %11 {strides = array<i32>} : memref<326x32xf32, #tpu.memory_space<vmem>>, vector<326x32xf32>,
    %c0_11 = arith.constant 0 : index
    %c0_12 = arith.constant 0 : index
    %13 = vector.load %arg7[%c0_11, %c0_12] : memref<1x32xf32, #tpu.memory_space<vmem>>, vector<1x32xf32>
    %14 = vector.shape_cast %13 : vector<1x32xf32> to vector<1x32xf32>
    %15 = vector.broadcast %14 : vector<1x32xf32> to vector<288x32xf32>
    %c0_13 = arith.constant 0 : index
    %c0_14 = arith.constant 0 : index
    %16 = vector.load %arg11[%c0_13, %c0_14] : memref<288x32xf32, #tpu.memory_space<vmem>>, vector<288x32xf32>
    tpu.vector_store %arg11[%c0_13, %c0_14], %15 {strides = array<i32>} : memref<288x32xf32, #tpu.memory_space<vmem>>, vector<288x32xf32>,
    %c0_15 = arith.constant 0 : index
    %c0_16 = arith.constant 0 : index
    %17 = vector.load %arg11[%c0_15, %c0_16] : memref<288x32xf32, #tpu.memory_space<vmem>>, vector<288x32xf32>
    %c0_17 = arith.constant 0 : index
    %c0_18 = arith.constant 0 : index
    %18 = vector.load %arg10[%c0_17, %c0_18] : memref<326x32xf32, #tpu.memory_space<vmem>>, vector<288x32xf32>
    %c0_19 = arith.constant 0 : index
    %c0_20 = arith.constant 0 : index
    %c0_21 = arith.constant 0 : index
    %19 = vector.load %arg4[%c0_19, %c0_20, %c0_21] : memref<9x32x32xf32, #tpu.memory_space<vmem>>, vector<1x32x32xf32>
    %20 = vector.shape_cast %19 : vector<1x32x32xf32> to vector<32x32xf32>
    %cst_22 = arith.constant dense<0.000000e+00> : vector<288x32xf32>
    %21 = tpu.matmul %18, %20, %cst_22 {dimension_numbers = #tpu.dot_dimension_numbers<[1], [0], [0], [1], [0, 0, 1, 1], [], []>} : vector<288x32xf32>, vector<32x32xf32>, vector<288x32xf32> -> vector<288x32xf32>
    %22 = arith.addf %17, %21 : vector<288x32xf32>
    %c0_23 = arith.constant 0 : index
    %c0_24 = arith.constant 0 : index
    %23 = vector.load %arg11[%c0_23, %c0_24] : memref<288x32xf32, #tpu.memory_space<vmem>>, vector<288x32xf32>
    tpu.vector_store %arg11[%c0_23, %c0_24], %22 {strides = array<i32>} : memref<288x32xf32, #tpu.memory_space<vmem>>, vector<288x32xf32>,
    %c0_25 = arith.constant 0 : index
    %c0_26 = arith.constant 0 : index
    %24 = vector.load %arg11[%c0_25, %c0_26] : memref<288x32xf32, #tpu.memory_space<vmem>>, vector<288x32xf32>
    %c1 = arith.constant 1 : index
    %c0_27 = arith.constant 0 : index
    %25 = vector.load %arg10[%c1, %c0_27] : memref<326x32xf32, #tpu.memory_space<vmem>>, vector<288x32xf32>
    %c1_28 = arith.constant 1 : index
    %c0_29 = arith.constant 0 : index
    %c0_30 = arith.constant 0 : index
    %26 = vector.load %arg4[%c1_28, %c0_29, %c0_30] : memref<9x32x32xf32, #tpu.memory_space<vmem>>, vector<1x32x32xf32>
    %27 = vector.shape_cast %26 : vector<1x32x32xf32> to vector<32x32xf32>
    %cst_31 = arith.constant dense<0.000000e+00> : vector<288x32xf32>
    %28 = tpu.matmul %25, %27, %cst_31 {dimension_numbers = #tpu.dot_dimension_numbers<[1], [0], [0], [1], [0, 0, 1, 1], [], []>} : vector<288x32xf32>, vector<32x32xf32>, vector<288x32xf32> -> vector<288x32xf32>
    %29 = arith.addf %24, %28 : vector<288x32xf32>
    %c0_32 = arith.constant 0 : index
    %c0_33 = arith.constant 0 : index
    %30 = vector.load %arg11[%c0_32, %c0_33] : memref<288x32xf32, #tpu.memory_space<vmem>>, vector<288x32xf32>
    tpu.vector_store %arg11[%c0_32, %c0_33], %29 {strides = array<i32>} : memref<288x32xf32, #tpu.memory_space<vmem>>, vector<288x32xf32>,
    %c0_34 = arith.constant 0 : index
    %c0_35 = arith.constant 0 : index
    %31 = vector.load %arg11[%c0_34, %c0_35] : memref<288x32xf32, #tpu.memory_space<vmem>>, vector<288x32xf32>
    %c2 = arith.constant 2 : index
    %c0_36 = arith.constant 0 : index
    %32 = vector.load %arg10[%c2, %c0_36] : memref<326x32xf32, #tpu.memory_space<vmem>>, vector<288x32xf32>
    %c2_37 = arith.constant 2 : index
    %c0_38 = arith.constant 0 : index
    %c0_39 = arith.constant 0 : index
    %33 = vector.load %arg4[%c2_37, %c0_38, %c0_39] : memref<9x32x32xf32, #tpu.memory_space<vmem>>, vector<1x32x32xf32>
    %34 = vector.shape_cast %33 : vector<1x32x32xf32> to vector<32x32xf32>
    %cst_40 = arith.constant dense<0.000000e+00> : vector<288x32xf32>
    %35 = tpu.matmul %32, %34, %cst_40 {dimension_numbers = #tpu.dot_dimension_numbers<[1], [0], [0], [1], [0, 0, 1, 1], [], []>} : vector<288x32xf32>, vector<32x32xf32>, vector<288x32xf32> -> vector<288x32xf32>
    %36 = arith.addf %31, %35 : vector<288x32xf32>
    %c0_41 = arith.constant 0 : index
    %c0_42 = arith.constant 0 : index
    %37 = vector.load %arg11[%c0_41, %c0_42] : memref<288x32xf32, #tpu.memory_space<vmem>>, vector<288x32xf32>
    tpu.vector_store %arg11[%c0_41, %c0_42], %36 {strides = array<i32>} : memref<288x32xf32, #tpu.memory_space<vmem>>, vector<288x32xf32>,
    %c0_43 = arith.constant 0 : index
    %c0_44 = arith.constant 0 : index
    %38 = vector.load %arg11[%c0_43, %c0_44] : memref<288x32xf32, #tpu.memory_space<vmem>>, vector<288x32xf32>
    %c18 = arith.constant 18 : index
    %c0_45 = arith.constant 0 : index
    %39 = vector.load %arg10[%c18, %c0_45] : memref<326x32xf32, #tpu.memory_space<vmem>>, vector<288x32xf32>
    %c3 = arith.constant 3 : index
    %c0_46 = arith.constant 0 : index
    %c0_47 = arith.constant 0 : index
    %40 = vector.load %arg4[%c3, %c0_46, %c0_47] : memref<9x32x32xf32, #tpu.memory_space<vmem>>, vector<1x32x32xf32>
    %41 = vector.shape_cast %40 : vector<1x32x32xf32> to vector<32x32xf32>
    %cst_48 = arith.constant dense<0.000000e+00> : vector<288x32xf32>
    %42 = tpu.matmul %39, %41, %cst_48 {dimension_numbers = #tpu.dot_dimension_numbers<[1], [0], [0], [1], [0, 0, 1, 1], [], []>} : vector<288x32xf32>, vector<32x32xf32>, vector<288x32xf32> -> vector<288x32xf32>
    %43 = arith.addf %38, %42 : vector<288x32xf32>
    %c0_49 = arith.constant 0 : index
    %c0_50 = arith.constant 0 : index
    %44 = vector.load %arg11[%c0_49, %c0_50] : memref<288x32xf32, #tpu.memory_space<vmem>>, vector<288x32xf32>
    tpu.vector_store %arg11[%c0_49, %c0_50], %43 {strides = array<i32>} : memref<288x32xf32, #tpu.memory_space<vmem>>, vector<288x32xf32>,
    %c0_51 = arith.constant 0 : index
    %c0_52 = arith.constant 0 : index
    %45 = vector.load %arg11[%c0_51, %c0_52] : memref<288x32xf32, #tpu.memory_space<vmem>>, vector<288x32xf32>
    %c19 = arith.constant 19 : index
    %c0_53 = arith.constant 0 : index
    %46 = vector.load %arg10[%c19, %c0_53] : memref<326x32xf32, #tpu.memory_space<vmem>>, vector<288x32xf32>
    %c4 = arith.constant 4 : index
    %c0_54 = arith.constant 0 : index
    %c0_55 = arith.constant 0 : index
    %47 = vector.load %arg4[%c4, %c0_54, %c0_55] : memref<9x32x32xf32, #tpu.memory_space<vmem>>, vector<1x32x32xf32>
    %48 = vector.shape_cast %47 : vector<1x32x32xf32> to vector<32x32xf32>
    %cst_56 = arith.constant dense<0.000000e+00> : vector<288x32xf32>
    %49 = tpu.matmul %46, %48, %cst_56 {dimension_numbers = #tpu.dot_dimension_numbers<[1], [0], [0], [1], [0, 0, 1, 1], [], []>} : vector<288x32xf32>, vector<32x32xf32>, vector<288x32xf32> -> vector<288x32xf32>
    %50 = arith.addf %45, %49 : vector<288x32xf32>
    %c0_57 = arith.constant 0 : index
    %c0_58 = arith.constant 0 : index
    %51 = vector.load %arg11[%c0_57, %c0_58] : memref<288x32xf32, #tpu.memory_space<vmem>>, vector<288x32xf32>
    tpu.vector_store %arg11[%c0_57, %c0_58], %50 {strides = array<i32>} : memref<288x32xf32, #tpu.memory_space<vmem>>, vector<288x32xf32>,
    %c0_59 = arith.constant 0 : index
    %c0_60 = arith.constant 0 : index
    %52 = vector.load %arg11[%c0_59, %c0_60] : memref<288x32xf32, #tpu.memory_space<vmem>>, vector<288x32xf32>
    %c20 = arith.constant 20 : index
    %c0_61 = arith.constant 0 : index
    %53 = vector.load %arg10[%c20, %c0_61] : memref<326x32xf32, #tpu.memory_space<vmem>>, vector<288x32xf32>
    %c5 = arith.constant 5 : index
    %c0_62 = arith.constant 0 : index
    %c0_63 = arith.constant 0 : index
    %54 = vector.load %arg4[%c5, %c0_62, %c0_63] : memref<9x32x32xf32, #tpu.memory_space<vmem>>, vector<1x32x32xf32>
    %55 = vector.shape_cast %54 : vector<1x32x32xf32> to vector<32x32xf32>
    %cst_64 = arith.constant dense<0.000000e+00> : vector<288x32xf32>
    %56 = tpu.matmul %53, %55, %cst_64 {dimension_numbers = #tpu.dot_dimension_numbers<[1], [0], [0], [1], [0, 0, 1, 1], [], []>} : vector<288x32xf32>, vector<32x32xf32>, vector<288x32xf32> -> vector<288x32xf32>
    %57 = arith.addf %52, %56 : vector<288x32xf32>
    %c0_65 = arith.constant 0 : index
    %c0_66 = arith.constant 0 : index
    %58 = vector.load %arg11[%c0_65, %c0_66] : memref<288x32xf32, #tpu.memory_space<vmem>>, vector<288x32xf32>
    tpu.vector_store %arg11[%c0_65, %c0_66], %57 {strides = array<i32>} : memref<288x32xf32, #tpu.memory_space<vmem>>, vector<288x32xf32>,
    %c0_67 = arith.constant 0 : index
    %c0_68 = arith.constant 0 : index
    %59 = vector.load %arg11[%c0_67, %c0_68] : memref<288x32xf32, #tpu.memory_space<vmem>>, vector<288x32xf32>
    %c36 = arith.constant 36 : index
    %c0_69 = arith.constant 0 : index
    %60 = vector.load %arg10[%c36, %c0_69] : memref<326x32xf32, #tpu.memory_space<vmem>>, vector<288x32xf32>
    %c6 = arith.constant 6 : index
    %c0_70 = arith.constant 0 : index
    %c0_71 = arith.constant 0 : index
    %61 = vector.load %arg4[%c6, %c0_70, %c0_71] : memref<9x32x32xf32, #tpu.memory_space<vmem>>, vector<1x32x32xf32>
    %62 = vector.shape_cast %61 : vector<1x32x32xf32> to vector<32x32xf32>
    %cst_72 = arith.constant dense<0.000000e+00> : vector<288x32xf32>
    %63 = tpu.matmul %60, %62, %cst_72 {dimension_numbers = #tpu.dot_dimension_numbers<[1], [0], [0], [1], [0, 0, 1, 1], [], []>} : vector<288x32xf32>, vector<32x32xf32>, vector<288x32xf32> -> vector<288x32xf32>
    %64 = arith.addf %59, %63 : vector<288x32xf32>
    %c0_73 = arith.constant 0 : index
    %c0_74 = arith.constant 0 : index
    %65 = vector.load %arg11[%c0_73, %c0_74] : memref<288x32xf32, #tpu.memory_space<vmem>>, vector<288x32xf32>
    tpu.vector_store %arg11[%c0_73, %c0_74], %64 {strides = array<i32>} : memref<288x32xf32, #tpu.memory_space<vmem>>, vector<288x32xf32>,
    %c0_75 = arith.constant 0 : index
    %c0_76 = arith.constant 0 : index
    %66 = vector.load %arg11[%c0_75, %c0_76] : memref<288x32xf32, #tpu.memory_space<vmem>>, vector<288x32xf32>
    %c37 = arith.constant 37 : index
    %c0_77 = arith.constant 0 : index
    %67 = vector.load %arg10[%c37, %c0_77] : memref<326x32xf32, #tpu.memory_space<vmem>>, vector<288x32xf32>
    %c7 = arith.constant 7 : index
    %c0_78 = arith.constant 0 : index
    %c0_79 = arith.constant 0 : index
    %68 = vector.load %arg4[%c7, %c0_78, %c0_79] : memref<9x32x32xf32, #tpu.memory_space<vmem>>, vector<1x32x32xf32>
    %69 = vector.shape_cast %68 : vector<1x32x32xf32> to vector<32x32xf32>
    %cst_80 = arith.constant dense<0.000000e+00> : vector<288x32xf32>
    %70 = tpu.matmul %67, %69, %cst_80 {dimension_numbers = #tpu.dot_dimension_numbers<[1], [0], [0], [1], [0, 0, 1, 1], [], []>} : vector<288x32xf32>, vector<32x32xf32>, vector<288x32xf32> -> vector<288x32xf32>
    %71 = arith.addf %66, %70 : vector<288x32xf32>
    %c0_81 = arith.constant 0 : index
    %c0_82 = arith.constant 0 : index
    %72 = vector.load %arg11[%c0_81, %c0_82] : memref<288x32xf32, #tpu.memory_space<vmem>>, vector<288x32xf32>
    tpu.vector_store %arg11[%c0_81, %c0_82], %71 {strides = array<i32>} : memref<288x32xf32, #tpu.memory_space<vmem>>, vector<288x32xf32>,
    %c0_83 = arith.constant 0 : index
    %c0_84 = arith.constant 0 : index
    %73 = vector.load %arg11[%c0_83, %c0_84] : memref<288x32xf32, #tpu.memory_space<vmem>>, vector<288x32xf32>
    %c38 = arith.constant 38 : index
    %c0_85 = arith.constant 0 : index
    %74 = vector.load %arg10[%c38, %c0_85] : memref<326x32xf32, #tpu.memory_space<vmem>>, vector<288x32xf32>
    %c8 = arith.constant 8 : index
    %c0_86 = arith.constant 0 : index
    %c0_87 = arith.constant 0 : index
    %75 = vector.load %arg4[%c8, %c0_86, %c0_87] : memref<9x32x32xf32, #tpu.memory_space<vmem>>, vector<1x32x32xf32>
    %76 = vector.shape_cast %75 : vector<1x32x32xf32> to vector<32x32xf32>
    %cst_88 = arith.constant dense<0.000000e+00> : vector<288x32xf32>
    %77 = tpu.matmul %74, %76, %cst_88 {dimension_numbers = #tpu.dot_dimension_numbers<[1], [0], [0], [1], [0, 0, 1, 1], [], []>} : vector<288x32xf32>, vector<32x32xf32>, vector<288x32xf32> -> vector<288x32xf32>
    %78 = arith.addf %73, %77 : vector<288x32xf32>
    %c0_89 = arith.constant 0 : index
    %c0_90 = arith.constant 0 : index
    %79 = vector.load %arg11[%c0_89, %c0_90] : memref<288x32xf32, #tpu.memory_space<vmem>>, vector<288x32xf32>
    tpu.vector_store %arg11[%c0_89, %c0_90], %78 {strides = array<i32>} : memref<288x32xf32, #tpu.memory_space<vmem>>, vector<288x32xf32>,
    %c0_91 = arith.constant 0 : index
    %c0_92 = arith.constant 0 : index
    %80 = vector.load %arg11[%c0_91, %c0_92] : memref<288x32xf32, #tpu.memory_space<vmem>>, vector<288x32xf32>
    %cst_93 = arith.constant 0.000000e+00 : f32
    %81 = vector.broadcast %cst_93 : f32 to vector<288x32xf32>
    %82 = arith.maximumf %80, %81 : vector<288x32xf32>
    %c0_94 = arith.constant 0 : index
    %c0_95 = arith.constant 0 : index
    %83 = vector.load %arg5[%c0_94, %c0_95] : memref<32x128xf32, #tpu.memory_space<vmem>>, vector<32x128xf32>
    %cst_96 = arith.constant dense<0.000000e+00> : vector<288x128xf32>
    %84 = tpu.matmul %82, %83, %cst_96 {dimension_numbers = #tpu.dot_dimension_numbers<[1], [0], [0], [1], [0, 0, 1, 1], [], []>} : vector<288x32xf32>, vector<32x128xf32>, vector<288x128xf32> -> vector<288x128xf32>
    %c0_97 = arith.constant 0 : index
    %c19_98 = arith.constant 19 : index
    %c0_99 = arith.constant 0 : index
    %85 = vector.load %arg1[%c0_97, %c19_98, %c0_99] : memref<1x326x128xf32, #tpu.memory_space<vmem>>, vector<1x288x128xf32>
    %86 = vector.shape_cast %85 : vector<1x288x128xf32> to vector<288x128xf32>
    %c0_100 = arith.constant 0 : index
    %c0_101 = arith.constant 0 : index
    %87 = vector.load %arg8[%c0_100, %c0_101] : memref<1x128xf32, #tpu.memory_space<vmem>>, vector<1x128xf32>
    %88 = vector.broadcast %87 : vector<1x128xf32> to vector<288x128xf32>
    %89 = arith.addf %84, %88 : vector<288x128xf32>
    %90 = arith.addf %89, %86 : vector<288x128xf32>
    %cst_102 = arith.constant 0.000000e+00 : f32
    %91 = vector.broadcast %cst_102 : f32 to vector<288x128xf32>
    %92 = arith.maximumf %90, %91 : vector<288x128xf32>
    %c0_103 = arith.constant 0 : index
    %c0_104 = arith.constant 0 : index
    %c0_105 = arith.constant 0 : index
    %93 = vector.load %arg9[%c0_103, %c0_104, %c0_105] : memref<1x288x128xf32, #tpu.memory_space<vmem>>, vector<1x288x128xf32>
    %94 = vector.shape_cast %93 : vector<1x288x128xf32> to vector<288x128xf32>
    %95 = vector.shape_cast %92 : vector<288x128xf32> to vector<1x288x128xf32>
    tpu.vector_store %arg9[%c0_103, %c0_104, %c0_105], %95 {strides = array<i32>} : memref<1x288x128xf32, #tpu.memory_space<vmem>>, vector<1x288x128xf32>,
    return
  }
  func.func @transform_0(%arg0: i32) -> (i32, i32, i32) {
    %c0_i32 = arith.constant 0 : i32
    %c0_i32_0 = arith.constant 0 : i32
    %c0_i32_1 = arith.constant 0 : i32
    return %arg0, %c0_i32, %c0_i32_0 : i32, i32, i32
  }
  func.func @transform_1(%arg0: i32) -> (i32, i32) {
    %c0_i32 = arith.constant 0 : i32
    %c0_i32_0 = arith.constant 0 : i32
    %c0_i32_1 = arith.constant 0 : i32
    return %c0_i32, %c0_i32_0 : i32, i32
  }
  func.func @transform_2(%arg0: i32) -> (i32, i32) {
    %c0_i32 = arith.constant 0 : i32
    %c0_i32_0 = arith.constant 0 : i32
    %c0_i32_1 = arith.constant 0 : i32
    return %c0_i32, %c0_i32_0 : i32, i32
  }
  func.func @transform_3(%arg0: i32) -> (i32, i32, i32) {
    %c0_i32 = arith.constant 0 : i32
    %c0_i32_0 = arith.constant 0 : i32
    %c0_i32_1 = arith.constant 0 : i32
    %c0_i32_2 = arith.constant 0 : i32
    return %c0_i32, %c0_i32_0, %c0_i32_1 : i32, i32, i32
  }
  func.func @transform_4(%arg0: i32) -> (i32, i32) {
    %c0_i32 = arith.constant 0 : i32
    %c0_i32_0 = arith.constant 0 : i32
    %c0_i32_1 = arith.constant 0 : i32
    return %c0_i32, %c0_i32_0 : i32, i32
  }
  func.func @transform_5(%arg0: i32) -> (i32, i32) {
    %c0_i32 = arith.constant 0 : i32
    %c0_i32_0 = arith.constant 0 : i32
    %c0_i32_1 = arith.constant 0 : i32
    return %c0_i32, %c0_i32_0 : i32, i32
  }
  func.func @transform_6(%arg0: i32) -> (i32, i32) {
    %c0_i32 = arith.constant 0 : i32
    %c0_i32_0 = arith.constant 0 : i32
    %c0_i32_1 = arith.constant 0 : i32
    return %c0_i32, %c0_i32_0 : i32, i32
  }
  func.func @transform_7(%arg0: i32) -> (i32, i32) {
    %c0_i32 = arith.constant 0 : i32
    %c0_i32_0 = arith.constant 0 : i32
    %c0_i32_1 = arith.constant 0 : i32
    return %c0_i32, %c0_i32_0 : i32, i32
  }
  func.func @transform_8(%arg0: i32) -> (i32, i32, i32) {
    %c0_i32 = arith.constant 0 : i32
    %c0_i32_0 = arith.constant 0 : i32
    %c0_i32_1 = arith.constant 0 : i32
    return %arg0, %c0_i32, %c0_i32_0 : i32, i32, i32
  }
}

</mosaic_0001>

<bundles_post_ra>
// kernel: tpu_custom_call.1
= control target key start
LH: loop header
LB: loop body
LE: loop exit
PB: predicated region body
PF: predicated region fallthrough
CT: control target
= control target key end

     0   :  { %13 = vsyncpa [#allocation5], 0  ;;  %s9939_s0 = inlined_call_operand.vmem [shape: f32[2,326,128], index: 0, kind: input, shape index: {}]   ;;  %s9940_s1 = inlined_call_operand.vmem [shape: f32[326,1], index: 1, kind: input, shape index: {}]   ;;  %s9941_s2 = inlined_call_operand.vmem [shape: f32[128,32], index: 2, kind: input, shape index: {}]   ;;  %s9942_s3 = inlined_call_operand.vmem [shape: f32[9,32,32], index: 3, kind: input, shape index: {}]   ;;  %s9943_s4 = inlined_call_operand.vmem [shape: f32[32,128], index: 4, kind: input, shape index: {}]   ;;  %s9944_s5 = inlined_call_operand.vmem [shape: f32[1,32], index: 5, kind: input, shape index: {}]   ;;  %s9945_s6 = inlined_call_operand.vmem [shape: f32[1,32], index: 6, kind: input, shape index: {}]   ;;  %s9946_s7 = inlined_call_operand.vmem [shape: f32[1,128], index: 7, kind: input, shape index: {}]   ;;  %s9947_s8 = inlined_call_operand.hbm [shape: f32[2,288,128], index: 8, kind: output, shape index: {}]  }
   0x1   :  { %15 = vsyncpa [#allocation5 + $0x1], 0  ;;  %s8135_s27 = smov 0   ;;  %s8137_s28 = smov 0  }
   0x2   :  { %s8139_s29 = smov 0   ;;  %s8141_s30 = smov 0  }
   0x3 LB: > { %s8156_s9 = sadd.s32 4294967295, %s8081_s30   ;;  %s6225_s10 = sadd.s32 4294967294, %s8081_s30   ;;  %s8081_s30 = sphi %s8141_s30, %s10019_s30   ;;  %s8077_s29 = sphi %s8139_s29, %s10018_s29   ;;  %s8073_s28 = sphi %s8137_s28, %s10017_s28   ;;  %s8069_s27 = sphi %s8135_s27, %s10016_s27  }
   0x4   : > { %s8160_s11 = sadd.s32 1, %s8081_s30   ;;  %s201_s12 = sadd.s32 1, %s8077_s29 }
   0x5   : > { %s198_s13 = ssub.s32 %s8081_s30, %s8160_s11  ;;  %p211_p0 = scmp.ne.s32.totalorder %s8077_s29, %s8073_s28 }
   0x6   : > { %p199_p1 = scmp.eq.s32.totalorder %s198_s13, 0  ;;  %p212_p2 = scmp.eq.s32.totalorder %s8156_s9, 1 }
   0x7   : > { %p217_p3 = scmp.ne.s32.totalorder %s8073_s28, %s8069_s27  ;;  %p218_p4 = scmp.eq.s32.totalorder %s6225_s10, 1 }
   0x8   : > { %s8171_s14 = scalar_select %p199_p1, %s8077_s29, %s201_s12  }
   0x9   : > { %p8173_p5 = por %p212_p2, %p211_p0  ;;  %p8177_p6 = por %p218_p4, %p217_p3 }
   0xa   : > { %p6228_p7 = scmp.ge.s32.totalorder %s8081_s30, 1  ;;  %p265_p8 = scmp.lt.s32.totalorder %s8081_s30, 3 }
   0xc   : > { %p266_p9 = pnand %p6228_p7, %p265_p8 }
   0xe   : > { %269 = sbr.rel (%p266_p9) target bundleno = 1261 (0x4ed), region = 52 }
  0x15   : > { %v345_v0 = vld [vmem:[%s9941_s2] sm:$0xff]  ;;  %v346_v1 = vld [vmem:[%s9941_s2 + $0x8] sm:$0xff]  ;;  %v347_v2 = vld [vmem:[%s9941_s2 + $0x10] sm:$0xff]  ;;  %v8083_v3 = vmov 0.0|0.0   ;;  %vm8084_vm0 = vmmov 0   ;;  %v8085_v6 = vmov 0.0  }
  0x16   : > { %7860 = vmatprep.subr.bf16.mxu0 %v8083_v3  ;;  %v7861_v4 = vpack.c.bf16 %v346_v1, %v345_v0  ;;  %v348_v5 = vld [vmem:[%s9941_s2 + $0x18] sm:$0xff]  ;;  %7117 = vmatprep.mubr.msk.f32.mxu0 %vm8084_vm0, %v8085_v6  ;;  %v8086_v7 = vmov 0   ;;  %v349_v9 = vld [vmem:[%s9941_s2 + $0x20] sm:$0xff]  ;;  %v350_v10 = vld [vmem:[%s9941_s2 + $0x28] sm:$0xff]  ;;  %p299_p10 = scmp.lt.s32.totalorder %s8156_s9, 1  ;;  %vm966_vm1 = vcmask 261120  }
  0x17   : > { %8016 = vset.pattern.permute.xlu0 %v8086_v7  ;;  %8017 = vset.pattern.permute.xlu1 %v8086_v7  ;;  %v7864_v8 = vpack.c.bf16 %v348_v5, %v347_v2  ;;  %v679_v11 = vld [vmem:[%s9940_s1] sm:$0xff]  ;;  %v681_v12 = vld [vmem:[%s9940_s1 + $0x10] sm:$0xff]  ;;  %v7867_v13 = vpack.c.bf16 %v350_v10, %v349_v9  ;;  %v680_v14 = vld [vmem:[%s9940_s1 + $0x8] sm:$0xff]  ;;  %vm1007_vm2 = vcmask 259072   ;;  %s296_s26 = sand.u32 1, %s8073_s28   ;;  %s7970_s18 = smul.u32 4608, %s8156_s9 }
  0x18   : > { %7862 = vmatpush3.bf16.msra.mxu0 %v7861_v4  ;;  %722 = vperm.xlu0 %8016, %v679_v11   ;;  %v351_v15 = vld [vmem:[%s9941_s2 + $0x30] sm:$0xff]  ;;  %v352_v16 = vld [vmem:[%s9941_s2 + $0x38] sm:$0xff]  ;;  %v683_v19 = vld [vmem:[%s9940_s1 + $0x20] sm:$0xff]  ;;  %s300_s24 = scalar_select %p299_p10, %s8156_s9, 1 }
  0x19   : > { %7863 = vmatprep.subr.bf16.mxu0 %v8083_v3  ;;  %732 = vperm.xlu1 %8017, %v681_v12   ;;  %v682_v17 = vld [vmem:[%s9940_s1 + $0x18] sm:$0xff]  ;;  %v7870_v18 = vpack.c.bf16 %v352_v16, %v351_v15  ;;  %v353_v20 = vld [vmem:[%s9941_s2 + $0x40] sm:$0xff]  ;;  %v354_v21 = vld [vmem:[%s9941_s2 + $0x48] sm:$0xff]  ;;  %s7968_s13 = smul.u32 288, %s296_s26  ;;  %s9890_s22 = scalar_lea.hbm %s9947_s8, %s7970_s18 }
  0x1a   : > { %v684_v22 = vld [vmem:[%s9940_s1 + $0x28] sm:$0xff]  ;;  %v7873_v23 = vpack.c.bf16 %v354_v21, %v353_v20  ;;  %v685_v24 = vld [vmem:[%s9940_s1 + $0x30] sm:$0xff]  ;;  %v356_v26 = vld [vmem:[%s9941_s2 + $0x58] sm:$0xff]  ;;  %s7969_s20 = smul.u32 328, %s300_s24  ;;  %s9898_s9 = scalar_lea.sflag [#allocation5], %s296_s26 }
  0x1b   : > { %v355_v25 = vld [vmem:[%s9941_s2 + $0x50] sm:$0xff]  ;;  %v686_v27 = vld [vmem:[%s9940_s1 + $0x38] sm:$0xff]  ;;  %v687_v29 = vld [vmem:[%s9940_s1 + $0x40] sm:$0xff]  ;;  %s9785_s17 = scalar_lea.vmem [#allocation4], %s7968_s13  ;;  %s8087_s23 = smov [#allocation4]  }
  0x1c   : > { %7865 = vmatpush3.bf16.msra.mxu0 %v7864_v8  ;;  %727 = vperm.xlu0 %8016, %v680_v14   ;;  %v7876_v28 = vpack.c.bf16 %v356_v26, %v355_v25  ;;  %v357_v30 = vld [vmem:[%s9941_s2 + $0x60] sm:$0xff]  ;;  %v358_v31 = vld [vmem:[%s9941_s2 + $0x68] sm:$0xff]  ;;  %v689_v34 = vld [vmem:[%s9940_s1 + $0x50] sm:$0xff]  ;;  %s8285_s12 = scalar_lea.vmem %s9939_s0, %s7969_s20  ;;  %s6163_s19 = sshll.u32 %s9785_s17, 4  ;;  %s9892_s19 = int_to_ptr.vmem [resolvable:$true] %s6163_s19 }
  0x1d   : > { %7866 = vmatprep.subr.bf16.mxu0 %v8083_v3  ;;  %737 = vperm.xlu1 %8017, %v682_v17   ;;  %v688_v32 = vld [vmem:[%s9940_s1 + $0x48] sm:$0xff]  ;;  %v7879_v33 = vpack.c.bf16 %v358_v31, %v357_v30  ;;  %v359_v35 = vld [vmem:[%s9941_s2 + $0x70] sm:$0xff]  ;;  %v360_v36 = vld [vmem:[%s9941_s2 + $0x78] sm:$0xff]  ;;  %s8023_s25 = sshll.u32 %s8087_s23, 4  ;;  %s8024_s25 = int_to_ptr.vmem [resolvable:$false] %s8023_s25 }
  0x1e   : > { %v690_v37 = vld [vmem:[%s9940_s1 + $0x58] sm:$0xff]  ;;  %v7882_v38 = vpack.c.bf16 %v360_v36, %v359_v35  ;;  %v691_v39 = vld [vmem:[%s9940_s1 + $0x60] sm:$0xff]  ;;  %v692_v40 = vld [vmem:[%s9940_s1 + $0x68] sm:$0xff]  ;;  %s8025_s10 = scalar_lea.vmem %s8024_s25, 9216  ;;  %p8026_p0 = scmp.lt.s32.totalorder %s9892_s19, %s8024_s25 }
  0x1f   : > { %v304_v41 = vld [vmem:[%s8285_s12] sm:$0xff]  ;;  %v693_v42 = vld [vmem:[%s9940_s1 + $0x70] sm:$0xff]  ;;  %v694_v43 = vld [vmem:[%s9940_s1 + $0x78] sm:$0xff] }
  0x20   : > { %7868 = vmatpush3.bf16.msra.mxu0 %v7867_v13  ;;  %742 = vperm.xlu0 %8016, %v683_v19   ;;  %v305_v44 = vld [vmem:[%s8285_s12 + $0x8] sm:$0xff]  ;;  %v695_v45 = vld [vmem:[%s9940_s1 + $0x80] sm:$0xff]  ;;  %v306_v47 = vld [vmem:[%s8285_s12 + $0x10] sm:$0xff] }
  0x21   : > { %7869 = vmatprep.subr.bf16.mxu0 %v8083_v3  ;;  %747 = vperm.xlu1 %8017, %v684_v22   ;;  %v696_v46 = vld [vmem:[%s9940_s1 + $0x88] sm:$0xff]  ;;  %v697_v48 = vld [vmem:[%s9940_s1 + $0x90] sm:$0xff]  ;;  %v698_v49 = vld [vmem:[%s9940_s1 + $0x98] sm:$0xff] }
  0x22   : > { %v307_v50 = vld [vmem:[%s8285_s12 + $0x18] sm:$0xff]  ;;  %v699_v51 = vld [vmem:[%s9940_s1 + $0xa0] sm:$0xff]  ;;  %v700_v52 = vld [vmem:[%s9940_s1 + $0xa8] sm:$0xff] }
  0x23   : > { %v308_v53 = vld [vmem:[%s8285_s12 + $0x20] sm:$0xff]  ;;  %v701_v54 = vld [vmem:[%s9940_s1 + $0xb0] sm:$0xff]  ;;  %v702_v55 = vld [vmem:[%s9940_s1 + $0xb8] sm:$0xff] }
  0x24   : > { %7871 = vmatpush3.bf16.msra.mxu0 %v7870_v18  ;;  %752 = vperm.xlu0 %8016, %v685_v24   ;;  %v309_v56 = vld [vmem:[%s8285_s12 + $0x28] sm:$0xff]  ;;  %v703_v57 = vld [vmem:[%s9940_s1 + $0xc0] sm:$0xff]  ;;  %v310_v59 = vld [vmem:[%s8285_s12 + $0x30] sm:$0xff] }
  0x25   : > { %7872 = vmatprep.subr.bf16.mxu0 %v8083_v3  ;;  %757 = vperm.xlu1 %8017, %v686_v27   ;;  %v704_v58 = vld [vmem:[%s9940_s1 + $0xc8] sm:$0xff]  ;;  %v705_v60 = vld [vmem:[%s9940_s1 + $0xd0] sm:$0xff]  ;;  %v706_v61 = vld [vmem:[%s9940_s1 + $0xd8] sm:$0xff] }
  0x26   : > { %v311_v62 = vld [vmem:[%s8285_s12 + $0x38] sm:$0xff]  ;;  %v707_v63 = vld [vmem:[%s9940_s1 + $0xe0] sm:$0xff]  ;;  %v708_v0 = vld [vmem:[%s9940_s1 + $0xe8] sm:$0xff] }
  0x27   : > { %v312_v1 = vld [vmem:[%s8285_s12 + $0x40] sm:$0xff]  ;;  %v709_v2 = vld [vmem:[%s9940_s1 + $0xf0] sm:$0xff]  ;;  %v313_v4 = vld [vmem:[%s8285_s12 + $0x48] sm:$0xff] }
  0x28   : > { %7874 = vmatpush3.bf16.msra.mxu0 %v7873_v23  ;;  %762 = vperm.xlu0 %8016, %v687_v29   ;;  %v711_v5 = vld [vmem:[%s9940_s1 + $0x100] sm:$0xff]  ;;  %v712_v7 = vld [vmem:[%s9940_s1 + $0x108] sm:$0xff]  ;;  %v314_v8 = vld [vmem:[%s8285_s12 + $0x50] sm:$0xff] }
  0x29   : > { %7875 = vmatprep.subr.bf16.mxu0 %v8083_v3  ;;  %767 = vperm.xlu1 %8017, %v688_v32   ;;  %v713_v9 = vld [vmem:[%s9940_s1 + $0x110] sm:$0xff]  ;;  %v714_v10 = vld [vmem:[%s9940_s1 + $0x118] sm:$0xff]  ;;  %v715_v12 = vld [vmem:[%s9940_s1 + $0x120] sm:$0xff] }
  0x2a   : > { %v315_v11 = vld [vmem:[%s8285_s12 + $0x58] sm:$0xff]  ;;  %v716_v13 = vld [vmem:[%s9940_s1 + $0x128] sm:$0xff]  ;;  %v316_v14 = vld [vmem:[%s8285_s12 + $0x60] sm:$0xff] }
  0x2b   : > { %v717_v15 = vld [vmem:[%s9940_s1 + $0x130] sm:$0xff]  ;;  %v718_v16 = vld [vmem:[%s9940_s1 + $0x138] sm:$0xff]  ;;  %v317_v17 = vld [vmem:[%s8285_s12 + $0x68] sm:$0xff] }
  0x2c   : > { %7877 = vmatpush3.bf16.msra.mxu0 %v7876_v28  ;;  %772 = vperm.xlu0 %8016, %v689_v34   ;;  %v719_v18 = vld [vmem:[%s9940_s1 + $0x140] sm:$0x3f]  ;;  %v318_v19 = vld [vmem:[%s8285_s12 + $0x70] sm:$0xff]  ;;  %v319_v20 = vld [vmem:[%s8285_s12 + $0x78] sm:$0xff] }
  0x2d   : > { %7878 = vmatprep.subr.bf16.mxu0 %v8083_v3  ;;  %777 = vperm.xlu1 %8017, %v690_v37   ;;  %v320_v21 = vld [vmem:[%s8285_s12 + $0x80] sm:$0xff]  ;;  %v321_v22 = vld [vmem:[%s8285_s12 + $0x88] sm:$0xff]  ;;  %v322_v23 = vld [vmem:[%s8285_s12 + $0x90] sm:$0xff] }
  0x2e   : > { %v323_v24 = vld [vmem:[%s8285_s12 + $0x98] sm:$0xff]  ;;  %v324_v25 = vld [vmem:[%s8285_s12 + $0xa0] sm:$0xff]  ;;  %v325_v26 = vld [vmem:[%s8285_s12 + $0xa8] sm:$0xff] }
  0x2f   : > { %v326_v27 = vld [vmem:[%s8285_s12 + $0xb0] sm:$0xff]  ;;  %v327_v28 = vld [vmem:[%s8285_s12 + $0xb8] sm:$0xff]  ;;  %v1124_v29 = vld [vmem:[%s9942_s3] sm:$0xff] }
  0x30   : > { %7880 = vmatpush3.bf16.msra.mxu0 %v7879_v33  ;;  %782 = vperm.xlu0 %8016, %v691_v39   ;;  %v1125_v30 = vld [vmem:[%s9942_s3 + $0x8] sm:$0xff]  ;;  %v328_v32 = vld [vmem:[%s8285_s12 + $0xc0] sm:$0xff]  ;;  %v1126_v33 = vld [vmem:[%s9942_s3 + $0x10] sm:$0xff] }
  0x31   : > { %7881 = vmatprep.subr.bf16.mxu0 %v8083_v3  ;;  %787 = vperm.xlu1 %8017, %v692_v40   ;;  %v710_v3 = vld [vmem:[%s9940_s1 + $0xf8] sm:$0xff]  ;;  %v7884_v31 = vpack.c.bf16 %v1125_v30, %v1124_v29  ;;  %v329_v36 = vld [vmem:[%s8285_s12 + $0xc8] sm:$0xff]  ;;  %v330_v37 = vld [vmem:[%s8285_s12 + $0xd0] sm:$0xff] }
  0x32   : > { %v1127_v34 = vld [vmem:[%s9942_s3 + $0x18] sm:$0xff]  ;;  %v6349_v39 = vld [vmem:[%s9942_s3 + $0x68] sm:$0xff] }
  0x33   : > { %7885 = vmatprep.subr.bf16.mxu1 %v7884_v31  ;;  %v7888_v35 = vpack.c.bf16 %v1127_v34, %v1126_v33 }
  0x34   : > { %7883 = vmatpush3.bf16.msra.mxu0 %v7882_v38  ;;  %792 = vperm.xlu0 %8016, %v693_v42   ;;  %v6348_v38 = vld [vmem:[%s9942_s3 + $0x60] sm:$0xff]  ;;  %v6350_v42 = vld [vmem:[%s9942_s3 + $0x70] sm:$0xff] }
  0x35   : > { %797 = vperm.xlu1 %8017, %v694_v43   ;;  %7887 = vmatpush3.bf16.msra.mxu1 %v7884_v31  ;;  %v8468_v40 = vpack.c.bf16 %v6349_v39, %v6348_v38  ;;  %v6351_v43 = vld [vmem:[%s9942_s3 + $0x78] sm:$0xff] }
  0x36   : > { %7889 = vmatprep.subr.bf16.mxu1 %v7888_v35 }
  0x37   : > { %7118 = vmatmul.mubr.f32.vlgmr.msra.gmra.mrb[0].mxu0 %v304_v41  ;;  %v331_v41 = vld [vmem:[%s8285_s12 + $0xd8] sm:$0xff]  ;;  %7909 = vmatprep.subr.bf16.mxu0 %v8468_v40 }
  0x38   : > { %7120 = vmatprep.mubr.msk.f32.mxu0 %vm8084_vm0, %v8085_v6  ;;  %802 = vperm.xlu0 %8016, %v695_v45   ;;  %v332_v45 = vld [vmem:[%s8285_s12 + $0xe0] sm:$0xff] }
  0x39   : > { %807 = vperm.xlu1 %8017, %v696_v46   ;;  %7891 = vmatpush3.bf16.msra.mxu1 %v7888_v35  ;;  %v333_v46 = vld [vmem:[%s8285_s12 + $0xe8] sm:$0xff] }
  0x3a   : > { %7911 = vmatpush3.bf16.msra.mxu0 %v8468_v40 }
  0x3b   : > { %7121 = vmatmul.mubr.f32.gmra.mrb[2].mxu0 %v305_v44  ;;  %v8481_v44 = vpack.c.bf16 %v6351_v43, %v6350_v42 }
  0x3c   : > { %7123 = vmatprep.mubr.msk.f32.mxu0 %vm8084_vm0, %v8085_v6  ;;  %812 = vperm.xlu0 %8016, %v697_v48   ;;  %v335_v48 = vld [vmem:[%s8285_s12 + $0xf8] sm:$0xff] }
  0x3d   : > { %817 = vperm.xlu1 %8017, %v698_v49   ;;  %7913 = vmatprep.subr.bf16.mxu0 %v8481_v44  ;;  %v336_v49 = vld [vmem:[%s8285_s12 + $0x100] sm:$0xff] }
  0x3e   : > { %7915 = vmatpush3.bf16.msra.mxu0 %v8481_v44 }
  0x3f   : > { %7124 = vmatmul.mubr.f32.gmra.mrb[4].mxu0 %v306_v47  ;;  %v334_v47 = vld [vmem:[%s8285_s12 + $0xf0] sm:$0xff] }
  0x40   : > { %7126 = vmatprep.mubr.msk.f32.mxu0 %vm8084_vm0, %v8085_v6  ;;  %822 = vperm.xlu0 %8016, %v699_v51   ;;  %v338_v51 = vld [vmem:[%s8285_s12 + $0x110] sm:$0xff] }
  0x41   : > { %827 = vperm.xlu1 %8017, %v700_v52   ;;  %v339_v52 = vld [vmem:[%s8285_s12 + $0x118] sm:$0xff] }
  0x43   : > { %7127 = vmatmul.mubr.f32.gmra.mrb[6].mxu0 %v307_v50  ;;  %v337_v50 = vld [vmem:[%s8285_s12 + $0x108] sm:$0xff] }
  0x44   : > { %7129 = vmatprep.mubr.msk.f32.mxu0 %vm8084_vm0, %v8085_v6  ;;  %832 = vperm.xlu0 %8016, %v701_v54   ;;  %v341_v54 = vld [vmem:[%s8285_s12 + $0x128] sm:$0xff] }
  0x45   : > { %837 = vperm.xlu1 %8017, %v702_v55   ;;  %v342_v55 = vld [vmem:[%s8285_s12 + $0x130] sm:$0xff] }
  0x47   : > { %7130 = vmatmul.mubr.f32.gmra.mrb[8].mxu0 %v308_v53  ;;  %v340_v53 = vld [vmem:[%s8285_s12 + $0x120] sm:$0xff] }
  0x48   : > { %7132 = vmatprep.mubr.msk.f32.mxu0 %vm8084_vm0, %v8085_v6  ;;  %842 = vperm.xlu0 %8016, %v703_v57   ;;  %v344_v57 = vld [vmem:[%s8285_s12 + $0x140] sm:$0x3f] }
  0x49   : > { %847 = vperm.xlu1 %8017, %v704_v58   ;;  %v6268_v58 = vld [vmem:[%s9942_s3 + $0x20] sm:$0xff] }
  0x4b   : > { %7133 = vmatmul.mubr.f32.gmra.mrb[10].mxu0 %v309_v56  ;;  %v343_v56 = vld [vmem:[%s8285_s12 + $0x138] sm:$0xff] }
  0x4c   : > { %7135 = vmatprep.mubr.msk.f32.mxu0 %vm8084_vm0, %v8085_v6  ;;  %852 = vperm.xlu0 %8016, %v705_v60  }
  0x4d   : > { %857 = vperm.xlu1 %8017, %v706_v61   ;;  %v6428_v61 = vld [vmem:[%s9942_s3 + $0xa0] sm:$0xff] }
  0x4f   : > { %7136 = vmatmul.mubr.f32.gmra.mrb[12].mxu0 %v310_v59  ;;  %v6269_v59 = vld [vmem:[%s9942_s3 + $0x28] sm:$0xff] }
  0x50   : > { %7138 = vmatprep.mubr.msk.f32.mxu0 %vm8084_vm0, %v8085_v6  ;;  %862 = vperm.xlu0 %8016, %v707_v63   ;;  %v7892_v60 = vpack.c.bf16 %v6269_v59, %v6268_v58  ;;  %v8542_v63 = vld [vmem:[%s9944_s5] ss:$0 sm:$0xff] }
  0x51   : > { %867 = vperm.xlu1 %8017, %v708_v0  }
  0x52   : > { %7893 = vmatprep.subr.bf16.mxu1 %v7892_v60 }
  0x53   : > { %7139 = vmatmul.mubr.f32.gmra.mrb[14].mxu0 %v311_v62 }
  0x54   : > { %7141 = vmatprep.mubr.msk.f32.mxu0 %vm8084_vm0, %v8085_v6  ;;  %872 = vperm.xlu0 %8016, %v709_v2  }
  0x55   : > { %877 = vperm.xlu1 %8017, %v710_v3  }
  0x57   : > { %7142 = vmatmul.mubr.f32.gmra.mrb[16].mxu0 %v312_v1 }
  0x58   : > { %7144 = vmatprep.mubr.msk.f32.mxu0 %vm8084_vm0, %v8085_v6  ;;  %882 = vperm.xlu0 %8016, %v711_v5  }
  0x59   : > { %887 = vperm.xlu1 %8017, %v712_v7  }
  0x5b   : > { %7145 = vmatmul.mubr.f32.gmra.mrb[18].mxu0 %v313_v4 }
  0x5c   : > { %7147 = vmatprep.mubr.msk.f32.mxu0 %vm8084_vm0, %v8085_v6  ;;  %892 = vperm.xlu0 %8016, %v713_v9  }
  0x5d   : > { %897 = vperm.xlu1 %8017, %v714_v10  }
  0x5f   : > { %7148 = vmatmul.mubr.f32.gmra.mrb[20].mxu0 %v314_v8 }
  0x60   : > { %7150 = vmatprep.mubr.msk.f32.mxu0 %vm8084_vm0, %v8085_v6  ;;  %902 = vperm.xlu0 %8016, %v715_v12  }
  0x61   : > { %907 = vperm.xlu1 %8017, %v716_v13  }
  0x63   : > { %7151 = vmatmul.mubr.f32.gmra.mrb[22].mxu0 %v315_v11 }
  0x64   : > { %7153 = vmatprep.mubr.msk.f32.mxu0 %vm8084_vm0, %v8085_v6  ;;  %912 = vperm.xlu0 %8016, %v717_v15  }
  0x65   : > { %917 = vperm.xlu1 %8017, %v718_v16  }
  0x67   : > { %7154 = vmatmul.mubr.f32.gmra.mrb[24].mxu0 %v316_v14 }
  0x68   : > { %7156 = vmatprep.mubr.msk.f32.mxu0 %vm8084_vm0, %v8085_v6  ;;  %922 = vperm.xlu0 %8016, %v719_v18  }
  0x6b   : > { %7157 = vmatmul.mubr.f32.gmra.mrb[26].mxu0 %v317_v17 }
  0x6c   : > { %7159 = vmatprep.mubr.msk.f32.mxu0 %vm8084_vm0, %v8085_v6 }
  0x6f   : > { %7160 = vmatmul.mubr.f32.gmra.mrb[28].mxu0 %v318_v19 }
  0x70   : > { %7162 = vmatprep.mubr.msk.f32.mxu0 %vm8084_vm0, %v8085_v6 }
  0x73   : > { %7163 = vmatmul.mubr.f32.gmra.mrb[30].mxu0 %v319_v20 }
  0x74   : > { %7165 = vmatprep.mubr.msk.f32.mxu0 %vm8084_vm0, %v8085_v6 }
  0x77   : > { %7166 = vmatmul.mubr.f32.gmra.mrb[32].mxu0 %v320_v21 }
  0x78   : > { %7168 = vmatprep.mubr.msk.f32.mxu0 %vm8084_vm0, %v8085_v6 }
  0x7b   : > { %7169 = vmatmul.mubr.f32.gmra.mrb[34].mxu0 %v321_v22 }
  0x7c   : > { %7171 = vmatprep.mubr.msk.f32.mxu0 %vm8084_vm0, %v8085_v6 }
  0x7f   : > { %7172 = vmatmul.mubr.f32.gmra.mrb[36].mxu0 %v322_v23  ;;  %v6270_v23 = vld [vmem:[%s9942_s3 + $0x30] sm:$0xff] }
  0x80   : > { %7174 = vmatprep.mubr.msk.f32.mxu0 %vm8084_vm0, %v8085_v6 }
  0x83   : > { %7175 = vmatmul.mubr.f32.gmra.mrb[38].mxu0 %v323_v24  ;;  %v6271_v24 = vld [vmem:[%s9942_s3 + $0x38] sm:$0xff] }
  0x84   : > { %7177 = vmatprep.mubr.msk.f32.mxu0 %vm8084_vm0, %v8085_v6  ;;  %v7896_v31 = vpack.c.bf16 %v6271_v24, %v6270_v23 }
  0x87   : > { %7178 = vmatmul.mubr.f32.gmra.mrb[40].mxu0 %v324_v25 }
  0x88   : > { %7180 = vmatprep.mubr.msk.f32.mxu0 %vm8084_vm0, %v8085_v6 }
  0x8b   : > { %7181 = vmatmul.mubr.f32.gmra.mrb[42].mxu0 %v325_v26 }
  0x8c   : > { %7183 = vmatprep.mubr.msk.f32.mxu0 %vm8084_vm0, %v8085_v6 }
  0x8f   : > { %7184 = vmatmul.mubr.f32.gmra.mrb[44].mxu0 %v326_v27 }
  0x90   : > { %7186 = vmatprep.mubr.msk.f32.mxu0 %vm8084_vm0, %v8085_v6 }
  0x93   : > { %7187 = vmatmul.mubr.f32.gmra.mrb[46].mxu0 %v327_v28 }
  0x94   : > { %7189 = vmatprep.mubr.msk.f32.mxu0 %vm8084_vm0, %v8085_v6 }
  0x97   : > { %7190 = vmatmul.mubr.f32.gmra.mrb[48].mxu0 %v328_v32  ;;  %v723_v3 = vpop.permute.xlu0 %722 }
  0x98   : > { %7192 = vmatprep.mubr.msk.f32.mxu0 %vm8084_vm0, %v8085_v6  ;;  %v733_v16 = vpop.permute.xlu1 %732 }
  0x9b   : > { %7193 = vmatmul.mubr.f32.gmra.mrb[50].mxu0 %v329_v36  ;;  %v728_v11 = vpop.permute.xlu0 %727 }
  0x9c   : > { %7195 = vmatprep.mubr.msk.f32.mxu0 %vm8084_vm0, %v8085_v6  ;;  %v738_v26 = vpop.permute.xlu1 %737 }
  0x9f   : > { %7196 = vmatmul.mubr.f32.gmra.mrb[52].mxu0 %v330_v37  ;;  %v743_v34 = vpop.permute.xlu0 %742 }
  0xa0   : > { %7198 = vmatprep.mubr.msk.f32.mxu0 %vm8084_vm0, %v8085_v6  ;;  %v748_v42 = vpop.permute.xlu1 %747 }
  0xa3   : > { %7199 = vmatmul.mubr.f32.gmra.mrb[54].mxu0 %v331_v41 }
  0xa4   : > { %7201 = vmatprep.mubr.msk.f32.mxu0 %vm8084_vm0, %v8085_v6 }
  0xa7   : > { %7202 = vmatmul.mubr.f32.gmra.mrb[56].mxu0 %v332_v45 }
  0xa8   : > { %7204 = vmatprep.mubr.msk.f32.mxu0 %vm8084_vm0, %v8085_v6 }
  0xab   : > { %7205 = vmatmul.mubr.f32.gmra.mrb[58].mxu0 %v333_v46 }
  0xac   : > { %7207 = vmatprep.mubr.msk.f32.mxu0 %vm8084_vm0, %v8085_v6 }
  0xaf   : > { %7208 = vmatmul.mubr.f32.gmra.mrb[60].mxu0 %v334_v47 }
  0xb0   : > { %7210 = vmatprep.mubr.msk.f32.mxu0 %vm8084_vm0, %v8085_v6 }
  0xb3   : > { %7211 = vmatmul.mubr.f32.gmra.mrb[62].mxu0 %v335_v48  ;;  %v6430_v48 = vld [vmem:[%s9942_s3 + $0xb0] sm:$0xff] }
  0xb4   : > { %7213 = vmatprep.mubr.msk.f32.mxu0 %vm8084_vm0, %v8085_v6 }
  0xb7   : > { %7214 = vmatmul.mubr.f32.gmra.mrb[64].mxu0 %v336_v49 }
  0xb8   : > { %7216 = vmatprep.mubr.msk.f32.mxu0 %vm8084_vm0, %v8085_v6 }
  0xbb   : > { %7217 = vmatmul.mubr.f32.gmra.mrb[66].mxu0 %v337_v50 }
  0xbc   : > { %7219 = vmatprep.mubr.msk.f32.mxu0 %vm8084_vm0, %v8085_v6 }
  0xbf   : > { %7220 = vmatmul.mubr.f32.gmra.mrb[68].mxu0 %v338_v51  ;;  %v6431_v51 = vld [vmem:[%s9942_s3 + $0xb8] sm:$0xff] }
  0xc0   : > { %7222 = vmatprep.mubr.msk.f32.mxu0 %vm8084_vm0, %v8085_v6  ;;  %v7928_v58 = vpack.c.bf16 %v6431_v51, %v6430_v48 }
  0xc3   : > { %7223 = vmatmul.mubr.f32.gmra.mrb[70].mxu0 %v339_v52 }
  0xc4   : > { %7225 = vmatprep.mubr.msk.f32.mxu0 %vm8084_vm0, %v8085_v6 }
  0xc7   : > { %7226 = vmatmul.mubr.f32.gmra.mrb[72].mxu0 %v340_v53  ;;  %v753_v53 = vpop.permute.xlu0 %752 }
  0xc8   : > { %7228 = vmatprep.mubr.msk.f32.mxu0 %vm8084_vm0, %v8085_v6 }
  0xcb   : > { %7229 = vmatmul.mubr.f32.gmra.mrb[74].mxu0 %v341_v54 }
  0xcc   : > { %7231 = vmatprep.mubr.msk.f32.mxu0 %vm8084_vm0, %v8085_v6 }
  0xcf   : > { %7232 = vmatmul.mubr.f32.gmra.mrb[76].mxu0 %v342_v55 }
  0xd0   : > { %7234 = vmatprep.mubr.msk.f32.mxu0 %vm8084_vm0, %v8085_v6 }
  0xd3   : > { %7235 = vmatmul.mubr.f32.gmra.mrb[78].mxu0 %v343_v56 }
  0xd4   : > { %7237 = vmatprep.mubr.msk.f32.mxu0 %vm8084_vm0, %v8085_v6  ;;  %v6429_v6 = vld [vmem:[%s9942_s3 + $0xa8] sm:$0xff] }
  0xd5   : > { %v8536_v62 = vpack.c.bf16 %v6429_v6, %v6428_v61  ;;  %v758_v6 = vpop.permute.xlu1 %757 }
  0xd7   : > { %7238 = vmatmul.mubr.f32.gmra.mrb[80].mxu0 %v344_v57  ;;  %7925 = vmatprep.subr.bf16.mxu0 %v8536_v62 }
 0x10a   : > { %v434_v0 = vpop.f32.mrb[0].mxu0 }
 0x10b   : > { %v435_v1 = vadd.f32 %v8542_v63, %v434_v0  ;;  %v7119_v2 = vpop.f32.mrb[1].mxu0 }
 0x10d   : > { %v638_v4 = vmax.f32 %v435_v1, 0.0 }
 0x10e   : > { %v439_v5 = vpop.f32.mrb[2].mxu0 }
 0x10f   : > { %v925_v7 = vmul.f32 %v723_v3, %v638_v4  ;;  %v440_v8 = vadd.f32 %v8542_v63, %v439_v5  ;;  %v7122_v9 = vpop.f32.mrb[3].mxu0 }
 0x110   : > { %v763_v9 = vpop.permute.xlu0 %762 }
 0x111   : > { %967 = vst.msk [vmem:[#allocation2] sm:$0xff] %vm966_vm1, %v925_v7  ;;  %v639_v10 = vmax.f32 %v440_v8, 0.0  ;;  %v6308_v8 = vld [vmem:[%s9942_s3 + $0x40] sm:$0xff] }
 0x112   : > { %v444_v12 = vpop.f32.mrb[4].mxu0 }
 0x113   : > { %v926_v13 = vmul.f32 %v728_v11, %v639_v10  ;;  %v445_v14 = vadd.f32 %v8542_v63, %v444_v12  ;;  %v7125_v15 = vpop.f32.mrb[5].mxu0 }
 0x115   : > { %968 = vst.msk [vmem:[#allocation2 + $0x8] sm:$0xff] %vm966_vm1, %v926_v13  ;;  %v640_v17 = vmax.f32 %v445_v14, 0.0 }
 0x116   : > { %v449_v18 = vpop.f32.mrb[6].mxu0 }
 0x117   : > { %v927_v19 = vmul.f32 %v733_v16, %v640_v17  ;;  %v450_v20 = vadd.f32 %v8542_v63, %v449_v18  ;;  %v7128_v21 = vpop.f32.mrb[7].mxu0  ;;  %v768_v18 = vpop.permute.xlu1 %767 }
 0x118   : > { %v1088_v22 = vld [vmem:[#allocation2] sm:$0xff] }
 0x119   : > { %969 = vst.msk [vmem:[#allocation2 + $0x10] sm:$0xff] %vm966_vm1, %v927_v19  ;;  %v641_v25 = vmax.f32 %v450_v20, 0.0  ;;  %7248 = vmatprep.mubr.msk.f32.mxu1 %vm966_vm1, %v1088_v22 }
 0x11a   : > { %v454_v27 = vpop.f32.mrb[8].mxu0 }
 0x11b   : > { %v928_v28 = vmul.f32 %v738_v26, %v641_v25  ;;  %v455_v29 = vadd.f32 %v8542_v63, %v454_v27  ;;  %v7131_v30 = vpop.f32.mrb[9].mxu0  ;;  %v773_v26 = vpop.permute.xlu0 %772 }
 0x11c   : > { %v1089_v32 = vld [vmem:[#allocation2 + $0x8] sm:$0xff] }
 0x11d   : > { %970 = vst.msk [vmem:[#allocation2 + $0x18] sm:$0xff] %vm966_vm1, %v928_v28  ;;  %v642_v33 = vmax.f32 %v455_v29, 0.0  ;;  %7249 = vmatmul.mubr.msk.f32.vlgmr.msra.gmra.mrb[0].mxu1 %vm966_vm1, %v1089_v32 }
 0x11e   : > { %v459_v35 = vpop.f32.mrb[10].mxu0  ;;  %7895 = vmatpush3.bf16.msra.mxu1 %v7892_v60 }
 0x11f   : > { %v929_v36 = vmul.f32 %v743_v34, %v642_v33  ;;  %v460_v37 = vadd.f32 %v8542_v63, %v459_v35  ;;  %v7134_v38 = vpop.f32.mrb[11].mxu0  ;;  %7897 = vmatprep.subr.bf16.mxu1 %v7896_v31  ;;  %v778_v34 = vpop.permute.xlu1 %777 }
 0x120   : > { %v1090_v39 = vld [vmem:[#allocation2 + $0x10] sm:$0xff] }
 0x121   : > { %971 = vst.msk [vmem:[#allocation2 + $0x20] sm:$0xff] %vm966_vm1, %v929_v36  ;;  %v643_v41 = vmax.f32 %v460_v37, 0.0  ;;  %7251 = vmatprep.mubr.msk.f32.mxu1 %vm966_vm1, %v1090_v39 }
 0x122   : > { %v464_v43 = vpop.f32.mrb[12].mxu0  ;;  %7899 = vmatpush3.bf16.msra.mxu1 %v7896_v31 }
 0x123   : > { %v930_v45 = vmul.f32 %v748_v42, %v643_v41  ;;  %v465_v46 = vadd.f32 %v8542_v63, %v464_v43  ;;  %v7137_v47 = vpop.f32.mrb[13].mxu0  ;;  %v783_v43 = vpop.permute.xlu0 %782 }
 0x124   : > { %v1091_v49 = vld [vmem:[#allocation2 + $0x18] sm:$0xff] }
 0x125   : > { %v2593_v50 = vld [vmem:[#allocation2 + $0x12] sm:$0xff]  ;;  %972 = vst.msk [vmem:[#allocation2 + $0x28] sm:$0xff] %vm966_vm1, %v930_v45  ;;  %v644_v52 = vmax.f32 %v465_v46, 0.0  ;;  %7252 = vmatmul.mubr.msk.f32.gmra.mrb[2].mxu1 %vm966_vm1, %v1091_v49 }
 0x126   : > { %7434 = vmatprep.mubr.msk.f32.mxu0 %vm966_vm1, %v2593_v50  ;;  %v469_v54 = vpop.f32.mrb[14].mxu0 }
 0x127   : > { %v931_v55 = vmul.f32 %v753_v53, %v644_v52  ;;  %v470_v56 = vadd.f32 %v8542_v63, %v469_v54  ;;  %v7140_v57 = vpop.f32.mrb[15].mxu0  ;;  %v788_v52 = vpop.permute.xlu1 %787 }
 0x128   : > { %v1092_v59 = vld [vmem:[#allocation2 + $0x20] sm:$0xff] }
 0x129   : > { %v2594_v60 = vld [vmem:[#allocation2 + $0x1a] sm:$0xff]  ;;  %973 = vst.msk [vmem:[#allocation2 + $0x30] sm:$0xff] %vm966_vm1, %v931_v55  ;;  %v645_v61 = vmax.f32 %v470_v56, 0.0  ;;  %7254 = vmatprep.mubr.msk.f32.mxu1 %vm966_vm1, %v1092_v59 }
 0x12a   : > { %7435 = vmatmul.mubr.msk.f32.vlgmr.msra.gmra.mrb[82].mxu0 %vm966_vm1, %v2594_v60  ;;  %v474_v0 = vpop.f32.mrb[16].mxu0  ;;  %v793_v60 = vpop.permute.xlu0 %792 }
 0x12b   : > { %7927 = vmatpush3.bf16.msra.mxu0 %v8536_v62  ;;  %v932_v1 = vmul.f32 %v758_v6, %v645_v61  ;;  %v475_v2 = vadd.f32 %v8542_v63, %v474_v0  ;;  %v7143_v3 = vpop.f32.mrb[17].mxu0  ;;  %v6309_v62 = vld [vmem:[%s9942_s3 + $0x48] sm:$0xff] }
 0x12c   : > { %7929 = vmatprep.subr.bf16.mxu0 %v7928_v58  ;;  %v1093_v4 = vld [vmem:[#allocation2 + $0x28] sm:$0xff]  ;;  %v8589_v11 = vpack.c.bf16 %v6309_v62, %v6308_v8 }
 0x12d   : > { %v2595_v5 = vld [vmem:[#allocation2 + $0x22] sm:$0xff]  ;;  %974 = vst.msk [vmem:[#allocation2 + $0x38] sm:$0xff] %vm966_vm1, %v932_v1  ;;  %v646_v7 = vmax.f32 %v475_v2, 0.0  ;;  %7255 = vmatmul.mubr.msk.f32.gmra.mrb[4].mxu1 %vm966_vm1, %v1093_v4 }
 0x12e   : > { %7437 = vmatprep.mubr.msk.f32.mxu0 %vm966_vm1, %v2595_v5  ;;  %v479_v10 = vpop.f32.mrb[18].mxu0  ;;  %7901 = vmatprep.subr.bf16.mxu1 %v8589_v11  ;;  %v798_v5 = vpop.permute.xlu1 %797 }
 0x12f   : > { %7931 = vmatpush3.bf16.msra.mxu0 %v7928_v58  ;;  %v933_v12 = vmul.f32 %v763_v9, %v646_v7  ;;  %v480_v13 = vadd.f32 %v8542_v63, %v479_v10  ;;  %v7146_v14 = vpop.f32.mrb[19].mxu0  ;;  %v6508_v10 = vld [vmem:[%s9942_s3 + $0xe0] sm:$0xff] }
 0x130   : > { %v1094_v15 = vld [vmem:[#allocation2 + $0x30] sm:$0xff] }
 0x131   : > { %v2596_v16 = vld [vmem:[#allocation2 + $0x2a] sm:$0xff]  ;;  %975 = vst.msk [vmem:[#allocation2 + $0x40] sm:$0xff] %vm966_vm1, %v933_v12  ;;  %v647_v17 = vmax.f32 %v480_v13, 0.0  ;;  %7257 = vmatprep.mubr.msk.f32.mxu1 %vm966_vm1, %v1094_v15 }
 0x132   : > { %7438 = vmatmul.mubr.msk.f32.gmra.mrb[84].mxu0 %vm966_vm1, %v2596_v16  ;;  %v484_v19 = vpop.f32.mrb[20].mxu0  ;;  %v6509_v12 = vld [vmem:[%s9942_s3 + $0xe8] sm:$0xff] }
 0x133   : > { %v934_v20 = vmul.f32 %v768_v18, %v647_v17  ;;  %v485_v21 = vadd.f32 %v8542_v63, %v484_v19  ;;  %v7149_v22 = vpop.f32.mrb[21].mxu0  ;;  %v8627_v15 = vpack.c.bf16 %v6509_v12, %v6508_v10  ;;  %v803_v17 = vpop.permute.xlu0 %802 }
 0x134   : > { %v1095_v23 = vld [vmem:[#allocation2 + $0x38] sm:$0xff] }
 0x135   : > { %v2597_v24 = vld [vmem:[#allocation2 + $0x32] sm:$0xff]  ;;  %976 = vst.msk [vmem:[#allocation2 + $0x48] sm:$0xff] %vm966_vm1, %v934_v20  ;;  %v648_v25 = vmax.f32 %v485_v21, 0.0  ;;  %7258 = vmatmul.mubr.msk.f32.gmra.mrb[6].mxu1 %vm966_vm1, %v1095_v23  ;;  %7941 = vmatprep.subr.bf16.mxu0 %v8627_v15 }
 0x136   : > { %7440 = vmatprep.mubr.msk.f32.mxu0 %vm966_vm1, %v2597_v24  ;;  %v489_v27 = vpop.f32.mrb[22].mxu0 }
 0x137   : > { %v935_v28 = vmul.f32 %v773_v26, %v648_v25  ;;  %v490_v29 = vadd.f32 %v8542_v63, %v489_v27  ;;  %v7152_v30 = vpop.f32.mrb[23].mxu0  ;;  %v808_v25 = vpop.permute.xlu1 %807 }
 0x138   : > { %v1096_v31 = vld [vmem:[#allocation2 + $0x40] sm:$0xff] }
 0x139   : > { %v2598_v32 = vld [vmem:[#allocation2 + $0x3a] sm:$0xff]  ;;  %977 = vst.msk [vmem:[#allocation2 + $0x50] sm:$0xff] %vm966_vm1, %v935_v28  ;;  %v649_v33 = vmax.f32 %v490_v29, 0.0  ;;  %7260 = vmatprep.mubr.msk.f32.mxu1 %vm966_vm1, %v1096_v31 }
 0x13a   : > { %7441 = vmatmul.mubr.msk.f32.gmra.mrb[86].mxu0 %vm966_vm1, %v2598_v32  ;;  %v494_v35 = vpop.f32.mrb[24].mxu0 }
 0x13b   : > { %v936_v36 = vmul.f32 %v778_v34, %v649_v33  ;;  %v495_v37 = vadd.f32 %v8542_v63, %v494_v35  ;;  %v7155_v38 = vpop.f32.mrb[25].mxu0  ;;  %v813_v33 = vpop.permute.xlu0 %812 }
 0x13c   : > { %v1097_v39 = vld [vmem:[#allocation2 + $0x48] sm:$0xff] }
 0x13d   : > { %v2599_v41 = vld [vmem:[#allocation2 + $0x42] sm:$0xff]  ;;  %978 = vst.msk [vmem:[#allocation2 + $0x58] sm:$0xff] %vm966_vm1, %v936_v36  ;;  %v650_v42 = vmax.f32 %v495_v37, 0.0  ;;  %7261 = vmatmul.mubr.msk.f32.gmra.mrb[8].mxu1 %vm966_vm1, %v1097_v39 }
 0x13e   : > { %7443 = vmatprep.mubr.msk.f32.mxu0 %vm966_vm1, %v2599_v41  ;;  %v499_v45 = vpop.f32.mrb[26].mxu0 }
 0x13f   : > { %v937_v46 = vmul.f32 %v783_v43, %v650_v42  ;;  %v500_v47 = vadd.f32 %v8542_v63, %v499_v45  ;;  %v7158_v48 = vpop.f32.mrb[27].mxu0  ;;  %v818_v42 = vpop.permute.xlu1 %817 }
 0x140   : > { %v1098_v49 = vld [vmem:[#allocation2 + $0x50] sm:$0xff] }
 0x141   : > { %v2600_v50 = vld [vmem:[#allocation2 + $0x4a] sm:$0xff]  ;;  %979 = vst.msk [vmem:[#allocation2 + $0x60] sm:$0xff] %vm966_vm1, %v937_v46  ;;  %v651_v51 = vmax.f32 %v500_v47, 0.0  ;;  %7263 = vmatprep.mubr.msk.f32.mxu1 %vm966_vm1, %v1098_v49 }
 0x142   : > { %7444 = vmatmul.mubr.msk.f32.gmra.mrb[88].mxu0 %vm966_vm1, %v2600_v50  ;;  %v504_v53 = vpop.f32.mrb[28].mxu0 }
 0x143   : > { %v938_v54 = vmul.f32 %v788_v52, %v651_v51  ;;  %v505_v55 = vadd.f32 %v8542_v63, %v504_v53  ;;  %v7161_v56 = vpop.f32.mrb[29].mxu0  ;;  %v823_v51 = vpop.permute.xlu0 %822 }
 0x144   : > { %v1099_v57 = vld [vmem:[#allocation2 + $0x58] sm:$0xff] }
 0x145   : > { %v2601_v58 = vld [vmem:[#allocation2 + $0x52] sm:$0xff]  ;;  %980 = vst.msk [vmem:[#allocation2 + $0x68] sm:$0xff] %vm966_vm1, %v938_v54  ;;  %v652_v59 = vmax.f32 %v505_v55, 0.0  ;;  %7264 = vmatmul.mubr.msk.f32.gmra.mrb[10].mxu1 %vm966_vm1, %v1099_v57 }
 0x146   : > { %7446 = vmatprep.mubr.msk.f32.mxu0 %vm966_vm1, %v2601_v58  ;;  %v509_v61 = vpop.f32.mrb[30].mxu0 }
 0x147   : > { %v939_v6 = vmul.f32 %v793_v60, %v652_v59  ;;  %v510_v0 = vadd.f32 %v8542_v63, %v509_v61  ;;  %v7164_v1 = vpop.f32.mrb[31].mxu0  ;;  %v828_v59 = vpop.permute.xlu1 %827 }
 0x148   : > { %v1100_v2 = vld [vmem:[#allocation2 + $0x60] sm:$0xff] }
 0x149   : > { %v2602_v3 = vld [vmem:[#allocation2 + $0x5a] sm:$0xff]  ;;  %981 = vst.msk [vmem:[#allocation2 + $0x70] sm:$0xff] %vm966_vm1, %v939_v6  ;;  %v653_v4 = vmax.f32 %v510_v0, 0.0  ;;  %7266 = vmatprep.mubr.msk.f32.mxu1 %vm966_vm1, %v1100_v2 }
 0x14a   : > { %7447 = vmatmul.mubr.msk.f32.gmra.mrb[90].mxu0 %vm966_vm1, %v2602_v3  ;;  %v514_v7 = vpop.f32.mrb[32].mxu0 }
 0x14b   : > { %v940_v8 = vmul.f32 %v798_v5, %v653_v4  ;;  %v515_v62 = vadd.f32 %v8542_v63, %v514_v7  ;;  %v7167_v9 = vpop.f32.mrb[33].mxu0  ;;  %v833_v4 = vpop.permute.xlu0 %832 }
 0x14c   : > { %v1101_v13 = vld [vmem:[#allocation2 + $0x68] sm:$0xff] }
 0x14d   : > { %v2603_v14 = vld [vmem:[#allocation2 + $0x62] sm:$0xff]  ;;  %982 = vst.msk [vmem:[#allocation2 + $0x78] sm:$0xff] %vm966_vm1, %v940_v8  ;;  %v654_v16 = vmax.f32 %v515_v62, 0.0  ;;  %7267 = vmatmul.mubr.msk.f32.gmra.mrb[12].mxu1 %vm966_vm1, %v1101_v13  ;;  %v838_v13 = vpop.permute.xlu1 %837 }
 0x14e   : > { %7449 = vmatprep.mubr.msk.f32.mxu0 %vm966_vm1, %v2603_v14  ;;  %v519_v18 = vpop.f32.mrb[34].mxu0 }
 0x14f   : > { %v941_v19 = vmul.f32 %v803_v17, %v654_v16  ;;  %v520_v20 = vadd.f32 %v8542_v63, %v519_v18  ;;  %v7170_v21 = vpop.f32.mrb[35].mxu0  ;;  %v6231_v16 = vld [vmem:[%s9945_s6] ss:$0 sm:$0xff] }
 0x150   : > { %v1102_v22 = vld [vmem:[#allocation2 + $0x70] sm:$0xff]  ;;  %1017 = vst.msk [vmem:[#allocation3 + $0x8] sm:$0xff] %vm966_vm1, %v6231_v16  ;;  %1016 = vst.msk [vmem:[#allocation3] sm:$0xff] %vm966_vm1, %v6231_v16 }
 0x151   : > { %v2604_v23 = vld [vmem:[#allocation2 + $0x6a] sm:$0xff]  ;;  %983 = vst.msk [vmem:[#allocation2 + $0x80] sm:$0xff] %vm966_vm1, %v941_v19  ;;  %v655_v24 = vmax.f32 %v520_v20, 0.0  ;;  %7269 = vmatprep.mubr.msk.f32.mxu1 %vm966_vm1, %v1102_v22  ;;  %1018 = vst.msk [vmem:[#allocation3 + $0x10] sm:$0xff] %vm966_vm1, %v6231_v16 }
 0x152   : > { %7450 = vmatmul.mubr.msk.f32.gmra.mrb[92].mxu0 %vm966_vm1, %v2604_v23  ;;  %v524_v26 = vpop.f32.mrb[36].mxu0  ;;  %1019 = vst.msk [vmem:[#allocation3 + $0x18] sm:$0xff] %vm966_vm1, %v6231_v16  ;;  %1020 = vst.msk [vmem:[#allocation3 + $0x20] sm:$0xff] %vm966_vm1, %v6231_v16  ;;  %v843_v23 = vpop.permute.xlu0 %842 }
 0x153   : > { %v942_v27 = vmul.f32 %v808_v25, %v655_v24  ;;  %v525_v28 = vadd.f32 %v8542_v63, %v524_v26  ;;  %v7173_v29 = vpop.f32.mrb[37].mxu0  ;;  %1021 = vst.msk [vmem:[#allocation3 + $0x28] sm:$0xff] %vm966_vm1, %v6231_v16  ;;  %1022 = vst.msk [vmem:[#allocation3 + $0x30] sm:$0xff] %vm966_vm1, %v6231_v16 }
 0x154   : > { %v1103_v30 = vld [vmem:[#allocation2 + $0x78] sm:$0xff]  ;;  %1023 = vst.msk [vmem:[#allocation3 + $0x38] sm:$0xff] %vm966_vm1, %v6231_v16  ;;  %1024 = vst.msk [vmem:[#allocation3 + $0x40] sm:$0xff] %vm966_vm1, %v6231_v16 }
 0x155   : > { %v2605_v31 = vld [vmem:[#allocation2 + $0x72] sm:$0xff]  ;;  %984 = vst.msk [vmem:[#allocation2 + $0x88] sm:$0xff] %vm966_vm1, %v942_v27  ;;  %v656_v32 = vmax.f32 %v525_v28, 0.0  ;;  %7270 = vmatmul.mubr.msk.f32.gmra.mrb[14].mxu1 %vm966_vm1, %v1103_v30  ;;  %1025 = vst.msk [vmem:[#allocation3 + $0x48] sm:$0xff] %vm966_vm1, %v6231_v16 }
 0x156   : > { %7452 = vmatprep.mubr.msk.f32.mxu0 %vm966_vm1, %v2605_v31  ;;  %v529_v34 = vpop.f32.mrb[38].mxu0  ;;  %1026 = vst.msk [vmem:[#allocation3 + $0x50] sm:$0xff] %vm966_vm1, %v6231_v16  ;;  %1027 = vst.msk [vmem:[#allocation3 + $0x58] sm:$0xff] %vm966_vm1, %v6231_v16  ;;  %v848_v31 = vpop.permute.xlu1 %847 }
 0x157   : > { %v943_v35 = vmul.f32 %v813_v33, %v656_v32  ;;  %v530_v36 = vadd.f32 %v8542_v63, %v529_v34  ;;  %v7176_v37 = vpop.f32.mrb[39].mxu0  ;;  %1028 = vst.msk [vmem:[#allocation3 + $0x60] sm:$0xff] %vm966_vm1, %v6231_v16  ;;  %1029 = vst.msk [vmem:[#allocation3 + $0x68] sm:$0xff] %vm966_vm1, %v6231_v16 }
 0x158   : > { %v1104_v38 = vld [vmem:[#allocation2 + $0x80] sm:$0xff]  ;;  %1030 = vst.msk [vmem:[#allocation3 + $0x70] sm:$0xff] %vm966_vm1, %v6231_v16  ;;  %1031 = vst.msk [vmem:[#allocation3 + $0x78] sm:$0xff] %vm966_vm1, %v6231_v16 }
 0x159   : > { %v2606_v39 = vld [vmem:[#allocation2 + $0x7a] sm:$0xff]  ;;  %985 = vst.msk [vmem:[#allocation2 + $0x90] sm:$0xff] %vm966_vm1, %v943_v35  ;;  %v657_v41 = vmax.f32 %v530_v36, 0.0  ;;  %7272 = vmatprep.mubr.msk.f32.mxu1 %vm966_vm1, %v1104_v38  ;;  %1032 = vst.msk [vmem:[#allocation3 + $0x80] sm:$0xff] %vm966_vm1, %v6231_v16 }
 0x15a   : > { %7453 = vmatmul.mubr.msk.f32.gmra.mrb[94].mxu0 %vm966_vm1, %v2606_v39  ;;  %v534_v43 = vpop.f32.mrb[40].mxu0  ;;  %1033 = vst.msk [vmem:[#allocation3 + $0x88] sm:$0xff] %vm966_vm1, %v6231_v16  ;;  %1034 = vst.msk [vmem:[#allocation3 + $0x90] sm:$0xff] %vm966_vm1, %v6231_v16  ;;  %v853_v39 = vpop.permute.xlu0 %852 }
 0x15b   : > { %v944_v45 = vmul.f32 %v818_v42, %v657_v41  ;;  %v535_v46 = vadd.f32 %v8542_v63, %v534_v43  ;;  %v7179_v47 = vpop.f32.mrb[41].mxu0  ;;  %1035 = vst.msk [vmem:[#allocation3 + $0x98] sm:$0xff] %vm966_vm1, %v6231_v16  ;;  %1036 = vst.msk [vmem:[#allocation3 + $0xa0] sm:$0xff] %vm966_vm1, %v6231_v16 }
 0x15c   : > { %v1105_v48 = vld [vmem:[#allocation2 + $0x88] sm:$0xff]  ;;  %1037 = vst.msk [vmem:[#allocation3 + $0xa8] sm:$0xff] %vm966_vm1, %v6231_v16  ;;  %1038 = vst.msk [vmem:[#allocation3 + $0xb0] sm:$0xff] %vm966_vm1, %v6231_v16 }
 0x15d   : > { %v2607_v49 = vld [vmem:[#allocation2 + $0x82] sm:$0xff]  ;;  %986 = vst.msk [vmem:[#allocation2 + $0x98] sm:$0xff] %vm966_vm1, %v944_v45  ;;  %v658_v50 = vmax.f32 %v535_v46, 0.0  ;;  %7273 = vmatmul.mubr.msk.f32.gmra.mrb[16].mxu1 %vm966_vm1, %v1105_v48  ;;  %1039 = vst.msk [vmem:[#allocation3 + $0xb8] sm:$0xff] %vm966_vm1, %v6231_v16 }
 0x15e   : > { %7455 = vmatprep.mubr.msk.f32.mxu0 %vm966_vm1, %v2607_v49  ;;  %v539_v52 = vpop.f32.mrb[42].mxu0  ;;  %1040 = vst.msk [vmem:[#allocation3 + $0xc0] sm:$0xff] %vm966_vm1, %v6231_v16  ;;  %1041 = vst.msk [vmem:[#allocation3 + $0xc8] sm:$0xff] %vm966_vm1, %v6231_v16  ;;  %v858_v49 = vpop.permute.xlu1 %857 }
 0x15f   : > { %v945_v53 = vmul.f32 %v823_v51, %v658_v50  ;;  %v540_v54 = vadd.f32 %v8542_v63, %v539_v52  ;;  %v7182_v55 = vpop.f32.mrb[43].mxu0  ;;  %1042 = vst.msk [vmem:[#allocation3 + $0xd0] sm:$0xff] %vm966_vm1, %v6231_v16  ;;  %1043 = vst.msk [vmem:[#allocation3 + $0xd8] sm:$0xff] %vm966_vm1, %v6231_v16 }
 0x160   : > { %v1106_v56 = vld [vmem:[#allocation2 + $0x90] sm:$0xff]  ;;  %1044 = vst.msk [vmem:[#allocation3 + $0xe0] sm:$0xff] %vm966_vm1, %v6231_v16  ;;  %1045 = vst.msk [vmem:[#allocation3 + $0xe8] sm:$0xff] %vm966_vm1, %v6231_v16 }
 0x161   : > { %v2608_v57 = vld [vmem:[#allocation2 + $0x8a] sm:$0xff]  ;;  %987 = vst.msk [vmem:[#allocation2 + $0xa0] sm:$0xff] %vm966_vm1, %v945_v53  ;;  %v659_v58 = vmax.f32 %v540_v54, 0.0  ;;  %7275 = vmatprep.mubr.msk.f32.mxu1 %vm966_vm1, %v1106_v56  ;;  %1046 = vst.msk [vmem:[#allocation3 + $0xf0] sm:$0xff] %vm966_vm1, %v6231_v16 }
 0x162   : > { %7456 = vmatmul.mubr.msk.f32.gmra.mrb[96].mxu0 %vm966_vm1, %v2608_v57  ;;  %v544_v60 = vpop.f32.mrb[44].mxu0  ;;  %1047 = vst.msk [vmem:[#allocation3 + $0xf8] sm:$0xff] %vm966_vm1, %v6231_v16  ;;  %1048 = vst.msk [vmem:[#allocation3 + $0x100] sm:$0xff] %vm966_vm1, %v6231_v16  ;;  %v863_v57 = vpop.permute.xlu0 %862 }
 0x163   : > { %v946_v61 = vmul.f32 %v828_v59, %v659_v58  ;;  %v545_v6 = vadd.f32 %v8542_v63, %v544_v60  ;;  %v7185_v0 = vpop.f32.mrb[45].mxu0  ;;  %1049 = vst.msk [vmem:[#allocation3 + $0x108] sm:$0xff] %vm966_vm1, %v6231_v16  ;;  %1050 = vst.msk [vmem:[#allocation3 + $0x110] sm:$0xff] %vm966_vm1, %v6231_v16 }
 0x164   : > { %v1107_v1 = vld [vmem:[#allocation2 + $0x98] sm:$0xff]  ;;  %1051 = vst.msk [vmem:[#allocation3 + $0x118] sm:$0xff] %vm966_vm1, %v6231_v16 }
 0x165   : > { %v2609_v2 = vld [vmem:[#allocation2 + $0x92] sm:$0xff]  ;;  %988 = vst.msk [vmem:[#allocation2 + $0xa8] sm:$0xff] %vm966_vm1, %v946_v61  ;;  %v660_v3 = vmax.f32 %v545_v6, 0.0  ;;  %7276 = vmatmul.mubr.msk.f32.gmra.mrb[18].mxu1 %vm966_vm1, %v1107_v1 }
 0x166   : > { %7458 = vmatprep.mubr.msk.f32.mxu0 %vm966_vm1, %v2609_v2  ;;  %v549_v5 = vpop.f32.mrb[46].mxu0  ;;  %v868_v2 = vpop.permute.xlu1 %867 }
 0x167   : > { %v947_v7 = vmul.f32 %v833_v4, %v660_v3  ;;  %v550_v8 = vadd.f32 %v8542_v63, %v549_v5  ;;  %v7188_v62 = vpop.f32.mrb[47].mxu0 }
 0x168   : > { %v1108_v9 = vld [vmem:[#allocation2 + $0xa0] sm:$0xff] }
 0x169   : > { %v2610_v10 = vld [vmem:[#allocation2 + $0x9a] sm:$0xff]  ;;  %989 = vst.msk [vmem:[#allocation2 + $0xb0] sm:$0xff] %vm966_vm1, %v947_v7  ;;  %v661_v12 = vmax.f32 %v550_v8, 0.0  ;;  %7278 = vmatprep.mubr.msk.f32.mxu1 %vm966_vm1, %v1108_v9 }
 0x16a   : > { %7459 = vmatmul.mubr.msk.f32.gmra.mrb[98].mxu0 %vm966_vm1, %v2610_v10  ;;  %v554_v14 = vpop.f32.mrb[48].mxu0  ;;  %v873_v10 = vpop.permute.xlu0 %872 }
 0x16b   : > { %v948_v17 = vmul.f32 %v838_v13, %v661_v12  ;;  %v555_v18 = vadd.f32 %v8542_v63, %v554_v14  ;;  %v7191_v19 = vpop.f32.mrb[49].mxu0 }
 0x16c   : > { %v1109_v20 = vld [vmem:[#allocation2 + $0xa8] sm:$0xff] }
 0x16d   : > { %v2611_v21 = vld [vmem:[#allocation2 + $0xa2] sm:$0xff]  ;;  %990 = vst.msk [vmem:[#allocation2 + $0xb8] sm:$0xff] %vm966_vm1, %v948_v17  ;;  %v662_v22 = vmax.f32 %v555_v18, 0.0  ;;  %7279 = vmatmul.mubr.msk.f32.gmra.mrb[20].mxu1 %vm966_vm1, %v1109_v20  ;;  %v6510_v17 = vld [vmem:[%s9942_s3 + $0xf0] sm:$0xff]  ;;  %v6511_v20 = vld [vmem:[%s9942_s3 + $0xf8] sm:$0xff] }
 0x16e   : > { %7461 = vmatprep.mubr.msk.f32.mxu0 %vm966_vm1, %v2611_v21  ;;  %v559_v24 = vpop.f32.mrb[50].mxu0 }
 0x16f   : > { %v949_v25 = vmul.f32 %v843_v23, %v662_v22  ;;  %v560_v26 = vadd.f32 %v8542_v63, %v559_v24  ;;  %v7194_v27 = vpop.f32.mrb[51].mxu0  ;;  %v3597_v22 = vld [vmem:[#allocation2 + $0x14] sm:$0xff]  ;;  %v878_v23 = vpop.permute.xlu1 %877 }
 0x170   : > { %v1110_v28 = vld [vmem:[#allocation2 + $0xb0] sm:$0xff] }
 0x171   : > { %v2612_v29 = vld [vmem:[#allocation2 + $0xaa] sm:$0xff]  ;;  %991 = vst.msk [vmem:[#allocation2 + $0xc0] sm:$0xff] %vm966_vm1, %v949_v25  ;;  %v663_v30 = vmax.f32 %v560_v26, 0.0  ;;  %7281 = vmatprep.mubr.msk.f32.mxu1 %vm966_vm1, %v1110_v28  ;;  %v7944_v28 = vpack.c.bf16 %v6511_v20, %v6510_v17 }
 0x172   : > { %7462 = vmatmul.mubr.msk.f32.gmra.mrb[100].mxu0 %vm966_vm1, %v2612_v29  ;;  %v564_v32 = vpop.f32.mrb[52].mxu0  ;;  %v3608_v20 = vld [vmem:[#allocation2 + $0x6c] sm:$0xff] }
 0x173   : > { %v950_v33 = vmul.f32 %v848_v31, %v663_v30  ;;  %v565_v34 = vadd.f32 %v8542_v63, %v564_v32  ;;  %v7197_v35 = vpop.f32.mrb[53].mxu0  ;;  %v3598_v30 = vld [vmem:[#allocation2 + $0x1c] sm:$0xff]  ;;  %v3599_v32 = vld [vmem:[#allocation2 + $0x24] sm:$0xff] }
 0x174   : > { %v1111_v36 = vld [vmem:[#allocation2 + $0xb8] sm:$0xff] }
 0x175   : > { %v2613_v37 = vld [vmem:[#allocation2 + $0xb2] sm:$0xff]  ;;  %992 = vst.msk [vmem:[#allocation2 + $0xc8] sm:$0xff] %vm966_vm1, %v950_v33  ;;  %v664_v38 = vmax.f32 %v565_v34, 0.0  ;;  %7282 = vmatmul.mubr.msk.f32.gmra.mrb[22].mxu1 %vm966_vm1, %v1111_v36  ;;  %v883_v33 = vpop.permute.xlu0 %882 }
 0x176   : > { %7464 = vmatprep.mubr.msk.f32.mxu0 %vm966_vm1, %v2613_v37  ;;  %v569_v41 = vpop.f32.mrb[54].mxu0 }
 0x177   : > { %v951_v42 = vmul.f32 %v853_v39, %v664_v38  ;;  %v570_v43 = vadd.f32 %v8542_v63, %v569_v41  ;;  %v7200_v45 = vpop.f32.mrb[55].mxu0  ;;  %v3600_v39 = vld [vmem:[#allocation2 + $0x2c] sm:$0xff] }
 0x178   : > { %v1112_v46 = vld [vmem:[#allocation2 + $0xc0] sm:$0xff] }
 0x179   : > { %v8713_v47 = vld [vmem:[#allocation2 + $0xba] sm:$0xff]  ;;  %993 = vst.msk [vmem:[#allocation2 + $0xd0] sm:$0xff] %vm966_vm1, %v951_v42  ;;  %v665_v48 = vmax.f32 %v570_v43, 0.0  ;;  %7284 = vmatprep.mubr.msk.f32.mxu1 %vm966_vm1, %v1112_v46  ;;  %v888_v43 = vpop.permute.xlu1 %887 }
 0x17a   : > { %7465 = vmatmul.mubr.msk.f32.gmra.mrb[102].mxu0 %vm966_vm1, %v8713_v47  ;;  %v574_v50 = vpop.f32.mrb[56].mxu0  ;;  %v3601_v42 = vld [vmem:[#allocation2 + $0x34] sm:$0xff] }
 0x17b   : > { %v952_v51 = vmul.f32 %v858_v49, %v665_v48  ;;  %v575_v52 = vadd.f32 %v8542_v63, %v574_v50  ;;  %v7203_v53 = vpop.f32.mrb[57].mxu0  ;;  %v3602_v50 = vld [vmem:[#allocation2 + $0x3c] sm:$0xff] }
 0x17c   : > { %v1113_v54 = vld [vmem:[#allocation2 + $0xc8] sm:$0xff]  ;;  %v893_v53 = vpop.permute.xlu0 %892 }
 0x17d   : > { %v8720_v55 = vld [vmem:[#allocation2 + $0xc2] sm:$0xff]  ;;  %994 = vst.msk [vmem:[#allocation2 + $0xd8] sm:$0xff] %vm966_vm1, %v952_v51  ;;  %v666_v56 = vmax.f32 %v575_v52, 0.0  ;;  %7285 = vmatmul.mubr.msk.f32.gmra.mrb[24].mxu1 %vm966_vm1, %v1113_v54 }
 0x17e   : > { %7467 = vmatprep.mubr.msk.f32.mxu0 %vm966_vm1, %v8720_v55  ;;  %v579_v58 = vpop.f32.mrb[58].mxu0  ;;  %v3603_v52 = vld [vmem:[#allocation2 + $0x44] sm:$0xff] }
 0x17f   : > { %v953_v59 = vmul.f32 %v863_v57, %v666_v56  ;;  %v580_v60 = vadd.f32 %v8542_v63, %v579_v58  ;;  %v7206_v61 = vpop.f32.mrb[59].mxu0 }
 0x180   : > { %v1114_v6 = vld [vmem:[#allocation2 + $0xd0] sm:$0xff] }
 0x181   : > { %v8727_v0 = vld [vmem:[#allocation2 + $0xca] sm:$0xff]  ;;  %995 = vst.msk [vmem:[#allocation2 + $0xe0] sm:$0xff] %vm966_vm1, %v953_v59  ;;  %v667_v1 = vmax.f32 %v580_v60, 0.0  ;;  %7287 = vmatprep.mubr.msk.f32.mxu1 %vm966_vm1, %v1114_v6  ;;  %v3605_v6 = vld [vmem:[#allocation2 + $0x54] sm:$0xff] }
 0x182   : > { %7468 = vmatmul.mubr.msk.f32.gmra.mrb[104].mxu0 %vm966_vm1, %v8727_v0  ;;  %v584_v3 = vpop.f32.mrb[60].mxu0  ;;  %v3604_v60 = vld [vmem:[#allocation2 + $0x4c] sm:$0xff] }
 0x183   : > { %v954_v4 = vmul.f32 %v868_v2, %v667_v1  ;;  %v585_v5 = vadd.f32 %v8542_v63, %v584_v3  ;;  %v7209_v7 = vpop.f32.mrb[61].mxu0  ;;  %v898_v1 = vpop.permute.xlu1 %897 }
 0x184   : > { %v1115_v8 = vld [vmem:[#allocation2 + $0xd8] sm:$0xff] }
 0x185   : > { %v8734_v62 = vld [vmem:[#allocation2 + $0xd2] sm:$0xff]  ;;  %996 = vst.msk [vmem:[#allocation2 + $0xe8] sm:$0xff] %vm966_vm1, %v954_v4  ;;  %v668_v9 = vmax.f32 %v585_v5, 0.0  ;;  %7288 = vmatmul.mubr.msk.f32.gmra.mrb[26].mxu1 %vm966_vm1, %v1115_v8  ;;  %v3606_v8 = vld [vmem:[#allocation2 + $0x5c] sm:$0xff] }
 0x186   : > { %7470 = vmatprep.mubr.msk.f32.mxu0 %vm966_vm1, %v8734_v62  ;;  %v589_v12 = vpop.f32.mrb[62].mxu0 }
 0x187   : > { %v955_v13 = vmul.f32 %v873_v10, %v668_v9  ;;  %v590_v14 = vadd.f32 %v8542_v63, %v589_v12  ;;  %v7212_v16 = vpop.f32.mrb[63].mxu0  ;;  %v3607_v10 = vld [vmem:[#allocation2 + $0x64] sm:$0xff]  ;;  %v903_v12 = vpop.permute.xlu0 %902 }
 0x188   : > { %v1116_v18 = vld [vmem:[#allocation2 + $0xe0] sm:$0xff] }
 0x189   : > { %v8744_v19 = vld [vmem:[#allocation2 + $0xda] sm:$0xff]  ;;  %997 = vst.msk [vmem:[#allocation2 + $0xf0] sm:$0xff] %vm966_vm1, %v955_v13  ;;  %v669_v21 = vmax.f32 %v590_v14, 0.0  ;;  %7290 = vmatprep.mubr.msk.f32.mxu1 %vm966_vm1, %v1116_v18 }
 0x18a   : > { %7471 = vmatmul.mubr.msk.f32.gmra.mrb[106].mxu0 %vm966_vm1, %v8744_v19  ;;  %v594_v24 = vpop.f32.mrb[64].mxu0 }
 0x18b   : > { %7558 = vmatprep.mubr.msk.f32.mxu0 %vm966_vm1, %v3597_v22  ;;  %v956_v25 = vmul.f32 %v878_v23, %v669_v21  ;;  %v595_v26 = vadd.f32 %v8542_v63, %v594_v24  ;;  %v7215_v27 = vpop.f32.mrb[65].mxu0  ;;  %v3609_v22 = vld [vmem:[#allocation2 + $0x74] sm:$0xff]  ;;  %v908_v23 = vpop.permute.xlu1 %907 }
 0x18c   : > { %v1117_v29 = vld [vmem:[#allocation2 + $0xe8] sm:$0xff] }
 0x18d   : > { %998 = vst.msk [vmem:[#allocation2 + $0xf8] sm:$0xff] %vm966_vm1, %v956_v25  ;;  %v670_v31 = vmax.f32 %v595_v26, 0.0  ;;  %7291 = vmatmul.mubr.msk.f32.gmra.mrb[28].mxu1 %vm966_vm1, %v1117_v29 }
 0x18e   : > { %7559 = vmatmul.mubr.msk.f32.vlgmr.msra.gmra.mrb[108].mxu0 %vm966_vm1, %v3598_v30  ;;  %v599_v34 = vpop.f32.mrb[66].mxu0  ;;  %v3610_v30 = vld [vmem:[#allocation2 + $0x7c] sm:$0xff] }
 0x18f   : > { %7561 = vmatprep.mubr.msk.f32.mxu0 %vm966_vm1, %v3599_v32  ;;  %7943 = vmatpush3.bf16.msra.mxu0 %v8627_v15  ;;  %v957_v35 = vmul.f32 %v883_v33, %v670_v31  ;;  %v600_v36 = vadd.f32 %v8542_v63, %v599_v34  ;;  %v7218_v37 = vpop.f32.mrb[67].mxu0  ;;  %v6311_v31 = vld [vmem:[%s9942_s3 + $0x58] sm:$0xff]  ;;  %v1589_v33 = vld [vmem:[#allocation2 + $0x1] sm:$0xff] }
 0x190   : > { %7945 = vmatprep.subr.bf16.mxu0 %v7944_v28  ;;  %v1118_v38 = vld [vmem:[#allocation2 + $0xf0] sm:$0xff]  ;;  %v3611_v34 = vld [vmem:[#allocation2 + $0x84] sm:$0xff] }
 0x191   : > { %999 = vst.msk [vmem:[#allocation2 + $0x100] sm:$0xff] %vm966_vm1, %v957_v35  ;;  %v671_v41 = vmax.f32 %v600_v36, 0.0  ;;  %7293 = vmatprep.mubr.msk.f32.mxu1 %vm966_vm1, %v1118_v38  ;;  %v913_v35 = vpop.permute.xlu0 %912 }
 0x192   : > { %7562 = vmatmul.mubr.msk.f32.gmra.mrb[110].mxu0 %vm966_vm1, %v3600_v39  ;;  %v604_v45 = vpop.f32.mrb[68].mxu0 }
 0x193   : > { %7564 = vmatprep.mubr.msk.f32.mxu0 %vm966_vm1, %v3601_v42  ;;  %7947 = vmatpush3.bf16.msra.mxu0 %v7944_v28  ;;  %v958_v15 = vmul.f32 %v888_v43, %v671_v41  ;;  %v605_v46 = vadd.f32 %v8542_v63, %v604_v45  ;;  %v7221_v48 = vpop.f32.mrb[69].mxu0  ;;  %v6310_v28 = vld [vmem:[%s9942_s3 + $0x50] sm:$0xff] }
 0x194   : > { %v1119_v49 = vld [vmem:[#allocation2 + $0xf8] sm:$0xff]  ;;  %v7904_v41 = vpack.c.bf16 %v6311_v31, %v6310_v28  ;;  %v1590_v42 = vld [vmem:[#allocation2 + $0x9] sm:$0xff] }
 0x195   : > { %1000 = vst.msk [vmem:[#allocation2 + $0x108] sm:$0xff] %vm966_vm1, %v958_v15  ;;  %v672_v51 = vmax.f32 %v605_v46, 0.0  ;;  %7294 = vmatmul.mubr.msk.f32.gmra.mrb[30].mxu1 %vm966_vm1, %v1119_v49  ;;  %v3612_v43 = vld [vmem:[#allocation2 + $0x8c] sm:$0xff]  ;;  %v918_v46 = vpop.permute.xlu1 %917  ;;  %v3613_v49 = vld [vmem:[#allocation2 + $0x94] sm:$0xff] }
 0x196   : > { %7565 = vmatmul.mubr.msk.f32.gmra.mrb[112].mxu0 %vm966_vm1, %v3602_v50  ;;  %v609_v54 = vpop.f32.mrb[70].mxu0  ;;  %v1591_v15 = vld [vmem:[#allocation2 + $0x11] sm:$0xff]  ;;  %v8018_v50 = vld [vmem:[%s9944_s5] ss:$0 sm:$0xff] }
 0x197   : > { %7567 = vmatprep.mubr.msk.f32.mxu0 %vm966_vm1, %v3603_v52  ;;  %v959_v56 = vmul.f32 %v893_v53, %v672_v51  ;;  %v610_v57 = vadd.f32 %v8542_v63, %v609_v54  ;;  %v7224_v58 = vpop.f32.mrb[71].mxu0  ;;  %v1592_v53 = vld [vmem:[#allocation2 + $0x19] sm:$0xff]  ;;  %v1607_v28 = vld [vmem:[#allocation2 + $0x91] sm:$0xff] }
 0x198   : > { %v1120_v59 = vld [vmem:[#allocation2 + $0x100] sm:$0xff]  ;;  %v923_v58 = vpop.permute.xlu0 %922 }
 0x199   : > { %1001 = vst.msk [vmem:[#allocation2 + $0x110] sm:$0xff] %vm966_vm1, %v959_v56  ;;  %v673_v61 = vmax.f32 %v610_v57, 0.0  ;;  %7296 = vmatprep.mubr.msk.f32.mxu1 %vm966_vm1, %v1120_v59  ;;  %v3614_v54 = vld [vmem:[#allocation2 + $0x9c] sm:$0xff]  ;;  %v3615_v57 = vld [vmem:[#allocation2 + $0xa4] sm:$0xff] }
 0x19a   : > { %7568 = vmatmul.mubr.msk.f32.gmra.mrb[114].mxu0 %vm966_vm1, %v3604_v60  ;;  %v614_v2 = vpop.f32.mrb[72].mxu0  ;;  %v1594_v60 = vld [vmem:[#allocation2 + $0x29] sm:$0xff] }
 0x19b   : > { %7570 = vmatprep.mubr.msk.f32.mxu0 %vm966_vm1, %v3605_v6  ;;  %v960_v3 = vmul.f32 %v898_v1, %v673_v61  ;;  %v615_v4 = vadd.f32 %v8542_v63, %v614_v2  ;;  %v7227_v5 = vpop.f32.mrb[73].mxu0  ;;  %v3616_v61 = vld [vmem:[#allocation2 + $0xac] sm:$0xff]  ;;  %v3617_v1 = vld [vmem:[#allocation2 + $0xb4] sm:$0xff] }
 0x19c   : > { %v1121_v7 = vld [vmem:[#allocation2 + $0x108] sm:$0xff]  ;;  %v1595_v6 = vld [vmem:[#allocation2 + $0x31] sm:$0xff]  ;;  %v1596_v2 = vld [vmem:[#allocation2 + $0x39] sm:$0xff] }
 0x19d   : > { %1002 = vst.msk [vmem:[#allocation2 + $0x118] sm:$0xff] %vm966_vm1, %v960_v3  ;;  %v674_v9 = vmax.f32 %v615_v4, 0.0  ;;  %7297 = vmatmul.mubr.msk.f32.gmra.mrb[32].mxu1 %vm966_vm1, %v1121_v7  ;;  %v3618_v3 = vld [vmem:[#allocation2 + $0xbc] sm:$0xff]  ;;  %v3619_v5 = vld [vmem:[#allocation2 + $0xc4] sm:$0xff] }
 0x19e   : > { %7571 = vmatmul.mubr.msk.f32.gmra.mrb[116].mxu0 %vm966_vm1, %v3606_v8  ;;  %v619_v13 = vpop.f32.mrb[74].mxu0  ;;  %v1597_v4 = vld [vmem:[#allocation2 + $0x41] sm:$0xff]  ;;  %v1598_v7 = vld [vmem:[#allocation2 + $0x49] sm:$0xff] }
 0x19f   : > { %7573 = vmatprep.mubr.msk.f32.mxu0 %vm966_vm1, %v3607_v10  ;;  %v961_v14 = vmul.f32 %v903_v12, %v674_v9  ;;  %v620_v16 = vadd.f32 %v8542_v63, %v619_v13  ;;  %v7230_v17 = vpop.f32.mrb[75].mxu0  ;;  %v3620_v8 = vld [vmem:[#allocation2 + $0xcc] sm:$0xff]  ;;  %v3621_v10 = vld [vmem:[#allocation2 + $0xd4] sm:$0xff]  ;;  %v3622_v13 = vld [vmem:[#allocation2 + $0xdc] sm:$0xff] }
 0x1a0   : > { %v1122_v18 = vld [vmem:[#allocation2 + $0x110] sm:$0xff]  ;;  %v1600_v12 = vld [vmem:[#allocation2 + $0x59] sm:$0xff] }
 0x1a1   : > { %1003 = vst.msk [vmem:[#allocation2 + $0x120] sm:$0xff] %vm966_vm1, %v961_v14  ;;  %v675_v21 = vmax.f32 %v620_v16, 0.0  ;;  %7299 = vmatprep.mubr.msk.f32.mxu1 %vm966_vm1, %v1122_v18  ;;  %v1599_v9 = vld [vmem:[#allocation2 + $0x51] sm:$0xff]  ;;  %v1601_v14 = vld [vmem:[#allocation2 + $0x61] sm:$0xff]  ;;  %v1602_v17 = vld [vmem:[#allocation2 + $0x69] sm:$0xff] }
 0x1a2   : > { %7574 = vmatmul.mubr.msk.f32.gmra.mrb[118].mxu0 %vm966_vm1, %v3608_v20  ;;  %v624_v24 = vpop.f32.mrb[76].mxu0  ;;  %v3623_v16 = vld [vmem:[#allocation2 + $0xe4] sm:$0xff]  ;;  %v3624_v18 = vld [vmem:[#allocation2 + $0xec] sm:$0xff] }
 0x1a3   : > { %7576 = vmatprep.mubr.msk.f32.mxu0 %vm966_vm1, %v3609_v22  ;;  %v962_v25 = vmul.f32 %v908_v23, %v675_v21  ;;  %v625_v26 = vadd.f32 %v8542_v63, %v624_v24  ;;  %v7233_v27 = vpop.f32.mrb[77].mxu0  ;;  %v1603_v20 = vld [vmem:[#allocation2 + $0x71] sm:$0xff]  ;;  %v1604_v22 = vld [vmem:[#allocation2 + $0x79] sm:$0xff]  ;;  %v1605_v24 = vld [vmem:[#allocation2 + $0x81] sm:$0xff] }
 0x1a4   : > { %v1123_v29 = vld [vmem:[#allocation2 + $0x118] sm:$0xff]  ;;  %v3628_v27 = vld [vmem:[#allocation2 + $0x10c] sm:$0xff] }
 0x1a5   : > { %1004 = vst.msk [vmem:[#allocation2 + $0x128] sm:$0xff] %vm966_vm1, %v962_v25  ;;  %v676_v32 = vmax.f32 %v625_v26, 0.0  ;;  %7300 = vmatmul.mubr.msk.f32.gmra.mrb[34].mxu1 %vm966_vm1, %v1123_v29  ;;  %v3625_v21 = vld [vmem:[#allocation2 + $0xf4] sm:$0xff]  ;;  %v3626_v23 = vld [vmem:[#allocation2 + $0xfc] sm:$0xff]  ;;  %v3627_v25 = vld [vmem:[#allocation2 + $0x104] sm:$0xff] }
 0x1a6   : > { %7577 = vmatmul.mubr.msk.f32.gmra.mrb[120].mxu0 %vm966_vm1, %v3610_v30  ;;  %v629_v36 = vpop.f32.mrb[78].mxu0  ;;  %7310 = vmatprep.mubr.msk.f32.mxu1 %vm966_vm1, %v1589_v33  ;;  %v1606_v26 = vld [vmem:[#allocation2 + $0x89] sm:$0xff]  ;;  %v3629_v29 = vld [vmem:[#allocation2 + $0x114] sm:$0xff] }
 0x1a7   : > { %7579 = vmatprep.mubr.msk.f32.mxu0 %vm966_vm1, %v3611_v34  ;;  %v963_v37 = vmul.f32 %v913_v35, %v676_v32  ;;  %v630_v38 = vadd.f32 %v8542_v63, %v629_v36  ;;  %v7236_v39 = vpop.f32.mrb[79].mxu0  ;;  %v1608_v30 = vld [vmem:[#allocation2 + $0x99] sm:$0xff]  ;;  %v1609_v32 = vld [vmem:[#allocation2 + $0xa1] sm:$0xff]  ;;  %v1610_v34 = vld [vmem:[#allocation2 + $0xa9] sm:$0xff] }
 0x1a8   : > { %v3630_v31 = vld [vmem:[#allocation2 + $0x11c] sm:$0xff]  ;;  %v1611_v36 = vld [vmem:[#allocation2 + $0xb1] sm:$0xff] }
 0x1a9   : > { %1005 = vst.msk [vmem:[#allocation2 + $0x130] sm:$0xff] %vm966_vm1, %v963_v37  ;;  %v677_v45 = vmax.f32 %v630_v38, 0.0  ;;  %7311 = vmatmul.mubr.msk.f32.vlgmr.msra.gmra.mrb[36].mxu1 %vm966_vm1, %v1590_v42  ;;  %v4601_v37 = vld [vmem:[#allocation2 + $0x25] sm:$0xff]  ;;  %v1612_v38 = vld [vmem:[#allocation2 + $0xb9] sm:$0xff]  ;;  %v4602_v39 = vld [vmem:[#allocation2 + $0x2d] sm:$0xff] }
 0x1aa   : > { %7580 = vmatmul.mubr.msk.f32.gmra.mrb[122].mxu0 %vm966_vm1, %v3612_v43  ;;  %7903 = vmatpush3.bf16.msra.mxu1 %v8589_v11  ;;  %v634_v48 = vpop.f32.mrb[80].mxu0  ;;  %v1593_v11 = vld [vmem:[#allocation2 + $0x21] sm:$0xff]  ;;  %v4603_v42 = vld [vmem:[#allocation2 + $0x35] sm:$0xff]  ;;  %v1614_v43 = vld [vmem:[#allocation2 + $0xc9] sm:$0xff] }
 0x1ab   : > { %7313 = vmatprep.mubr.msk.f32.mxu1 %vm966_vm1, %v1591_v15  ;;  %v964_v63 = vmul.f32 %v918_v46, %v677_v45  ;;  %v635_v51 = vadd.f32 %v8018_v50, %v634_v48  ;;  %7582 = vmatprep.mubr.msk.f32.mxu0 %vm966_vm1, %v3613_v49  ;;  %v7239_v52 = vpop.f32.mrb[81].mxu0  ;;  %v4604_v45 = vld [vmem:[#allocation2 + $0x3d] sm:$0xff]  ;;  %v1615_v15 = vld [vmem:[#allocation2 + $0xd1] sm:$0xff]  ;;  %v4605_v46 = vld [vmem:[#allocation2 + $0x45] sm:$0xff] }
 0x1ac   : > { %7905 = vmatprep.subr.bf16.mxu1 %v7904_v41  ;;  %v3631_v33 = vld [vmem:[#allocation2 + $0x124] sm:$0xff]  ;;  %v1616_v48 = vld [vmem:[#allocation2 + $0xd9] sm:$0xff]  ;;  %v4606_v49 = vld [vmem:[#allocation2 + $0x4d] sm:$0xff] }
 0x1ad   : > { %1006 = vst.msk [vmem:[#allocation2 + $0x138] sm:$0xff] %vm966_vm1, %v964_v63  ;;  %v678_v56 = vmax.f32 %v635_v51, 0.0  ;;  %7314 = vmatmul.mubr.msk.f32.gmra.mrb[38].mxu1 %vm966_vm1, %v1592_v53  ;;  %v1617_v63 = vld [vmem:[#allocation2 + $0xe1] sm:$0xff]  ;;  %v4607_v50 = vld [vmem:[#allocation2 + $0x55] sm:$0xff]  ;;  %v1618_v51 = vld [vmem:[#allocation2 + $0xe9] sm:$0xff] }
 0x1ae   : > { %7583 = vmatmul.mubr.msk.f32.gmra.mrb[124].mxu0 %vm966_vm1, %v3614_v54  ;;  %7316 = vmatprep.mubr.msk.f32.mxu1 %vm966_vm1, %v1593_v11  ;;  %v4608_v52 = vld [vmem:[#allocation2 + $0x5d] sm:$0xff]  ;;  %v1619_v53 = vld [vmem:[#allocation2 + $0xf1] sm:$0xff]  ;;  %v4609_v54 = vld [vmem:[#allocation2 + $0x65] sm:$0xff] }
 0x1af   : > { %7585 = vmatprep.mubr.msk.f32.mxu0 %vm966_vm1, %v3615_v57  ;;  %v965_v59 = vmul.f32 %v923_v58, %v678_v56  ;;  %7907 = vmatpush3.bf16.msra.mxu1 %v7904_v41  ;;  %v1613_v41 = vld [vmem:[#allocation2 + $0xc1] sm:$0xff]  ;;  %v1620_v56 = vld [vmem:[#allocation2 + $0xf9] sm:$0xff]  ;;  %v4610_v11 = vld [vmem:[#allocation2 + $0x6d] sm:$0xff] }
 0x1b0   : > { %7964 = vmatprep.subr.bf16.mxu1 %v8468_v40  ;;  %v3632_v35 = vld [vmem:[#allocation2 + $0x12c] sm:$0xff]  ;;  %v1621_v57 = vld [vmem:[#allocation2 + $0x101] sm:$0xff]  ;;  %v4611_v58 = vld [vmem:[#allocation2 + $0x75] sm:$0xff] }
 0x1b1   : > { %1008 = vst.msk [vmem:[#allocation2 + $0x140] sm:$0x3f] %vm1007_vm2, %v965_v59  ;;  %7317 = vmatmul.mubr.msk.f32.gmra.mrb[40].mxu1 %vm966_vm1, %v1594_v60  ;;  %v1622_v59 = vld [vmem:[#allocation2 + $0x109] sm:$0xff]  ;;  %v4612_v60 = vld [vmem:[#allocation2 + $0x7d] sm:$0xff] }
 0x1b2   : > { %7586 = vmatmul.mubr.msk.f32.gmra.mrb[126].mxu0 %vm966_vm1, %v3616_v61  ;;  %7319 = vmatprep.mubr.msk.f32.mxu1 %vm966_vm1, %v1595_v6  ;;  %v1623_v61 = vld [vmem:[#allocation2 + $0x111] sm:$0xff]  ;;  %v4613_v6 = vld [vmem:[#allocation2 + $0x85] sm:$0xff] }
 0x1b3   : > { %7588 = vmatprep.mubr.msk.f32.mxu0 %vm966_vm1, %v3617_v1  ;;  %v1624_v1 = vld [vmem:[#allocation2 + $0x119] sm:$0xff] }
 0x1b5   : > { %7320 = vmatmul.mubr.msk.f32.gmra.mrb[42].mxu1 %vm966_vm1, %v1596_v2  ;;  %v4614_v2 = vld [vmem:[#allocation2 + $0x8d] sm:$0xff] }
 0x1b6   : > { %7589 = vmatmul.mubr.msk.f32.gmra.mrb[128].mxu0 %vm966_vm1, %v3618_v3  ;;  %7322 = vmatprep.mubr.msk.f32.mxu1 %vm966_vm1, %v1597_v4  ;;  %v2091_v3 = vld [vmem:[#allocation2 + $0x2] sm:$0xff]  ;;  %v4615_v4 = vld [vmem:[#allocation2 + $0x95] sm:$0xff] }
 0x1b7   : > { %7591 = vmatprep.mubr.msk.f32.mxu0 %vm966_vm1, %v3619_v5  ;;  %v1053_v5 = vld [vmem:[#allocation3 + $0x8] sm:$0xff] }
 0x1b9   : > { %7323 = vmatmul.mubr.msk.f32.gmra.mrb[44].mxu1 %vm966_vm1, %v1598_v7  ;;  %v1052_v7 = vld [vmem:[#allocation3] sm:$0xff] }
 0x1ba   : > { %7592 = vmatmul.mubr.msk.f32.gmra.mrb[130].mxu0 %vm966_vm1, %v3620_v8  ;;  %7325 = vmatprep.mubr.msk.f32.mxu1 %vm966_vm1, %v1599_v9  ;;  %v2092_v9 = vld [vmem:[#allocation2 + $0xa] sm:$0xff] }
 0x1bb   : > { %7594 = vmatprep.mubr.msk.f32.mxu0 %vm966_vm1, %v3621_v10  ;;  %v4616_v10 = vld [vmem:[#allocation2 + $0x9d] sm:$0xff] }
 0x1bd   : > { %7326 = vmatmul.mubr.msk.f32.gmra.mrb[46].mxu1 %vm966_vm1, %v1600_v12 }
 0x1be   : > { %7595 = vmatmul.mubr.msk.f32.gmra.mrb[132].mxu0 %vm966_vm1, %v3622_v13  ;;  %7328 = vmatprep.mubr.msk.f32.mxu1 %vm966_vm1, %v1601_v14  ;;  %v2093_v14 = vld [vmem:[#allocation2 + $0x12] sm:$0xff] }
 0x1bf   : > { %7597 = vmatprep.mubr.msk.f32.mxu0 %vm966_vm1, %v3623_v16  ;;  %v6388_v16 = vld [vmem:[%s9942_s3 + $0x80] sm:$0xff] }
 0x1c1   : > { %7329 = vmatmul.mubr.msk.f32.gmra.mrb[48].mxu1 %vm966_vm1, %v1602_v17  ;;  %v6389_v17 = vld [vmem:[%s9942_s3 + $0x88] sm:$0xff] }
 0x1c2   : > { %7598 = vmatmul.mubr.msk.f32.gmra.mrb[134].mxu0 %vm966_vm1, %v3624_v18  ;;  %7331 = vmatprep.mubr.msk.f32.mxu1 %vm966_vm1, %v1603_v20  ;;  %v4617_v20 = vld [vmem:[#allocation2 + $0xa5] sm:$0xff] }
 0x1c3   : > { %7600 = vmatprep.mubr.msk.f32.mxu0 %vm966_vm1, %v3625_v21  ;;  %v2094_v21 = vld [vmem:[#allocation2 + $0x1a] sm:$0xff] }
 0x1c5   : > { %7332 = vmatmul.mubr.msk.f32.gmra.mrb[50].mxu1 %vm966_vm1, %v1604_v22  ;;  %v4618_v22 = vld [vmem:[#allocation2 + $0xad] sm:$0xff] }
 0x1c6   : > { %7601 = vmatmul.mubr.msk.f32.gmra.mrb[136].mxu0 %vm966_vm1, %v3626_v23  ;;  %7334 = vmatprep.mubr.msk.f32.mxu1 %vm966_vm1, %v1605_v24  ;;  %v8891_v23 = vpack.c.bf16 %v6389_v17, %v6388_v16  ;;  %v4619_v24 = vld [vmem:[#allocation2 + $0xb5] sm:$0xff]  ;;  %v2108_v17 = vld [vmem:[#allocation2 + $0x8a] sm:$0xff] }
 0x1c7   : > { %7603 = vmatprep.mubr.msk.f32.mxu0 %vm966_vm1, %v3627_v25  ;;  %v1055_v25 = vld [vmem:[#allocation3 + $0x18] sm:$0xff] }
 0x1c9   : > { %7335 = vmatmul.mubr.msk.f32.gmra.mrb[52].mxu1 %vm966_vm1, %v1606_v26  ;;  %v1054_v26 = vld [vmem:[#allocation3 + $0x10] sm:$0xff] }
 0x1ca   : > { %7604 = vmatmul.mubr.msk.f32.gmra.mrb[138].mxu0 %vm966_vm1, %v3628_v27  ;;  %7337 = vmatprep.mubr.msk.f32.mxu1 %vm966_vm1, %v1607_v28  ;;  %v2096_v28 = vld [vmem:[#allocation2 + $0x2a] sm:$0xff] }
 0x1cb   : > { %7606 = vmatprep.mubr.msk.f32.mxu0 %vm966_vm1, %v3629_v29  ;;  %v4620_v29 = vld [vmem:[#allocation2 + $0xbd] sm:$0xff] }
 0x1cd   : > { %7338 = vmatmul.mubr.msk.f32.gmra.mrb[54].mxu1 %vm966_vm1, %v1608_v30 }
 0x1ce   : > { %7607 = vmatmul.mubr.msk.f32.gmra.mrb[140].mxu0 %vm966_vm1, %v3630_v31  ;;  %7340 = vmatprep.mubr.msk.f32.mxu1 %vm966_vm1, %v1609_v32  ;;  %v2097_v32 = vld [vmem:[#allocation2 + $0x32] sm:$0xff] }
 0x1cf   : > { %7609 = vmatprep.mubr.msk.f32.mxu0 %vm966_vm1, %v3631_v33  ;;  %v4621_v33 = vld [vmem:[#allocation2 + $0xc5] sm:$0xff] }
 0x1d1   : > { %7341 = vmatmul.mubr.msk.f32.gmra.mrb[56].mxu1 %vm966_vm1, %v1610_v34 }
 0x1d2   : > { %7610 = vmatmul.mubr.msk.f32.gmra.mrb[142].mxu0 %vm966_vm1, %v3632_v35  ;;  %7343 = vmatprep.mubr.msk.f32.mxu1 %vm966_vm1, %v1611_v36  ;;  %v2098_v35 = vld [vmem:[#allocation2 + $0x3a] sm:$0xff]  ;;  %v4622_v36 = vld [vmem:[#allocation2 + $0xcd] sm:$0xff] }
 0x1d3   : > { %7682 = vmatprep.mubr.msk.f32.mxu0 %vm966_vm1, %v4601_v37 }
 0x1d5   : > { %7344 = vmatmul.mubr.msk.f32.gmra.mrb[58].mxu1 %vm966_vm1, %v1612_v38  ;;  %v2099_v38 = vld [vmem:[#allocation2 + $0x42] sm:$0xff] }
 0x1d6   : > { %7683 = vmatmul.mubr.msk.f32.vlgmr.msra.gmra.mrb[144].mxu0 %vm966_vm1, %v4602_v39  ;;  %7346 = vmatprep.mubr.msk.f32.mxu1 %vm966_vm1, %v1613_v41  ;;  %v4623_v39 = vld [vmem:[#allocation2 + $0xd5] sm:$0xff] }
 0x1d7   : > { %7685 = vmatprep.mubr.msk.f32.mxu0 %vm966_vm1, %v4603_v42  ;;  %v1057_v41 = vld [vmem:[#allocation3 + $0x28] sm:$0xff]  ;;  %v1056_v42 = vld [vmem:[#allocation3 + $0x20] sm:$0xff] }
 0x1d9   : > { %7347 = vmatmul.mubr.msk.f32.gmra.mrb[60].mxu1 %vm966_vm1, %v1614_v43 }
 0x1da   : > { %7686 = vmatmul.mubr.msk.f32.gmra.mrb[146].mxu0 %vm966_vm1, %v4604_v45  ;;  %7349 = vmatprep.mubr.msk.f32.mxu1 %vm966_vm1, %v1615_v15  ;;  %v2100_v45 = vld [vmem:[#allocation2 + $0x4a] sm:$0xff]  ;;  %v4624_v15 = vld [vmem:[#allocation2 + $0xdd] sm:$0xff] }
 0x1db   : > { %7688 = vmatprep.mubr.msk.f32.mxu0 %vm966_vm1, %v4605_v46 }
 0x1dd   : > { %7350 = vmatmul.mubr.msk.f32.gmra.mrb[62].mxu1 %vm966_vm1, %v1616_v48 }
 0x1de   : > { %7689 = vmatmul.mubr.msk.f32.gmra.mrb[148].mxu0 %vm966_vm1, %v4606_v49  ;;  %7352 = vmatprep.mubr.msk.f32.mxu1 %vm966_vm1, %v1617_v63  ;;  %v2101_v49 = vld [vmem:[#allocation2 + $0x52] sm:$0xff]  ;;  %v4625_v63 = vld [vmem:[#allocation2 + $0xe5] sm:$0xff] }
 0x1df   : > { %7691 = vmatprep.mubr.msk.f32.mxu0 %vm966_vm1, %v4607_v50 }
 0x1e1   : > { %7353 = vmatmul.mubr.msk.f32.gmra.mrb[64].mxu1 %vm966_vm1, %v1618_v51 }
 0x1e2   : > { %7692 = vmatmul.mubr.msk.f32.gmra.mrb[150].mxu0 %vm966_vm1, %v4608_v52  ;;  %7355 = vmatprep.mubr.msk.f32.mxu1 %vm966_vm1, %v1619_v53  ;;  %v2102_v52 = vld [vmem:[#allocation2 + $0x5a] sm:$0xff]  ;;  %v4626_v53 = vld [vmem:[#allocation2 + $0xed] sm:$0xff] }
 0x1e3   : > { %7694 = vmatprep.mubr.msk.f32.mxu0 %vm966_vm1, %v4609_v54 }
 0x1e5   : > { %7356 = vmatmul.mubr.msk.f32.gmra.mrb[66].mxu1 %vm966_vm1, %v1620_v56  ;;  %v2103_v56 = vld [vmem:[#allocation2 + $0x62] sm:$0xff] }
 0x1e6   : > { %7695 = vmatmul.mubr.msk.f32.gmra.mrb[152].mxu0 %vm966_vm1, %v4610_v11  ;;  %7358 = vmatprep.mubr.msk.f32.mxu1 %vm966_vm1, %v1621_v57  ;;  %v4627_v11 = vld [vmem:[#allocation2 + $0xf5] sm:$0xff]  ;;  %v1059_v57 = vld [vmem:[#allocation3 + $0x38] sm:$0xff] }
 0x1e7   : > { %7697 = vmatprep.mubr.msk.f32.mxu0 %vm966_vm1, %v4611_v58  ;;  %v1058_v58 = vld [vmem:[#allocation3 + $0x30] sm:$0xff] }
 0x1e9   : > { %7359 = vmatmul.mubr.msk.f32.gmra.mrb[68].mxu1 %vm966_vm1, %v1622_v59 }
 0x1ea   : > { %7698 = vmatmul.mubr.msk.f32.gmra.mrb[154].mxu0 %vm966_vm1, %v4612_v60  ;;  %7361 = vmatprep.mubr.msk.f32.mxu1 %vm966_vm1, %v1623_v61  ;;  %v2104_v60 = vld [vmem:[#allocation2 + $0x6a] sm:$0xff]  ;;  %v4628_v61 = vld [vmem:[#allocation2 + $0xfd] sm:$0xff] }
 0x1eb   : > { %7700 = vmatprep.mubr.msk.f32.mxu0 %vm966_vm1, %v4613_v6 }
 0x1ed   : > { %7362 = vmatmul.mubr.msk.f32.gmra.mrb[70].mxu1 %vm966_vm1, %v1624_v1 }
 0x1ee   : > { %7701 = vmatmul.mubr.msk.f32.gmra.mrb[156].mxu0 %vm966_vm1, %v4614_v2  ;;  %7372 = vmatprep.mubr.msk.f32.mxu1 %vm966_vm1, %v2091_v3  ;;  %v2105_v2 = vld [vmem:[#allocation2 + $0x72] sm:$0xff]  ;;  %v4629_v3 = vld [vmem:[#allocation2 + $0x105] sm:$0xff] }
 0x1ef   : > { %7703 = vmatprep.mubr.msk.f32.mxu0 %vm966_vm1, %v4615_v4 }
 0x1f0   : > { %v7250_v8 = vpop.f32.mrb[0].mxu1 }
 0x1f1   : > { %v1482_v12 = vadd.f32 %v7250_v8, %v1053_v5  ;;  %v1302_v13 = vpop.f32.mrb[1].mxu1  ;;  %7373 = vmatmul.mubr.msk.f32.vlgmr.msra.gmra.mrb[72].mxu1 %vm966_vm1, %v2092_v9  ;;  %v4630_v8 = vld [vmem:[#allocation2 + $0x10d] sm:$0xff] }
 0x1f2   : > { %7704 = vmatmul.mubr.msk.f32.gmra.mrb[158].mxu0 %vm966_vm1, %v4616_v10  ;;  %v1481_v18 = vadd.f32 %v1302_v13, %v1052_v7  ;;  %7966 = vmatpush3.bf16.msra.mxu1 %v8468_v40  ;;  %v2095_v40 = vld [vmem:[#allocation2 + $0x22] sm:$0xff]  ;;  %v2106_v7 = vld [vmem:[#allocation2 + $0x7a] sm:$0xff]  ;;  %v1061_v13 = vld [vmem:[#allocation3 + $0x48] sm:$0xff] }
 0x1f3   : > { %7375 = vmatprep.mubr.msk.f32.mxu1 %vm966_vm1, %v2093_v14  ;;  %1518 = vst.msk [vmem:[#allocation3 + $0x8] sm:$0xff] %vm966_vm1, %v1482_v12  ;;  %7706 = vmatprep.mubr.msk.f32.mxu0 %vm966_vm1, %v4617_v20  ;;  %v2107_v10 = vld [vmem:[#allocation2 + $0x82] sm:$0xff]  ;;  %v4631_v12 = vld [vmem:[#allocation2 + $0x115] sm:$0xff] }
 0x1f4   : > { %7965 = vmatprep.subr.bf16.mxu1 %v8481_v44  ;;  %1517 = vst.msk [vmem:[#allocation3] sm:$0xff] %vm966_vm1, %v1481_v18  ;;  %v1060_v14 = vld [vmem:[#allocation3 + $0x40] sm:$0xff]  ;;  %v4632_v18 = vld [vmem:[#allocation2 + $0x11d] sm:$0xff] }
 0x1f5   : > { %7376 = vmatmul.mubr.msk.f32.gmra.mrb[74].mxu1 %vm966_vm1, %v2094_v21 }
 0x1f6   : > { %7707 = vmatmul.mubr.msk.f32.gmra.mrb[160].mxu0 %vm966_vm1, %v4618_v22  ;;  %7378 = vmatprep.mubr.msk.f32.mxu1 %vm966_vm1, %v2095_v40  ;;  %v2109_v22 = vld [vmem:[#allocation2 + $0x92] sm:$0xff]  ;;  %v4633_v40 = vld [vmem:[#allocation2 + $0x125] sm:$0xff] }
 0x1f7   : > { %7709 = vmatprep.mubr.msk.f32.mxu0 %vm966_vm1, %v4619_v24  ;;  %7967 = vmatpush3.bf16.msra.mxu1 %v8481_v44 }
 0x1f8   : > { %v7253_v27 = vpop.f32.mrb[2].mxu1  ;;  %7917 = vmatprep.subr.bf16.mxu1 %v8891_v23 }
 0x1f9   : > { %v1484_v30 = vadd.f32 %v7253_v27, %v1055_v25  ;;  %v1312_v31 = vpop.f32.mrb[3].mxu1  ;;  %7379 = vmatmul.mubr.msk.f32.gmra.mrb[76].mxu1 %vm966_vm1, %v2096_v28  ;;  %v4634_v27 = vld [vmem:[#allocation2 + $0x12d] sm:$0xff] }
 0x1fa   : > { %7710 = vmatmul.mubr.msk.f32.gmra.mrb[162].mxu0 %vm966_vm1, %v4620_v29  ;;  %v1483_v34 = vadd.f32 %v1312_v31, %v1054_v26  ;;  %7381 = vmatprep.mubr.msk.f32.mxu1 %vm966_vm1, %v2097_v32  ;;  %v2110_v26 = vld [vmem:[#allocation2 + $0x9a] sm:$0xff]  ;;  %v2111_v29 = vld [vmem:[#allocation2 + $0xa2] sm:$0xff] }
 0x1fb   : > { %7712 = vmatprep.mubr.msk.f32.mxu0 %vm966_vm1, %v4621_v33  ;;  %1520 = vst.msk [vmem:[#allocation3 + $0x18] sm:$0xff] %vm966_vm1, %v1484_v30  ;;  %v4635_v30 = vld [vmem:[#allocation2 + $0x135] sm:$0xff]  ;;  %v1063_v31 = vld [vmem:[#allocation3 + $0x58] sm:$0xff] }
 0x1fc   : > { %1519 = vst.msk [vmem:[#allocation3 + $0x10] sm:$0xff] %vm966_vm1, %v1483_v34  ;;  %v1062_v32 = vld [vmem:[#allocation3 + $0x50] sm:$0xff]  ;;  %v2112_v34 = vld [vmem:[#allocation2 + $0xaa] sm:$0xff] }
 0x1fd   : > { %v8905_v44 = vpop.f32.mrb[82].mxu0  ;;  %7382 = vmatmul.mubr.msk.f32.gmra.mrb[78].mxu1 %vm966_vm1, %v2098_v35  ;;  %v4636_v35 = vld [vmem:[#allocation2 + $0x13d] sm:$0xff] }
 0x1fe   : > { %v8908_v37 = vpop.f32.mrb[83].mxu0  ;;  %7713 = vmatmul.mubr.msk.f32.gmra.mrb[164].mxu0 %vm966_vm1, %v4622_v36  ;;  %7384 = vmatprep.mubr.msk.f32.mxu1 %vm966_vm1, %v2099_v38 }
 0x1ff   : > { %7715 = vmatprep.mubr.msk.f32.mxu0 %vm966_vm1, %v4623_v39  ;;  %v2113_v39 = vld [vmem:[#allocation2 + $0xb2] sm:$0xff] }
 0x200   : > { %v7256_v43 = vpop.f32.mrb[4].mxu1 }
 0x201   : > { %v1486_v46 = vadd.f32 %v7256_v43, %v1057_v41  ;;  %v1322_v48 = vpop.f32.mrb[5].mxu1  ;;  %7385 = vmatmul.mubr.msk.f32.gmra.mrb[80].mxu1 %vm966_vm1, %v2100_v45  ;;  %v1065_v45 = vld [vmem:[#allocation3 + $0x68] sm:$0xff] }
 0x202   : > { %7716 = vmatmul.mubr.msk.f32.gmra.mrb[166].mxu0 %vm966_vm1, %v4624_v15  ;;  %v1485_v50 = vadd.f32 %v1322_v48, %v1056_v42  ;;  %7387 = vmatprep.mubr.msk.f32.mxu1 %vm966_vm1, %v2101_v49  ;;  %v1064_v15 = vld [vmem:[#allocation3 + $0x60] sm:$0xff] }
 0x203   : > { %7718 = vmatprep.mubr.msk.f32.mxu0 %vm966_vm1, %v4625_v63  ;;  %1522 = vst.msk [vmem:[#allocation3 + $0x28] sm:$0xff] %vm966_vm1, %v1486_v46 }
 0x204   : > { %1521 = vst.msk [vmem:[#allocation3 + $0x20] sm:$0xff] %vm966_vm1, %v1485_v50  ;;  %v2119_v50 = vld [vmem:[#allocation2 + $0xe2] sm:$0xff] }
 0x205   : > { %v8919_v51 = vpop.f32.mrb[84].mxu0  ;;  %7388 = vmatmul.mubr.msk.f32.gmra.mrb[82].mxu1 %vm966_vm1, %v2102_v52  ;;  %v1067_v52 = vld [vmem:[#allocation3 + $0x78] sm:$0xff] }
 0x206   : > { %v8922_v54 = vpop.f32.mrb[85].mxu0  ;;  %7719 = vmatmul.mubr.msk.f32.gmra.mrb[168].mxu0 %vm966_vm1, %v4626_v53  ;;  %7390 = vmatprep.mubr.msk.f32.mxu1 %vm966_vm1, %v2103_v56  ;;  %v2120_v56 = vld [vmem:[#allocation2 + $0xea] sm:$0xff] }
 0x207   : > { %7721 = vmatprep.mubr.msk.f32.mxu0 %vm966_vm1, %v4627_v11 }
 0x208   : > { %v7259_v59 = vpop.f32.mrb[6].mxu1 }
 0x209   : > { %v1488_v6 = vadd.f32 %v7259_v59, %v1059_v57  ;;  %v1332_v1 = vpop.f32.mrb[7].mxu1  ;;  %7391 = vmatmul.mubr.msk.f32.gmra.mrb[84].mxu1 %vm966_vm1, %v2104_v60  ;;  %v2121_v57 = vld [vmem:[#allocation2 + $0xf2] sm:$0xff]  ;;  %v2122_v59 = vld [vmem:[#allocation2 + $0xfa] sm:$0xff] }
 0x20a   : > { %7722 = vmatmul.mubr.msk.f32.gmra.mrb[170].mxu0 %vm966_vm1, %v4628_v61  ;;  %v1487_v4 = vadd.f32 %v1332_v1, %v1058_v58  ;;  %7393 = vmatprep.mubr.msk.f32.mxu1 %vm966_vm1, %v2105_v2  ;;  %v2123_v61 = vld [vmem:[#allocation2 + $0x102] sm:$0xff] }
 0x20b   : > { %7724 = vmatprep.mubr.msk.f32.mxu0 %vm966_vm1, %v4629_v3  ;;  %1524 = vst.msk [vmem:[#allocation3 + $0x38] sm:$0xff] %vm966_vm1, %v1488_v6  ;;  %v1069_v6 = vld [vmem:[#allocation3 + $0x88] sm:$0xff]  ;;  %v1068_v1 = vld [vmem:[#allocation3 + $0x80] sm:$0xff] }
 0x20c   : > { %1523 = vst.msk [vmem:[#allocation3 + $0x30] sm:$0xff] %vm966_vm1, %v1487_v4  ;;  %v2124_v3 = vld [vmem:[#allocation2 + $0x10a] sm:$0xff] }
 0x20d   : > { %v8933_v5 = vpop.f32.mrb[86].mxu0  ;;  %7394 = vmatmul.mubr.msk.f32.gmra.mrb[86].mxu1 %vm966_vm1, %v2106_v7 }
 0x20e   : > { %v8936_v9 = vpop.f32.mrb[87].mxu0  ;;  %7725 = vmatmul.mubr.msk.f32.gmra.mrb[172].mxu0 %vm966_vm1, %v4630_v8  ;;  %7396 = vmatprep.mubr.msk.f32.mxu1 %vm966_vm1, %v2107_v10  ;;  %v2125_v8 = vld [vmem:[#allocation2 + $0x112] sm:$0xff] }
 0x20f   : > { %7727 = vmatprep.mubr.msk.f32.mxu0 %vm966_vm1, %v4631_v12 }
 0x210   : > { %v7262_v16 = vpop.f32.mrb[8].mxu1 }
 0x211   : > { %v1490_v20 = vadd.f32 %v7262_v16, %v1061_v13  ;;  %v1342_v21 = vpop.f32.mrb[9].mxu1  ;;  %7397 = vmatmul.mubr.msk.f32.gmra.mrb[88].mxu1 %vm966_vm1, %v2108_v17  ;;  %v2126_v13 = vld [vmem:[#allocation2 + $0x11a] sm:$0xff] }
 0x212   : > { %7728 = vmatmul.mubr.msk.f32.gmra.mrb[174].mxu0 %vm966_vm1, %v4632_v18  ;;  %v1489_v24 = vadd.f32 %v1342_v21, %v1060_v14  ;;  %7399 = vmatprep.mubr.msk.f32.mxu1 %vm966_vm1, %v2109_v22  ;;  %v6390_v14 = vld [vmem:[%s9942_s3 + $0x90] sm:$0xff]  ;;  %v6391_v16 = vld [vmem:[%s9942_s3 + $0x98] sm:$0xff]  ;;  %v1071_v18 = vld [vmem:[#allocation3 + $0x98] sm:$0xff] }
 0x213   : > { %7730 = vmatprep.mubr.msk.f32.mxu0 %vm966_vm1, %v4633_v40  ;;  %1526 = vst.msk [vmem:[#allocation3 + $0x48] sm:$0xff] %vm966_vm1, %v1490_v20  ;;  %v1070_v20 = vld [vmem:[#allocation3 + $0x90] sm:$0xff]  ;;  %v7920_v21 = vpack.c.bf16 %v6391_v16, %v6390_v14  ;;  %v6468_v40 = vld [vmem:[%s9942_s3 + $0xc0] sm:$0xff] }
 0x214   : > { %1525 = vst.msk [vmem:[#allocation3 + $0x40] sm:$0xff] %vm966_vm1, %v1489_v24  ;;  %v6469_v24 = vld [vmem:[%s9942_s3 + $0xc8] sm:$0xff] }
 0x215   : > { %v8947_v25 = vpop.f32.mrb[88].mxu0  ;;  %7400 = vmatmul.mubr.msk.f32.gmra.mrb[90].mxu1 %vm966_vm1, %v2110_v26 }
 0x216   : > { %v8950_v28 = vpop.f32.mrb[89].mxu0  ;;  %7731 = vmatmul.mubr.msk.f32.gmra.mrb[176].mxu0 %vm966_vm1, %v4634_v27  ;;  %7402 = vmatprep.mubr.msk.f32.mxu1 %vm966_vm1, %v2111_v29 }
 0x217   : > { %7733 = vmatprep.mubr.msk.f32.mxu0 %vm966_vm1, %v4635_v30  ;;  %v7932_v30 = vpack.c.bf16 %v6469_v24, %v6468_v40  ;;  %v1078_v40 = vld [vmem:[#allocation3 + $0xd0] sm:$0xff] }
 0x218   : > { %v7265_v33 = vpop.f32.mrb[10].mxu1 }
 0x219   : > { %v1492_v36 = vadd.f32 %v7265_v33, %v1063_v31  ;;  %v1352_v38 = vpop.f32.mrb[11].mxu1  ;;  %7403 = vmatmul.mubr.msk.f32.gmra.mrb[92].mxu1 %vm966_vm1, %v2112_v34  ;;  %v1073_v33 = vld [vmem:[#allocation3 + $0xa8] sm:$0xff]  ;;  %v1072_v34 = vld [vmem:[#allocation3 + $0xa0] sm:$0xff] }
 0x21a   : > { %7734 = vmatmul.mubr.msk.f32.gmra.mrb[178].mxu0 %vm966_vm1, %v4636_v35  ;;  %v1491_v41 = vadd.f32 %v1352_v38, %v1062_v32  ;;  %7405 = vmatprep.mubr.msk.f32.mxu1 %vm966_vm1, %v2113_v39 }
 0x21b   : > { %1528 = vst.msk [vmem:[#allocation3 + $0x58] sm:$0xff] %vm966_vm1, %v1492_v36 }
 0x21c   : > { %1527 = vst.msk [vmem:[#allocation3 + $0x50] sm:$0xff] %vm966_vm1, %v1491_v41 }
 0x21d   : > { %v8960_v42 = vpop.f32.mrb[90].mxu0  ;;  %7406 = vmatmul.mubr.msk.f32.gmra.mrb[94].mxu1 %vm966_vm1, %v8713_v47 }
 0x21e   : > { %v8964_v43 = vpop.f32.mrb[91].mxu0  ;;  %7408 = vmatprep.mubr.msk.f32.mxu1 %vm966_vm1, %v8720_v55 }
 0x220   : > { %v7268_v46 = vpop.f32.mrb[12].mxu1 }
 0x221   : > { %v1494_v48 = vadd.f32 %v7268_v46, %v1065_v45  ;;  %v1362_v49 = vpop.f32.mrb[13].mxu1  ;;  %7409 = vmatmul.mubr.msk.f32.gmra.mrb[96].mxu1 %vm966_vm1, %v8727_v0  ;;  %v1066_v0 = vld [vmem:[#allocation3 + $0x70] sm:$0xff]  ;;  %v2627_v45 = vld [vmem:[#allocation2 + $0x122] sm:$0xff] }
 0x222   : > { %v1493_v63 = vadd.f32 %v1362_v49, %v1064_v15  ;;  %7411 = vmatprep.mubr.msk.f32.mxu1 %vm966_vm1, %v8734_v62  ;;  %v1075_v15 = vld [vmem:[#allocation3 + $0xb8] sm:$0xff]  ;;  %v1074_v46 = vld [vmem:[#allocation3 + $0xb0] sm:$0xff]  ;;  %v2628_v49 = vld [vmem:[#allocation2 + $0x12a] sm:$0xff] }
 0x223   : > { %1530 = vst.msk [vmem:[#allocation3 + $0x68] sm:$0xff] %vm966_vm1, %v1494_v48 }
 0x224   : > { %1529 = vst.msk [vmem:[#allocation3 + $0x60] sm:$0xff] %vm966_vm1, %v1493_v63  ;;  %v6470_v63 = vld [vmem:[%s9942_s3 + $0xd0] sm:$0xff] }
 0x225   : > { %v8974_v47 = vpop.f32.mrb[92].mxu0  ;;  %7412 = vmatmul.mubr.msk.f32.gmra.mrb[98].mxu1 %vm966_vm1, %v8744_v19 }
 0x226   : > { %v8978_v55 = vpop.f32.mrb[93].mxu0  ;;  %7414 = vmatprep.mubr.msk.f32.mxu1 %vm966_vm1, %v2119_v50 }
 0x228   : > { %v7271_v53 = vpop.f32.mrb[14].mxu1 }
 0x229   : > { %v1496_v11 = vadd.f32 %v7271_v53, %v1067_v52  ;;  %v1372_v62 = vpop.f32.mrb[15].mxu1  ;;  %7415 = vmatmul.mubr.msk.f32.gmra.mrb[100].mxu1 %vm966_vm1, %v2120_v56  ;;  %v3095_v53 = vld [vmem:[#allocation2 + $0x13] sm:$0xff] }
 0x22a   : > { %v1495_v58 = vadd.f32 %v1372_v62, %v1066_v0  ;;  %7417 = vmatprep.mubr.msk.f32.mxu1 %vm966_vm1, %v2121_v57 }
 0x22b   : > { %1532 = vst.msk [vmem:[#allocation3 + $0x78] sm:$0xff] %vm966_vm1, %v1496_v11 }
 0x22c   : > { %1531 = vst.msk [vmem:[#allocation3 + $0x70] sm:$0xff] %vm966_vm1, %v1495_v58  ;;  %v6548_v58 = vld [vmem:[%s9942_s3 + $0x100] sm:$0xff] }
 0x22d   : > { %v8985_v19 = vpop.f32.mrb[94].mxu0  ;;  %7418 = vmatmul.mubr.msk.f32.gmra.mrb[102].mxu1 %vm966_vm1, %v2122_v59 }
 0x22e   : > { %v8988_v60 = vpop.f32.mrb[95].mxu0  ;;  %7420 = vmatprep.mubr.msk.f32.mxu1 %vm966_vm1, %v2123_v61 }
 0x230   : > { %v7274_v2 = vpop.f32.mrb[16].mxu1 }
 0x231   : > { %v1498_v4 = vadd.f32 %v7274_v2, %v1069_v6  ;;  %v1382_v7 = vpop.f32.mrb[17].mxu1  ;;  %7421 = vmatmul.mubr.msk.f32.gmra.mrb[104].mxu1 %vm966_vm1, %v2124_v3  ;;  %v3097_v6 = vld [vmem:[#allocation2 + $0x23] sm:$0xff] }
 0x232   : > { %v1497_v10 = vadd.f32 %v1382_v7, %v1068_v1  ;;  %7423 = vmatprep.mubr.msk.f32.mxu1 %vm966_vm1, %v2125_v8  ;;  %v1077_v1 = vld [vmem:[#allocation3 + $0xc8] sm:$0xff]  ;;  %v1076_v2 = vld [vmem:[#allocation3 + $0xc0] sm:$0xff] }
 0x233   : > { %1534 = vst.msk [vmem:[#allocation3 + $0x88] sm:$0xff] %vm966_vm1, %v1498_v4  ;;  %v3098_v7 = vld [vmem:[#allocation2 + $0x2b] sm:$0xff] }
 0x234   : > { %1533 = vst.msk [vmem:[#allocation3 + $0x80] sm:$0xff] %vm966_vm1, %v1497_v10 }
 0x235   : > { %v8995_v12 = vpop.f32.mrb[96].mxu0  ;;  %7424 = vmatmul.mubr.msk.f32.gmra.mrb[106].mxu1 %vm966_vm1, %v2126_v13 }
 0x236   : > { %v9004_v17 = vpop.f32.mrb[97].mxu0  ;;  %7473 = vmatprep.mubr.msk.f32.mxu1 %vm966_vm1, %v2119_v50  ;;  %v6471_v50 = vld [vmem:[%s9942_s3 + $0xd8] sm:$0xff] }
 0x237   : > { %v7936_v11 = vpack.c.bf16 %v6471_v50, %v6470_v63 }
 0x238   : > { %v7277_v22 = vpop.f32.mrb[18].mxu1 }
 0x239   : > { %v1500_v26 = vadd.f32 %v7277_v22, %v1071_v18  ;;  %v1392_v27 = vpop.f32.mrb[19].mxu1  ;;  %7474 = vmatmul.mubr.msk.f32.vlgmr.msra.gmra.mrb[108].mxu1 %vm966_vm1, %v2120_v56  ;;  %v3100_v18 = vld [vmem:[#allocation2 + $0x3b] sm:$0xff] }
 0x23a   : > { %v1499_v29 = vadd.f32 %v1392_v27, %v1070_v20  ;;  %7919 = vmatpush3.bf16.msra.mxu1 %v8891_v23  ;;  %7476 = vmatprep.mubr.msk.f32.mxu1 %vm966_vm1, %v2121_v57  ;;  %v3096_v57 = vld [vmem:[#allocation2 + $0x1b] sm:$0xff] }
 0x23b   : > { %1536 = vst.msk [vmem:[#allocation3 + $0x98] sm:$0xff] %vm966_vm1, %v1500_v26  ;;  %7921 = vmatprep.subr.bf16.mxu1 %v7920_v21  ;;  %v1079_v22 = vld [vmem:[#allocation3 + $0xd8] sm:$0xff]  ;;  %v3102_v26 = vld [vmem:[#allocation2 + $0x4b] sm:$0xff] }
 0x23c   : > { %1535 = vst.msk [vmem:[#allocation3 + $0x90] sm:$0xff] %vm966_vm1, %v1499_v29 }
 0x23d   : > { %v9018_v31 = vpop.f32.mrb[98].mxu0  ;;  %7477 = vmatmul.mubr.msk.f32.gmra.mrb[110].mxu1 %vm966_vm1, %v2122_v59  ;;  %v6549_v59 = vld [vmem:[%s9942_s3 + $0x108] sm:$0xff] }
 0x23e   : > { %v9020_v32 = vpop.f32.mrb[99].mxu0  ;;  %7479 = vmatprep.mubr.msk.f32.mxu1 %vm966_vm1, %v2123_v61  ;;  %7923 = vmatpush3.bf16.msra.mxu1 %v7920_v21  ;;  %v3101_v21 = vld [vmem:[#allocation2 + $0x43] sm:$0xff] }
 0x23f   : > { %7933 = vmatprep.subr.bf16.mxu1 %v7932_v30 }
 0x240   : > { %v7280_v23 = vpop.f32.mrb[20].mxu1 }
 0x241   : > { %v1502_v35 = vadd.f32 %v7280_v23, %v1073_v33  ;;  %v1402_v36 = vpop.f32.mrb[21].mxu1  ;;  %7480 = vmatmul.mubr.msk.f32.gmra.mrb[112].mxu1 %vm966_vm1, %v2124_v3  ;;  %v9056_v3 = vpack.c.bf16 %v6549_v59, %v6548_v58  ;;  %v3104_v23 = vld [vmem:[#allocation2 + $0x5b] sm:$0xff] }
 0x242   : > { %v1501_v38 = vadd.f32 %v1402_v36, %v1072_v34  ;;  %7482 = vmatprep.mubr.msk.f32.mxu1 %vm966_vm1, %v2125_v8  ;;  %v3105_v36 = vld [vmem:[#allocation2 + $0x63] sm:$0xff]  ;;  %v1082_v59 = vld [vmem:[#allocation3 + $0xf0] sm:$0xff] }
 0x243   : > { %1538 = vst.msk [vmem:[#allocation3 + $0xa8] sm:$0xff] %vm966_vm1, %v1502_v35  ;;  %v1083_v58 = vld [vmem:[#allocation3 + $0xf8] sm:$0xff] }
 0x244   : > { %1537 = vst.msk [vmem:[#allocation3 + $0xa0] sm:$0xff] %vm966_vm1, %v1501_v38  ;;  %v1081_v38 = vld [vmem:[#allocation3 + $0xe8] sm:$0xff] }
 0x245   : > { %v9028_v39 = vpop.f32.mrb[100].mxu0  ;;  %7483 = vmatmul.mubr.msk.f32.gmra.mrb[114].mxu1 %vm966_vm1, %v2126_v13  ;;  %v3099_v13 = vld [vmem:[#allocation2 + $0x33] sm:$0xff] }
 0x246   : > { %v9030_v41 = vpop.f32.mrb[101].mxu0  ;;  %7485 = vmatprep.mubr.msk.f32.mxu1 %vm966_vm1, %v2627_v45  ;;  %v1080_v45 = vld [vmem:[#allocation3 + $0xe0] sm:$0xff] }
 0x248   : > { %v7283_v48 = vpop.f32.mrb[22].mxu1 }
 0x249   : > { %v1504_v52 = vadd.f32 %v7283_v48, %v1075_v15  ;;  %v1412_v0 = vpop.f32.mrb[23].mxu1  ;;  %7486 = vmatmul.mubr.msk.f32.gmra.mrb[116].mxu1 %vm966_vm1, %v2628_v49  ;;  %v3106_v48 = vld [vmem:[#allocation2 + $0x6b] sm:$0xff] }
 0x24a   : > { %v1503_v56 = vadd.f32 %v1412_v0, %v1074_v46  ;;  %7496 = vmatprep.mubr.msk.f32.mxu1 %vm966_vm1, %v3095_v53 }
 0x24b   : > { %1540 = vst.msk [vmem:[#allocation3 + $0xb8] sm:$0xff] %vm966_vm1, %v1504_v52  ;;  %v3107_v52 = vld [vmem:[#allocation2 + $0x73] sm:$0xff] }
 0x24c   : > { %1539 = vst.msk [vmem:[#allocation3 + $0xb0] sm:$0xff] %vm966_vm1, %v1503_v56  ;;  %v3108_v56 = vld [vmem:[#allocation2 + $0x7b] sm:$0xff] }
 0x24d   : > { %v9044_v62 = vpop.f32.mrb[102].mxu0  ;;  %7497 = vmatmul.mubr.msk.f32.vlgmr.msra.gmra.mrb[118].mxu1 %vm966_vm1, %v3096_v57  ;;  %v3109_v57 = vld [vmem:[#allocation2 + $0x83] sm:$0xff] }
 0x24e   : > { %v9052_v61 = vpop.f32.mrb[103].mxu0  ;;  %7935 = vmatpush3.bf16.msra.mxu1 %v7932_v30  ;;  %7499 = vmatprep.mubr.msk.f32.mxu1 %vm966_vm1, %v3097_v6  ;;  %v3103_v30 = vld [vmem:[#allocation2 + $0x53] sm:$0xff] }
 0x24f   : > { %7937 = vmatprep.subr.bf16.mxu1 %v7936_v11 }
 0x250   : > { %v7286_v4 = vpop.f32.mrb[24].mxu1 }
 0x251   : > { %v1506_v8 = vadd.f32 %v7286_v4, %v1077_v1  ;;  %v1422_v10 = vpop.f32.mrb[25].mxu1  ;;  %7500 = vmatmul.mubr.msk.f32.gmra.mrb[120].mxu1 %vm966_vm1, %v3098_v7 }
 0x252   : > { %v1505_v14 = vadd.f32 %v1422_v10, %v1076_v2  ;;  %7502 = vmatprep.mubr.msk.f32.mxu1 %vm966_vm1, %v3099_v13  ;;  %7939 = vmatpush3.bf16.msra.mxu1 %v7936_v11  ;;  %v3110_v2 = vld [vmem:[#allocation2 + $0x8b] sm:$0xff]  ;;  %v3111_v10 = vld [vmem:[#allocation2 + $0x93] sm:$0xff] }
 0x253   : > { %1542 = vst.msk [vmem:[#allocation3 + $0xc8] sm:$0xff] %vm966_vm1, %v1506_v8  ;;  %7949 = vmatprep.subr.bf16.mxu1 %v9056_v3 }
 0x254   : > { %1541 = vst.msk [vmem:[#allocation3 + $0xc0] sm:$0xff] %vm966_vm1, %v1505_v14 }
 0x255   : > { %v9063_v16 = vpop.f32.mrb[104].mxu0  ;;  %7503 = vmatmul.mubr.msk.f32.gmra.mrb[122].mxu1 %vm966_vm1, %v3100_v18  ;;  %v3112_v18 = vld [vmem:[#allocation2 + $0x9b] sm:$0xff] }
 0x256   : > { %v9065_v20 = vpop.f32.mrb[105].mxu0  ;;  %7505 = vmatprep.mubr.msk.f32.mxu1 %vm966_vm1, %v3101_v21 }
 0x258   : > { %v7289_v24 = vpop.f32.mrb[26].mxu1 }
 0x259   : > { %v1508_v27 = vadd.f32 %v7289_v24, %v1079_v22  ;;  %v1432_v29 = vpop.f32.mrb[27].mxu1  ;;  %7506 = vmatmul.mubr.msk.f32.gmra.mrb[124].mxu1 %vm966_vm1, %v3102_v26  ;;  %v3113_v22 = vld [vmem:[#allocation2 + $0xa3] sm:$0xff] }
 0x25a   : > { %v1507_v33 = vadd.f32 %v1432_v29, %v1078_v40  ;;  %7508 = vmatprep.mubr.msk.f32.mxu1 %vm966_vm1, %v3103_v30  ;;  %v1085_v40 = vld [vmem:[#allocation3 + $0x108] sm:$0xff]  ;;  %v1084_v24 = vld [vmem:[#allocation3 + $0x100] sm:$0xff] }
 0x25b   : > { %1544 = vst.msk [vmem:[#allocation3 + $0xd8] sm:$0xff] %vm966_vm1, %v1508_v27  ;;  %v3114_v29 = vld [vmem:[#allocation2 + $0xab] sm:$0xff] }
 0x25c   : > { %1543 = vst.msk [vmem:[#allocation3 + $0xd0] sm:$0xff] %vm966_vm1, %v1507_v33 }
 0x25d   : > { %v9073_v34 = vpop.f32.mrb[106].mxu0  ;;  %7509 = vmatmul.mubr.msk.f32.gmra.mrb[126].mxu1 %vm966_vm1, %v3104_v23 }
 0x25e   : > { %v9075_v35 = vpop.f32.mrb[107].mxu0  ;;  %7511 = vmatprep.mubr.msk.f32.mxu1 %vm966_vm1, %v3105_v36  ;;  %v3115_v36 = vld [vmem:[#allocation2 + $0xb3] sm:$0xff] }
 0x260   : > { %v7292_v15 = vpop.f32.mrb[28].mxu1 }
 0x261   : > { %v9079_v46 = vpop.f32.mrb[108].mxu0  ;;  %v1510_v49 = vadd.f32 %v7292_v15, %v1081_v38  ;;  %v1442_v63 = vpop.f32.mrb[29].mxu1  ;;  %7512 = vmatmul.mubr.msk.f32.gmra.mrb[128].mxu1 %vm966_vm1, %v3106_v48  ;;  %v3116_v15 = vld [vmem:[#allocation2 + $0xbb] sm:$0xff] }
 0x262   : > { %v9082_v50 = vpop.f32.mrb[109].mxu0  ;;  %v1509_v0 = vadd.f32 %v1442_v63, %v1080_v45  ;;  %7514 = vmatprep.mubr.msk.f32.mxu1 %vm966_vm1, %v3107_v52  ;;  %v1087_v63 = vld [vmem:[#allocation3 + $0x118] sm:$0xff]  ;;  %v1086_v52 = vld [vmem:[#allocation3 + $0x110] sm:$0xff] }
 0x263   : > { %1546 = vst.msk [vmem:[#allocation3 + $0xe8] sm:$0xff] %vm966_vm1, %v1510_v49  ;;  %v3117_v49 = vld [vmem:[#allocation2 + $0xc3] sm:$0xff] }
 0x264   : > { %1545 = vst.msk [vmem:[#allocation3 + $0xe0] sm:$0xff] %vm966_vm1, %v1509_v0 }
 0x265   : > { %v9087_v53 = vpop.f32.mrb[110].mxu0  ;;  %7515 = vmatmul.mubr.msk.f32.gmra.mrb[130].mxu1 %vm966_vm1, %v3108_v56 }
 0x266   : > { %v9090_v11 = vpop.f32.mrb[111].mxu0  ;;  %7517 = vmatprep.mubr.msk.f32.mxu1 %vm966_vm1, %v3109_v57  ;;  %v3118_v57 = vld [vmem:[#allocation2 + $0xcb] sm:$0xff] }
 0x268   : > { %v7295_v6 = vpop.f32.mrb[30].mxu1 }
 0x269   : > { %v9093_v1 = vpop.f32.mrb[112].mxu0  ;;  %v1512_v4 = vadd.f32 %v7295_v6, %v1083_v58  ;;  %v1452_v7 = vpop.f32.mrb[31].mxu1  ;;  %7518 = vmatmul.mubr.msk.f32.gmra.mrb[132].mxu1 %vm966_vm1, %v3110_v2  ;;  %v3119_v2 = vld [vmem:[#allocation2 + $0xd3] sm:$0xff] }
 0x26a   : > { %v9096_v8 = vpop.f32.mrb[113].mxu0  ;;  %v1511_v13 = vadd.f32 %v1452_v7, %v1082_v59  ;;  %7520 = vmatprep.mubr.msk.f32.mxu1 %vm966_vm1, %v3111_v10  ;;  %v1554_v7 = vld [vmem:[#allocation3 + $0x8] sm:$0xff] }
 0x26b   : > { %1548 = vst.msk [vmem:[#allocation3 + $0xf8] sm:$0xff] %vm966_vm1, %v1512_v4 }
 0x26c   : > { %1547 = vst.msk [vmem:[#allocation3 + $0xf0] sm:$0xff] %vm966_vm1, %v1511_v13 }
 0x26d   : > { %v9101_v14 = vpop.f32.mrb[114].mxu0  ;;  %7521 = vmatmul.mubr.msk.f32.gmra.mrb[134].mxu1 %vm966_vm1, %v3112_v18  ;;  %v3120_v18 = vld [vmem:[#allocation2 + $0xdb] sm:$0xff] }
 0x26e   : > { %v9104_v21 = vpop.f32.mrb[115].mxu0  ;;  %7523 = vmatprep.mubr.msk.f32.mxu1 %vm966_vm1, %v3113_v22 }
 0x270   : > { %v7298_v26 = vpop.f32.mrb[32].mxu1 }
 0x271   : > { %v9107_v27 = vpop.f32.mrb[116].mxu0  ;;  %v1514_v30 = vadd.f32 %v7298_v26, %v1085_v40  ;;  %v1462_v33 = vpop.f32.mrb[33].mxu1  ;;  %7524 = vmatmul.mubr.msk.f32.gmra.mrb[136].mxu1 %vm966_vm1, %v3114_v29  ;;  %v1553_v40 = vld [vmem:[#allocation3] sm:$0xff] }
 0x272   : > { %v9110_v23 = vpop.f32.mrb[117].mxu0  ;;  %v1513_v38 = vadd.f32 %v1462_v33, %v1084_v24  ;;  %7526 = vmatprep.mubr.msk.f32.mxu1 %vm966_vm1, %v3115_v36  ;;  %v3121_v29 = vld [vmem:[#allocation2 + $0xe3] sm:$0xff] }
 0x273   : > { %1550 = vst.msk [vmem:[#allocation3 + $0x108] sm:$0xff] %vm966_vm1, %v1514_v30  ;;  %v1556_v33 = vld [vmem:[#allocation3 + $0x18] sm:$0xff] }
 0x274   : > { %1549 = vst.msk [vmem:[#allocation3 + $0x100] sm:$0xff] %vm966_vm1, %v1513_v38 }
 0x275   : > { %v9115_v45 = vpop.f32.mrb[118].mxu0  ;;  %7527 = vmatmul.mubr.msk.f32.gmra.mrb[138].mxu1 %vm966_vm1, %v3116_v15  ;;  %v3122_v15 = vld [vmem:[#allocation2 + $0xeb] sm:$0xff] }
 0x276   : > { %v9118_v48 = vpop.f32.mrb[119].mxu0  ;;  %7529 = vmatprep.mubr.msk.f32.mxu1 %vm966_vm1, %v3117_v49 }
 0x278   : > { %v7301_v0 = vpop.f32.mrb[34].mxu1 }
 0x279   : > { %v9121_v56 = vpop.f32.mrb[120].mxu0  ;;  %v1516_v58 = vadd.f32 %v7301_v0, %v1087_v63  ;;  %v1472_v59 = vpop.f32.mrb[35].mxu1  ;;  %7530 = vmatmul.mubr.msk.f32.gmra.mrb[140].mxu1 %vm966_vm1, %v3118_v57  ;;  %v1555_v63 = vld [vmem:[#allocation3 + $0x10] sm:$0xff] }
 0x27a   : > { %v9124_v6 = vpop.f32.mrb[121].mxu0  ;;  %v1515_v4 = vadd.f32 %v1472_v59, %v1086_v52  ;;  %7532 = vmatprep.mubr.msk.f32.mxu1 %vm966_vm1, %v3119_v2  ;;  %v3123_v57 = vld [vmem:[#allocation2 + $0xf3] sm:$0xff] }
 0x27b   : > { %1552 = vst.msk [vmem:[#allocation3 + $0x118] sm:$0xff] %vm966_vm1, %v1516_v58  ;;  %v1558_v59 = vld [vmem:[#allocation3 + $0x28] sm:$0xff] }
 0x27c   : > { %1551 = vst.msk [vmem:[#allocation3 + $0x110] sm:$0xff] %vm966_vm1, %v1515_v4  ;;  %v7312_v10 = vpop.f32.mrb[36].mxu1 }
 0x27d   : > { %v9129_v13 = vpop.f32.mrb[122].mxu0  ;;  %v1984_v22 = vadd.f32 %v7312_v10, %v1554_v7  ;;  %v1804_v24 = vpop.f32.mrb[37].mxu1  ;;  %7533 = vmatmul.mubr.msk.f32.gmra.mrb[142].mxu1 %vm966_vm1, %v3120_v18  ;;  %v3124_v7 = vld [vmem:[#allocation2 + $0xfb] sm:$0xff]  ;;  %v1557_v18 = vld [vmem:[#allocation3 + $0x20] sm:$0xff] }
 0x27e   : > { %v9132_v26 = vpop.f32.mrb[123].mxu0  ;;  %v1983_v30 = vadd.f32 %v1804_v24, %v1553_v40  ;;  %7535 = vmatprep.mubr.msk.f32.mxu1 %vm966_vm1, %v3121_v29  ;;  %v3125_v24 = vld [vmem:[#allocation2 + $0x103] sm:$0xff] }
 0x27f   : > { %2020 = vst.msk [vmem:[#allocation3 + $0x8] sm:$0xff] %vm966_vm1, %v1984_v22 }
 0x280   : > { %2019 = vst.msk [vmem:[#allocation3] sm:$0xff] %vm966_vm1, %v1983_v30  ;;  %v7315_v36 = vpop.f32.mrb[38].mxu1  ;;  %v1560_v30 = vld [vmem:[#allocation3 + $0x38] sm:$0xff] }
 0x281   : > { %v9137_v38 = vpop.f32.mrb[124].mxu0  ;;  %v1986_v49 = vadd.f32 %v7315_v36, %v1556_v33  ;;  %v1814_v52 = vpop.f32.mrb[39].mxu1  ;;  %7536 = vmatmul.mubr.msk.f32.gmra.mrb[144].mxu1 %vm966_vm1, %v3122_v15  ;;  %v3126_v15 = vld [vmem:[#allocation2 + $0x10b] sm:$0xff] }
 0x282   : > { %v9140_v0 = vpop.f32.mrb[125].mxu0  ;;  %v1985_v58 = vadd.f32 %v1814_v52, %v1555_v63  ;;  %7538 = vmatprep.mubr.msk.f32.mxu1 %vm966_vm1, %v3123_v57  ;;  %v1559_v63 = vld [vmem:[#allocation3 + $0x30] sm:$0xff] }
 0x283   : > { %2022 = vst.msk [vmem:[#allocation3 + $0x18] sm:$0xff] %vm966_vm1, %v1986_v49 }
 0x284   : > { %2021 = vst.msk [vmem:[#allocation3 + $0x10] sm:$0xff] %vm966_vm1, %v1985_v58  ;;  %v7318_v2 = vpop.f32.mrb[40].mxu1  ;;  %v3127_v58 = vld [vmem:[#allocation2 + $0x113] sm:$0xff] }
 0x285   : > { %v9145_v4 = vpop.f32.mrb[126].mxu0  ;;  %v1988_v10 = vadd.f32 %v7318_v2, %v1558_v59  ;;  %v1824_v22 = vpop.f32.mrb[41].mxu1  ;;  %7539 = vmatmul.mubr.msk.f32.gmra.mrb[146].mxu1 %vm966_vm1, %v3124_v7  ;;  %v1562_v2 = vld [vmem:[#allocation3 + $0x48] sm:$0xff] }
 0x286   : > { %v9148_v40 = vpop.f32.mrb[127].mxu0  ;;  %v1987_v29 = vadd.f32 %v1824_v22, %v1557_v18  ;;  %7541 = vmatprep.mubr.msk.f32.mxu1 %vm966_vm1, %v3125_v24  ;;  %v3128_v18 = vld [vmem:[#allocation2 + $0x11b] sm:$0xff]  ;;  %v1561_v24 = vld [vmem:[#allocation3 + $0x40] sm:$0xff] }
 0x287   : > { %2024 = vst.msk [vmem:[#allocation3 + $0x28] sm:$0xff] %vm966_vm1, %v1988_v10 }
 0x288   : > { %2023 = vst.msk [vmem:[#allocation3 + $0x20] sm:$0xff] %vm966_vm1, %v1987_v29  ;;  %v7321_v33 = vpop.f32.mrb[42].mxu1 }
 0x289   : > { %v9153_v36 = vpop.f32.mrb[128].mxu0  ;;  %v1990_v49 = vadd.f32 %v7321_v33, %v1560_v30  ;;  %v1834_v52 = vpop.f32.mrb[43].mxu1  ;;  %7542 = vmatmul.mubr.msk.f32.gmra.mrb[148].mxu1 %vm966_vm1, %v3126_v15  ;;  %v3129_v33 = vld [vmem:[#allocation2 + $0x123] sm:$0xff] }
 0x28a   : > { %9950 = vst [vmem:[#allocation7_spill] sm:$0xff] %v9153_v36  ;;  %v9156_v57 = vpop.f32.mrb[129].mxu0  ;;  %v1989_v59 = vadd.f32 %v1834_v52, %v1559_v63  ;;  %7544 = vmatprep.mubr.msk.f32.mxu1 %vm966_vm1, %v3127_v58  ;;  %v1564_v63 = vld [vmem:[#allocation3 + $0x58] sm:$0xff] }
 0x28b   : > { %9951 = vst [vmem:[#allocation8_spill] sm:$0xff] %v9156_v57  ;;  %2026 = vst.msk [vmem:[#allocation3 + $0x38] sm:$0xff] %vm966_vm1, %v1990_v49  ;;  %v3130_v49 = vld [vmem:[#allocation2 + $0x12b] sm:$0xff] }
 0x28c   : > { %2025 = vst.msk [vmem:[#allocation3 + $0x30] sm:$0xff] %vm966_vm1, %v1989_v59  ;;  %v7324_v7 = vpop.f32.mrb[44].mxu1  ;;  %v6550_v59 = vld [vmem:[%s9942_s3 + $0x110] sm:$0xff]  ;;  %v1565_v57 = vld [vmem:[#allocation3 + $0x60] sm:$0xff] }
 0x28d   : > { %v9161_v10 = vpop.f32.mrb[130].mxu0  ;;  %v1992_v22 = vadd.f32 %v7324_v7, %v1562_v2  ;;  %v1844_v29 = vpop.f32.mrb[45].mxu1  ;;  %7545 = vmatmul.mubr.msk.f32.gmra.mrb[150].mxu1 %vm966_vm1, %v3128_v18  ;;  %v6551_v2 = vld [vmem:[%s9942_s3 + $0x118] sm:$0xff] }
 0x28e   : > { %9952 = vst [vmem:[#allocation9_spill] sm:$0xff] %v9161_v10  ;;  %v9164_v30 = vpop.f32.mrb[131].mxu0  ;;  %v1991_v15 = vadd.f32 %v1844_v29, %v1561_v24  ;;  %7547 = vmatprep.mubr.msk.f32.mxu1 %vm966_vm1, %v3129_v33  ;;  %v1563_v18 = vld [vmem:[#allocation3 + $0x50] sm:$0xff]  ;;  %v4099_v29 = vld [vmem:[#allocation2 + $0x24] sm:$0xff] }
 0x28f   : > { %9953 = vst [vmem:[#allocation10_spill] sm:$0xff] %v9164_v30  ;;  %2028 = vst.msk [vmem:[#allocation3 + $0x48] sm:$0xff] %vm966_vm1, %v1992_v22 }
 0x290   : > { %2027 = vst.msk [vmem:[#allocation3 + $0x40] sm:$0xff] %vm966_vm1, %v1991_v15  ;;  %v7327_v52 = vpop.f32.mrb[46].mxu1  ;;  %v7952_v15 = vpack.c.bf16 %v6551_v2, %v6550_v59  ;;  %v1568_v59 = vld [vmem:[#allocation3 + $0x78] sm:$0xff] }
 0x291   : > { %v9169_v58 = vpop.f32.mrb[132].mxu0  ;;  %v1994_v7 = vadd.f32 %v7327_v52, %v1564_v63  ;;  %v1854_v24 = vpop.f32.mrb[47].mxu1  ;;  %7548 = vmatmul.mubr.msk.f32.gmra.mrb[152].mxu1 %vm966_vm1, %v3130_v49  ;;  %v4100_v63 = vld [vmem:[#allocation2 + $0x2c] sm:$0xff] }
 0x292   : > { %9954 = vst [vmem:[#allocation11_spill] sm:$0xff] %v9169_v58  ;;  %v9178_v22 = vpop.f32.mrb[133].mxu0  ;;  %v1993_v33 = vadd.f32 %v1854_v24, %v1563_v18  ;;  %7620 = vmatprep.mubr.msk.f32.mxu1 %vm966_vm1, %v4099_v29  ;;  %v1566_v58 = vld [vmem:[#allocation3 + $0x68] sm:$0xff]  ;;  %v1567_v29 = vld [vmem:[#allocation3 + $0x70] sm:$0xff] }
 0x293   : > { %2030 = vst.msk [vmem:[#allocation3 + $0x58] sm:$0xff] %vm966_vm1, %v1994_v7  ;;  %v4101_v18 = vld [vmem:[#allocation2 + $0x34] sm:$0xff] }
 0x294   : > { %2029 = vst.msk [vmem:[#allocation3 + $0x50] sm:$0xff] %vm966_vm1, %v1993_v33  ;;  %v7330_v30 = vpop.f32.mrb[48].mxu1 }
 0x295   : > { %v9183_v10 = vpop.f32.mrb[134].mxu0  ;;  %v1996_v52 = vadd.f32 %v7330_v30, %v1566_v58  ;;  %v1864_v36 = vpop.f32.mrb[49].mxu1  ;;  %7621 = vmatmul.mubr.msk.f32.vlgmr.msra.gmra.mrb[154].mxu1 %vm966_vm1, %v4100_v63  ;;  %v4102_v58 = vld [vmem:[#allocation2 + $0x3c] sm:$0xff] }
 0x296   : > { %v9185_v49 = vpop.f32.mrb[135].mxu0  ;;  %v1995_v24 = vadd.f32 %v1864_v36, %v1565_v57  ;;  %7951 = vmatpush3.bf16.msra.mxu1 %v9056_v3  ;;  %7623 = vmatprep.mubr.msk.f32.mxu1 %vm966_vm1, %v4101_v18  ;;  %v4103_v3 = vld [vmem:[#allocation2 + $0x44] sm:$0xff]  ;;  %v1570_v57 = vld [vmem:[#allocation3 + $0x88] sm:$0xff] }
 0x297   : > { %2032 = vst.msk [vmem:[#allocation3 + $0x68] sm:$0xff] %vm966_vm1, %v1996_v52  ;;  %7953 = vmatprep.subr.bf16.mxu1 %v7952_v15 }
 0x298   : > { %2031 = vst.msk [vmem:[#allocation3 + $0x60] sm:$0xff] %vm966_vm1, %v1995_v24  ;;  %v7333_v2 = vpop.f32.mrb[50].mxu1  ;;  %v4104_v24 = vld [vmem:[#allocation2 + $0x4c] sm:$0xff] }
 0x299   : > { %v9192_v30 = vpop.f32.mrb[136].mxu0  ;;  %v1998_v7 = vadd.f32 %v7333_v2, %v1568_v59  ;;  %v1874_v33 = vpop.f32.mrb[51].mxu1  ;;  %7624 = vmatmul.mubr.msk.f32.gmra.mrb[156].mxu1 %vm966_vm1, %v4102_v58  ;;  %v1569_v2 = vld [vmem:[#allocation3 + $0x80] sm:$0xff]  ;;  %v4105_v58 = vld [vmem:[#allocation2 + $0x54] sm:$0xff] }
 0x29a   : > { %9955 = vst [vmem:[#allocation12_spill] sm:$0xff] %v9192_v30  ;;  %v9194_v63 = vpop.f32.mrb[137].mxu0  ;;  %v1997_v36 = vadd.f32 %v1874_v33, %v1567_v29  ;;  %7626 = vmatprep.mubr.msk.f32.mxu1 %vm966_vm1, %v4103_v3  ;;  %7955 = vmatpush3.bf16.msra.mxu1 %v7952_v15  ;;  %v1572_v15 = vld [vmem:[#allocation3 + $0x98] sm:$0xff] }
 0x29b   : > { %9956 = vst [vmem:[#allocation13_spill] sm:$0xff] %v9194_v63  ;;  %2034 = vst.msk [vmem:[#allocation3 + $0x78] sm:$0xff] %vm966_vm1, %v1998_v7  ;;  %v4106_v3 = vld [vmem:[#allocation2 + $0x5c] sm:$0xff] }
 0x29c   : > { %2033 = vst.msk [vmem:[#allocation3 + $0x70] sm:$0xff] %vm966_vm1, %v1997_v36  ;;  %v7336_v52 = vpop.f32.mrb[52].mxu1 }
 0x29d   : > { %v9200_v18 = vpop.f32.mrb[138].mxu0  ;;  %v2000_v59 = vadd.f32 %v7336_v52, %v1570_v57  ;;  %v1884_v30 = vpop.f32.mrb[53].mxu1  ;;  %7627 = vmatmul.mubr.msk.f32.gmra.mrb[158].mxu1 %vm966_vm1, %v4104_v24  ;;  %v1571_v57 = vld [vmem:[#allocation3 + $0x90] sm:$0xff]  ;;  %v4107_v24 = vld [vmem:[#allocation2 + $0x64] sm:$0xff] }
 0x29e   : > { %9957 = vst [vmem:[#allocation14_spill] sm:$0xff] %v9200_v18  ;;  %v9202_v63 = vpop.f32.mrb[139].mxu0  ;;  %v1999_v29 = vadd.f32 %v1884_v30, %v1569_v2  ;;  %7629 = vmatprep.mubr.msk.f32.mxu1 %vm966_vm1, %v4105_v58 }
 0x29f   : > { %9958 = vst [vmem:[#allocation15_spill] sm:$0xff] %v9202_v63  ;;  %2036 = vst.msk [vmem:[#allocation3 + $0x88] sm:$0xff] %vm966_vm1, %v2000_v59  ;;  %v1574_v59 = vld [vmem:[#allocation3 + $0xa8] sm:$0xff] }
 0x2a0   : > { %2035 = vst.msk [vmem:[#allocation3 + $0x80] sm:$0xff] %vm966_vm1, %v1999_v29  ;;  %v7339_v7 = vpop.f32.mrb[54].mxu1  ;;  %v4108_v29 = vld [vmem:[#allocation2 + $0x6c] sm:$0xff] }
 0x2a1   : > { %v9208_v33 = vpop.f32.mrb[140].mxu0  ;;  %v2002_v36 = vadd.f32 %v7339_v7, %v1572_v15  ;;  %v1894_v52 = vpop.f32.mrb[55].mxu1  ;;  %7630 = vmatmul.mubr.msk.f32.gmra.mrb[160].mxu1 %vm966_vm1, %v4106_v3  ;;  %v1573_v7 = vld [vmem:[#allocation3 + $0xa0] sm:$0xff]  ;;  %v4109_v3 = vld [vmem:[#allocation2 + $0x74] sm:$0xff] }
 0x2a2   : > { %9959 = vst [vmem:[#allocation16_spill] sm:$0xff] %v9208_v33  ;;  %v9210_v18 = vpop.f32.mrb[141].mxu0  ;;  %v2001_v30 = vadd.f32 %v1894_v52, %v1571_v57  ;;  %7632 = vmatprep.mubr.msk.f32.mxu1 %vm966_vm1, %v4107_v24 }
 0x2a3   : > { %9960 = vst [vmem:[#allocation17_spill] sm:$0xff] %v9210_v18  ;;  %2038 = vst.msk [vmem:[#allocation3 + $0x98] sm:$0xff] %vm966_vm1, %v2002_v36  ;;  %v1576_v36 = vld [vmem:[#allocation3 + $0xb8] sm:$0xff]  ;;  %v2061_v18 = vld [vmem:[#allocation3 + $0x30] sm:$0xff] }
 0x2a4   : > { %2037 = vst.msk [vmem:[#allocation3 + $0x90] sm:$0xff] %vm966_vm1, %v2001_v30  ;;  %v7342_v2 = vpop.f32.mrb[56].mxu1  ;;  %v4110_v30 = vld [vmem:[#allocation2 + $0x7c] sm:$0xff] }
 0x2a5   : > { %v9216_v58 = vpop.f32.mrb[142].mxu0  ;;  %v2004_v15 = vadd.f32 %v7342_v2, %v1574_v59  ;;  %v1904_v33 = vpop.f32.mrb[57].mxu1  ;;  %7633 = vmatmul.mubr.msk.f32.gmra.mrb[162].mxu1 %vm966_vm1, %v4108_v29  ;;  %v1575_v2 = vld [vmem:[#allocation3 + $0xb0] sm:$0xff]  ;;  %v4111_v29 = vld [vmem:[#allocation2 + $0x84] sm:$0xff] }
 0x2a6   : > { %9961 = vst [vmem:[#allocation18_spill] sm:$0xff] %v9216_v58  ;;  %v9218_v63 = vpop.f32.mrb[143].mxu0  ;;  %v2003_v57 = vadd.f32 %v1904_v33, %v1573_v7  ;;  %7635 = vmatprep.mubr.msk.f32.mxu1 %vm966_vm1, %v4109_v3 }
 0x2a7   : > { %9962 = vst [vmem:[#allocation19_spill] sm:$0xff] %v9218_v63  ;;  %2040 = vst.msk [vmem:[#allocation3 + $0xa8] sm:$0xff] %vm966_vm1, %v2004_v15  ;;  %v1578_v15 = vld [vmem:[#allocation3 + $0xc8] sm:$0xff] }
 0x2a8   : > { %2039 = vst.msk [vmem:[#allocation3 + $0xa0] sm:$0xff] %vm966_vm1, %v2003_v57  ;;  %v7345_v52 = vpop.f32.mrb[58].mxu1  ;;  %v4112_v57 = vld [vmem:[#allocation2 + $0x8c] sm:$0xff] }
 0x2a9   : > { %v9224_v24 = vpop.f32.mrb[144].mxu0  ;;  %v2006_v59 = vadd.f32 %v7345_v52, %v1576_v36  ;;  %v1914_v58 = vpop.f32.mrb[59].mxu1  ;;  %7636 = vmatmul.mubr.msk.f32.gmra.mrb[164].mxu1 %vm966_vm1, %v4110_v30  ;;  %v1577_v52 = vld [vmem:[#allocation3 + $0xc0] sm:$0xff] }
 0x2aa   : > { %9963 = vst [vmem:[#allocation20_spill] sm:$0xff] %v9224_v24  ;;  %v9227_v63 = vpop.f32.mrb[145].mxu0  ;;  %v2005_v33 = vadd.f32 %v1914_v58, %v1575_v2  ;;  %7638 = vmatprep.mubr.msk.f32.mxu1 %vm966_vm1, %v4111_v29 }
 0x2ab   : > { %9964 = vst [vmem:[#allocation21_spill] sm:$0xff] %v9227_v63  ;;  %2042 = vst.msk [vmem:[#allocation3 + $0xb8] sm:$0xff] %vm966_vm1, %v2006_v59  ;;  %v4113_v63 = vld [vmem:[#allocation2 + $0x94] sm:$0xff]  ;;  %v1580_v59 = vld [vmem:[#allocation3 + $0xd8] sm:$0xff] }
 0x2ac   : > { %2041 = vst.msk [vmem:[#allocation3 + $0xb0] sm:$0xff] %vm966_vm1, %v2005_v33  ;;  %v7348_v7 = vpop.f32.mrb[60].mxu1  ;;  %v4114_v33 = vld [vmem:[#allocation2 + $0x9c] sm:$0xff] }
 0x2ad   : > { %v9232_v3 = vpop.f32.mrb[146].mxu0  ;;  %v2008_v36 = vadd.f32 %v7348_v7, %v1578_v15  ;;  %v1924_v24 = vpop.f32.mrb[61].mxu1  ;;  %7639 = vmatmul.mubr.msk.f32.gmra.mrb[166].mxu1 %vm966_vm1, %v4112_v57  ;;  %v1579_v7 = vld [vmem:[#allocation3 + $0xd0] sm:$0xff] }
 0x2ae   : > { %9965 = vst [vmem:[#allocation22_spill] sm:$0xff] %v9232_v3  ;;  %v9235_v30 = vpop.f32.mrb[147].mxu0  ;;  %v2007_v58 = vadd.f32 %v1924_v24, %v1577_v52  ;;  %7641 = vmatprep.mubr.msk.f32.mxu1 %vm966_vm1, %v4113_v63  ;;  %v1582_v63 = vld [vmem:[#allocation3 + $0xe8] sm:$0xff] }
 0x2af   : > { %9966 = vst [vmem:[#allocation23_spill] sm:$0xff] %v9235_v30  ;;  %2044 = vst.msk [vmem:[#allocation3 + $0xc8] sm:$0xff] %vm966_vm1, %v2008_v36  ;;  %v4115_v30 = vld [vmem:[#allocation2 + $0xa4] sm:$0xff] }
 0x2b0   : > { %2043 = vst.msk [vmem:[#allocation3 + $0xc0] sm:$0xff] %vm966_vm1, %v2007_v58  ;;  %v7351_v2 = vpop.f32.mrb[62].mxu1  ;;  %v4116_v58 = vld [vmem:[#allocation2 + $0xac] sm:$0xff] }
 0x2b1   : > { %v9240_v29 = vpop.f32.mrb[148].mxu0  ;;  %v2010_v15 = vadd.f32 %v7351_v2, %v1580_v59  ;;  %v1934_v3 = vpop.f32.mrb[63].mxu1  ;;  %7642 = vmatmul.mubr.msk.f32.gmra.mrb[168].mxu1 %vm966_vm1, %v4114_v33  ;;  %v1581_v2 = vld [vmem:[#allocation3 + $0xe0] sm:$0xff] }
 0x2b2   : > { %9967 = vst [vmem:[#allocation24_spill] sm:$0xff] %v9240_v29  ;;  %v9243_v57 = vpop.f32.mrb[149].mxu0  ;;  %v2009_v24 = vadd.f32 %v1934_v3, %v1579_v7  ;;  %7644 = vmatprep.mubr.msk.f32.mxu1 %vm966_vm1, %v4115_v30  ;;  %v1584_v30 = vld [vmem:[#allocation3 + $0xf8] sm:$0xff] }
 0x2b3   : > { %9968 = vst [vmem:[#allocation25_spill] sm:$0xff] %v9243_v57  ;;  %2046 = vst.msk [vmem:[#allocation3 + $0xd8] sm:$0xff] %vm966_vm1, %v2010_v15  ;;  %v4117_v57 = vld [vmem:[#allocation2 + $0xb4] sm:$0xff] }
 0x2b4   : > { %2045 = vst.msk [vmem:[#allocation3 + $0xd0] sm:$0xff] %vm966_vm1, %v2009_v24  ;;  %v7354_v36 = vpop.f32.mrb[64].mxu1  ;;  %v4118_v24 = vld [vmem:[#allocation2 + $0xbc] sm:$0xff] }
 0x2b5   : > { %v9248_v52 = vpop.f32.mrb[150].mxu0  ;;  %v2012_v59 = vadd.f32 %v7354_v36, %v1582_v63  ;;  %v1944_v29 = vpop.f32.mrb[65].mxu1  ;;  %7645 = vmatmul.mubr.msk.f32.gmra.mrb[170].mxu1 %vm966_vm1, %v4116_v58  ;;  %v1583_v36 = vld [vmem:[#allocation3 + $0xf0] sm:$0xff] }
 0x2b6   : > { %9969 = vst [vmem:[#allocation26_spill] sm:$0xff] %v9248_v52  ;;  %v9251_v33 = vpop.f32.mrb[151].mxu0  ;;  %v2011_v3 = vadd.f32 %v1944_v29, %v1581_v2  ;;  %7647 = vmatprep.mubr.msk.f32.mxu1 %vm966_vm1, %v4117_v57  ;;  %v1586_v57 = vld [vmem:[#allocation3 + $0x108] sm:$0xff] }
 0x2b7   : > { %9970 = vst [vmem:[#allocation27_spill] sm:$0xff] %v9251_v33  ;;  %2048 = vst.msk [vmem:[#allocation3 + $0xe8] sm:$0xff] %vm966_vm1, %v2012_v59  ;;  %v4119_v33 = vld [vmem:[#allocation2 + $0xc4] sm:$0xff] }
 0x2b8   : > { %2047 = vst.msk [vmem:[#allocation3 + $0xe0] sm:$0xff] %vm966_vm1, %v2011_v3  ;;  %v7357_v15 = vpop.f32.mrb[66].mxu1  ;;  %v4120_v3 = vld [vmem:[#allocation2 + $0xcc] sm:$0xff] }
 0x2b9   : > { %v9256_v7 = vpop.f32.mrb[152].mxu0  ;;  %v2014_v63 = vadd.f32 %v7357_v15, %v1584_v30  ;;  %v1954_v52 = vpop.f32.mrb[67].mxu1  ;;  %7648 = vmatmul.mubr.msk.f32.gmra.mrb[172].mxu1 %vm966_vm1, %v4118_v24  ;;  %v1585_v15 = vld [vmem:[#allocation3 + $0x100] sm:$0xff] }
 0x2ba   : > { %9971 = vst [vmem:[#allocation28_spill] sm:$0xff] %v9256_v7  ;;  %v9259_v58 = vpop.f32.mrb[153].mxu0  ;;  %v2013_v29 = vadd.f32 %v1954_v52, %v1583_v36  ;;  %7650 = vmatprep.mubr.msk.f32.mxu1 %vm966_vm1, %v4119_v33  ;;  %v1588_v33 = vld [vmem:[#allocation3 + $0x118] sm:$0xff] }
 0x2bb   : > { %9972 = vst [vmem:[#allocation29_spill] sm:$0xff] %v9259_v58  ;;  %2050 = vst.msk [vmem:[#allocation3 + $0xf8] sm:$0xff] %vm966_vm1, %v2014_v63  ;;  %v4121_v58 = vld [vmem:[#allocation2 + $0xd4] sm:$0xff] }
 0x2bc   : > { %2049 = vst.msk [vmem:[#allocation3 + $0xf0] sm:$0xff] %vm966_vm1, %v2013_v29  ;;  %v7360_v59 = vpop.f32.mrb[68].mxu1  ;;  %v4122_v29 = vld [vmem:[#allocation2 + $0xdc] sm:$0xff] }
 0x2bd   : > { %v9264_v2 = vpop.f32.mrb[154].mxu0  ;;  %v2016_v30 = vadd.f32 %v7360_v59, %v1586_v57  ;;  %v1964_v7 = vpop.f32.mrb[69].mxu1  ;;  %7651 = vmatmul.mubr.msk.f32.gmra.mrb[174].mxu1 %vm966_vm1, %v4120_v3  ;;  %v1587_v59 = vld [vmem:[#allocation3 + $0x110] sm:$0xff] }
 0x2be   : > { %9973 = vst [vmem:[#allocation30_spill] sm:$0xff] %v9264_v2  ;;  %v9267_v24 = vpop.f32.mrb[155].mxu0  ;;  %v2015_v52 = vadd.f32 %v1964_v7, %v1585_v15  ;;  %7653 = vmatprep.mubr.msk.f32.mxu1 %vm966_vm1, %v4121_v58  ;;  %v2056_v58 = vld [vmem:[#allocation3 + $0x8] sm:$0xff] }
 0x2bf   : > { %9974 = vst [vmem:[#allocation31_spill] sm:$0xff] %v9267_v24  ;;  %2052 = vst.msk [vmem:[#allocation3 + $0x108] sm:$0xff] %vm966_vm1, %v2016_v30  ;;  %v4123_v24 = vld [vmem:[#allocation2 + $0xe4] sm:$0xff] }
 0x2c0   : > { %2051 = vst.msk [vmem:[#allocation3 + $0x100] sm:$0xff] %vm966_vm1, %v2015_v52  ;;  %v7363_v63 = vpop.f32.mrb[70].mxu1  ;;  %v4124_v52 = vld [vmem:[#allocation2 + $0xec] sm:$0xff] }
 0x2c1   : > { %v9272_v36 = vpop.f32.mrb[156].mxu0  ;;  %v2018_v57 = vadd.f32 %v7363_v63, %v1588_v33  ;;  %v1974_v2 = vpop.f32.mrb[71].mxu1  ;;  %7654 = vmatmul.mubr.msk.f32.gmra.mrb[176].mxu1 %vm966_vm1, %v4122_v29  ;;  %v2055_v63 = vld [vmem:[#allocation3] sm:$0xff] }
 0x2c2   : > { %9975 = vst [vmem:[#allocation32_spill] sm:$0xff] %v9272_v36  ;;  %v9275_v3 = vpop.f32.mrb[157].mxu0  ;;  %v2017_v7 = vadd.f32 %v1974_v2, %v1587_v59  ;;  %7656 = vmatprep.mubr.msk.f32.mxu1 %vm966_vm1, %v4123_v24  ;;  %v2058_v24 = vld [vmem:[#allocation3 + $0x18] sm:$0xff] }
 0x2c3   : > { %9976 = vst [vmem:[#allocation33_spill] sm:$0xff] %v9275_v3  ;;  %2054 = vst.msk [vmem:[#allocation3 + $0x118] sm:$0xff] %vm966_vm1, %v2018_v57  ;;  %v4125_v3 = vld [vmem:[#allocation2 + $0xf4] sm:$0xff] }
 0x2c4   : > { %2053 = vst.msk [vmem:[#allocation3 + $0x110] sm:$0xff] %vm966_vm1, %v2017_v7  ;;  %v7374_v30 = vpop.f32.mrb[72].mxu1  ;;  %v4126_v7 = vld [vmem:[#allocation2 + $0xfc] sm:$0xff] }
 0x2c5   : > { %v9280_v15 = vpop.f32.mrb[158].mxu0  ;;  %v2486_v33 = vadd.f32 %v7374_v30, %v2056_v58  ;;  %v2306_v36 = vpop.f32.mrb[73].mxu1  ;;  %7657 = vmatmul.mubr.msk.f32.gmra.mrb[178].mxu1 %vm966_vm1, %v4124_v52  ;;  %v2057_v30 = vld [vmem:[#allocation3 + $0x10] sm:$0xff] }
 0x2c6   : > { %9977 = vst [vmem:[#allocation34_spill] sm:$0xff] %v9280_v15  ;;  %v9283_v29 = vpop.f32.mrb[159].mxu0  ;;  %v2485_v2 = vadd.f32 %v2306_v36, %v2055_v63  ;;  %7659 = vmatprep.mubr.msk.f32.mxu1 %vm966_vm1, %v4125_v3  ;;  %v2060_v3 = vld [vmem:[#allocation3 + $0x28] sm:$0xff] }
 0x2c7   : > { %9978 = vst [vmem:[#allocation35_spill] sm:$0xff] %v9283_v29  ;;  %2522 = vst.msk [vmem:[#allocation3 + $0x8] sm:$0xff] %vm966_vm1, %v2486_v33  ;;  %v4127_v29 = vld [vmem:[#allocation2 + $0x104] sm:$0xff] }
 0x2c8   : > { %2521 = vst.msk [vmem:[#allocation3] sm:$0xff] %vm966_vm1, %v2485_v2  ;;  %v7377_v57 = vpop.f32.mrb[74].mxu1  ;;  %v4128_v2 = vld [vmem:[#allocation2 + $0x10c] sm:$0xff] }
 0x2c9   : > { %v9288_v59 = vpop.f32.mrb[160].mxu0  ;;  %v2488_v58 = vadd.f32 %v7377_v57, %v2058_v24  ;;  %v2316_v15 = vpop.f32.mrb[75].mxu1  ;;  %7660 = vmatmul.mubr.msk.f32.gmra.mrb[180].mxu1 %vm966_vm1, %v4126_v7  ;;  %v2059_v57 = vld [vmem:[#allocation3 + $0x20] sm:$0xff] }
 0x2ca   : > { %9979 = vst [vmem:[#allocation36_spill] sm:$0xff] %v9288_v59  ;;  %v9291_v52 = vpop.f32.mrb[161].mxu0  ;;  %v2487_v36 = vadd.f32 %v2316_v15, %v2057_v30  ;;  %7662 = vmatprep.mubr.msk.f32.mxu1 %vm966_vm1, %v4127_v29 }
 0x2cb   : > { %9980 = vst [vmem:[#allocation37_spill] sm:$0xff] %v9291_v52  ;;  %2524 = vst.msk [vmem:[#allocation3 + $0x18] sm:$0xff] %vm966_vm1, %v2488_v58  ;;  %v4129_v52 = vld [vmem:[#allocation2 + $0x114] sm:$0xff] }
 0x2cc   : > { %2523 = vst.msk [vmem:[#allocation3 + $0x10] sm:$0xff] %vm966_vm1, %v2487_v36  ;;  %v7380_v33 = vpop.f32.mrb[76].mxu1  ;;  %v2062_v36 = vld [vmem:[#allocation3 + $0x38] sm:$0xff] }
 0x2cd   : > { %v9296_v63 = vpop.f32.mrb[162].mxu0  ;;  %v2490_v24 = vadd.f32 %v7380_v33, %v2060_v3  ;;  %v2326_v59 = vpop.f32.mrb[77].mxu1  ;;  %7663 = vmatmul.mubr.msk.f32.gmra.mrb[182].mxu1 %vm966_vm1, %v4128_v2 }
 0x2ce   : > { %9981 = vst [vmem:[#allocation38_spill] sm:$0xff] %v9296_v63  ;;  %v9299_v7 = vpop.f32.mrb[163].mxu0  ;;  %v2489_v15 = vadd.f32 %v2326_v59, %v2059_v57  ;;  %7665 = vmatprep.mubr.msk.f32.mxu1 %vm966_vm1, %v4129_v52  ;;  %v2558_v29 = vld [vmem:[#allocation3 + $0x8] sm:$0xff]  ;;  %v4130_v63 = vld [vmem:[#allocation2 + $0x11c] sm:$0xff] }
 0x2cf   : > { %9982 = vst [vmem:[#allocation39_spill] sm:$0xff] %v9299_v7  ;;  %2526 = vst.msk [vmem:[#allocation3 + $0x28] sm:$0xff] %vm966_vm1, %v2490_v24  ;;  %v2988_v58 = vadd.f32 %v8905_v44, %v2558_v29  ;;  %v2557_v30 = vld [vmem:[#allocation3] sm:$0xff]  ;;  %v2064_v29 = vld [vmem:[#allocation3 + $0x48] sm:$0xff] }
 0x2d0   : > { %2525 = vst.msk [vmem:[#allocation3 + $0x20] sm:$0xff] %vm966_vm1, %v2489_v15  ;;  %v7383_v3 = vpop.f32.mrb[78].mxu1  ;;  %v2987_v2 = vadd.f32 %v8908_v37, %v2557_v30  ;;  %v4131_v24 = vld [vmem:[#allocation2 + $0x124] sm:$0xff] }
 0x2d1   : > { %v9305_v33 = vpop.f32.mrb[164].mxu0  ;;  %v2492_v7 = vadd.f32 %v7383_v3, %v2062_v36  ;;  %v2336_v59 = vpop.f32.mrb[79].mxu1  ;;  %7666 = vmatmul.mubr.msk.f32.gmra.mrb[184].mxu1 %vm966_vm1, %v4130_v63  ;;  %3024 = vst.msk [vmem:[#allocation3 + $0x8] sm:$0xff] %vm966_vm1, %v2988_v58  ;;  %v4132_v36 = vld [vmem:[#allocation2 + $0x12c] sm:$0xff] }
 0x2d2   : > { %v9309_v52 = vpop.f32.mrb[165].mxu0  ;;  %v2491_v44 = vadd.f32 %v2336_v59, %v2061_v18  ;;  %7668 = vmatprep.mubr.msk.f32.mxu1 %vm966_vm1, %v4131_v24  ;;  %3023 = vst.msk [vmem:[#allocation3] sm:$0xff] %vm966_vm1, %v2987_v2  ;;  %v2560_v57 = vld [vmem:[#allocation3 + $0x18] sm:$0xff]  ;;  %v2063_v3 = vld [vmem:[#allocation3 + $0x40] sm:$0xff] }
 0x2d3   : > { %2528 = vst.msk [vmem:[#allocation3 + $0x38] sm:$0xff] %vm966_vm1, %v2492_v7  ;;  %v2990_v37 = vadd.f32 %v8919_v51, %v2560_v57  ;;  %v2559_v15 = vld [vmem:[#allocation3 + $0x10] sm:$0xff]  ;;  %v2066_v57 = vld [vmem:[#allocation3 + $0x58] sm:$0xff] }
 0x2d4   : > { %2527 = vst.msk [vmem:[#allocation3 + $0x30] sm:$0xff] %vm966_vm1, %v2491_v44  ;;  %v7386_v63 = vpop.f32.mrb[80].mxu1  ;;  %v2989_v58 = vadd.f32 %v8922_v54, %v2559_v15  ;;  %v4133_v7 = vld [vmem:[#allocation2 + $0x134] sm:$0xff] }
 0x2d5   : > { %v9317_v30 = vpop.f32.mrb[166].mxu0  ;;  %v2494_v18 = vadd.f32 %v7386_v63, %v2064_v29  ;;  %v2346_v59 = vpop.f32.mrb[81].mxu1  ;;  %7669 = vmatmul.mubr.msk.f32.gmra.mrb[186].mxu1 %vm966_vm1, %v4132_v36  ;;  %3026 = vst.msk [vmem:[#allocation3 + $0x18] sm:$0xff] %vm966_vm1, %v2990_v37  ;;  %v4134_v63 = vld [vmem:[#allocation2 + $0x13c] sm:$0xff] }
 0x2d6   : > { %v9321_v2 = vpop.f32.mrb[167].mxu0  ;;  %v2493_v51 = vadd.f32 %v2346_v59, %v2063_v3  ;;  %7671 = vmatprep.mubr.msk.f32.mxu1 %vm966_vm1, %v4133_v7  ;;  %3025 = vst.msk [vmem:[#allocation3 + $0x10] sm:$0xff] %vm966_vm1, %v2989_v58  ;;  %v2562_v24 = vld [vmem:[#allocation3 + $0x28] sm:$0xff]  ;;  %v2065_v3 = vld [vmem:[#allocation3 + $0x50] sm:$0xff] }
 0x2d7   : > { %2530 = vst.msk [vmem:[#allocation3 + $0x48] sm:$0xff] %vm966_vm1, %v2494_v18  ;;  %v2992_v54 = vadd.f32 %v8933_v5, %v2562_v24  ;;  %v2561_v44 = vld [vmem:[#allocation3 + $0x20] sm:$0xff]  ;;  %v2068_v24 = vld [vmem:[#allocation3 + $0x68] sm:$0xff] }
 0x2d8   : > { %2529 = vst.msk [vmem:[#allocation3 + $0x40] sm:$0xff] %vm966_vm1, %v2493_v51  ;;  %v7389_v15 = vpop.f32.mrb[82].mxu1  ;;  %v2991_v37 = vadd.f32 %v8936_v9, %v2561_v44  ;;  %v5103_v18 = vld [vmem:[#allocation2 + $0x26] sm:$0xff] }
 0x2d9   : > { %v9329_v29 = vpop.f32.mrb[168].mxu0  ;;  %v2496_v36 = vadd.f32 %v7389_v15, %v2066_v57  ;;  %v2356_v59 = vpop.f32.mrb[83].mxu1  ;;  %7672 = vmatmul.mubr.msk.f32.gmra.mrb[188].mxu1 %vm966_vm1, %v4134_v63  ;;  %3028 = vst.msk [vmem:[#allocation3 + $0x28] sm:$0xff] %vm966_vm1, %v2992_v54  ;;  %v5104_v15 = vld [vmem:[#allocation2 + $0x2e] sm:$0xff] }
 0x2da   : > { %v9333_v58 = vpop.f32.mrb[169].mxu0  ;;  %v2495_v5 = vadd.f32 %v2356_v59, %v2065_v3  ;;  %7744 = vmatprep.mubr.msk.f32.mxu1 %vm966_vm1, %v5103_v18  ;;  %3027 = vst.msk [vmem:[#allocation3 + $0x20] sm:$0xff] %vm966_vm1, %v2991_v37  ;;  %v2564_v7 = vld [vmem:[#allocation3 + $0x38] sm:$0xff]  ;;  %v2067_v3 = vld [vmem:[#allocation3 + $0x60] sm:$0xff]  ;;  %v5105_v37 = vld [vmem:[#allocation2 + $0x36] sm:$0xff] }
 0x2db   : > { %2532 = vst.msk [vmem:[#allocation3 + $0x58] sm:$0xff] %vm966_vm1, %v2496_v36  ;;  %v2994_v9 = vadd.f32 %v8947_v25, %v2564_v7  ;;  %v2563_v51 = vld [vmem:[#allocation3 + $0x30] sm:$0xff]  ;;  %v2070_v7 = vld [vmem:[#allocation3 + $0x78] sm:$0xff] }
 0x2dc   : > { %2531 = vst.msk [vmem:[#allocation3 + $0x50] sm:$0xff] %vm966_vm1, %v2495_v5  ;;  %v7392_v44 = vpop.f32.mrb[84].mxu1  ;;  %v2993_v54 = vadd.f32 %v8950_v28, %v2563_v51 }
 0x2dd   : > { %v9341_v57 = vpop.f32.mrb[170].mxu0  ;;  %v2498_v63 = vadd.f32 %v7392_v44, %v2068_v24  ;;  %v2366_v59 = vpop.f32.mrb[85].mxu1  ;;  %7745 = vmatmul.mubr.msk.f32.vlgmr.msra.gmra.mrb[190].mxu1 %vm966_vm1, %v5104_v15  ;;  %3030 = vst.msk [vmem:[#allocation3 + $0x38] sm:$0xff] %vm966_vm1, %v2994_v9  ;;  %v5106_v44 = vld [vmem:[#allocation2 + $0x3e] sm:$0xff] }
 0x2de   : > { %v9344_v18 = vpop.f32.mrb[171].mxu0  ;;  %v2497_v25 = vadd.f32 %v2366_v59, %v2067_v3  ;;  %7747 = vmatprep.mubr.msk.f32.mxu1 %vm966_vm1, %v5105_v37  ;;  %3029 = vst.msk [vmem:[#allocation3 + $0x30] sm:$0xff] %vm966_vm1, %v2993_v54  ;;  %v2566_v36 = vld [vmem:[#allocation3 + $0x48] sm:$0xff]  ;;  %v2069_v3 = vld [vmem:[#allocation3 + $0x70] sm:$0xff]  ;;  %v5107_v54 = vld [vmem:[#allocation2 + $0x46] sm:$0xff] }
 0x2df   : > { %2534 = vst.msk [vmem:[#allocation3 + $0x68] sm:$0xff] %vm966_vm1, %v2498_v63  ;;  %v2996_v28 = vadd.f32 %v8960_v42, %v2566_v36  ;;  %v2565_v5 = vld [vmem:[#allocation3 + $0x40] sm:$0xff]  ;;  %v2072_v36 = vld [vmem:[#allocation3 + $0x88] sm:$0xff] }
 0x2e0   : > { %2533 = vst.msk [vmem:[#allocation3 + $0x60] sm:$0xff] %vm966_vm1, %v2497_v25  ;;  %v7395_v51 = vpop.f32.mrb[86].mxu1  ;;  %v2995_v9 = vadd.f32 %v8964_v43, %v2565_v5 }
 0x2e1   : > { %v9353_v24 = vpop.f32.mrb[172].mxu0  ;;  %v2500_v15 = vadd.f32 %v7395_v51, %v2070_v7  ;;  %v2376_v59 = vpop.f32.mrb[87].mxu1  ;;  %7748 = vmatmul.mubr.msk.f32.gmra.mrb[192].mxu1 %vm966_vm1, %v5106_v44  ;;  %3032 = vst.msk [vmem:[#allocation3 + $0x48] sm:$0xff] %vm966_vm1, %v2996_v28  ;;  %v5108_v51 = vld [vmem:[#allocation2 + $0x4e] sm:$0xff] }
 0x2e2   : > { %v9356_v37 = vpop.f32.mrb[173].mxu0  ;;  %v2499_v42 = vadd.f32 %v2376_v59, %v2069_v3  ;;  %7750 = vmatprep.mubr.msk.f32.mxu1 %vm966_vm1, %v5107_v54  ;;  %3031 = vst.msk [vmem:[#allocation3 + $0x40] sm:$0xff] %vm966_vm1, %v2995_v9  ;;  %v2568_v63 = vld [vmem:[#allocation3 + $0x58] sm:$0xff]  ;;  %v2071_v3 = vld [vmem:[#allocation3 + $0x80] sm:$0xff]  ;;  %v5109_v9 = vld [vmem:[#allocation2 + $0x56] sm:$0xff] }
 0x2e3   : > { %2536 = vst.msk [vmem:[#allocation3 + $0x78] sm:$0xff] %vm966_vm1, %v2500_v15  ;;  %v2998_v43 = vadd.f32 %v8974_v47, %v2568_v63  ;;  %v2567_v25 = vld [vmem:[#allocation3 + $0x50] sm:$0xff]  ;;  %v2074_v63 = vld [vmem:[#allocation3 + $0x98] sm:$0xff] }
 0x2e4   : > { %2535 = vst.msk [vmem:[#allocation3 + $0x70] sm:$0xff] %vm966_vm1, %v2499_v42  ;;  %v7398_v5 = vpop.f32.mrb[88].mxu1  ;;  %v2997_v28 = vadd.f32 %v8978_v55, %v2567_v25 }
 0x2e5   : > { %v9365_v7 = vpop.f32.mrb[174].mxu0  ;;  %v2502_v44 = vadd.f32 %v7398_v5, %v2072_v36  ;;  %v2386_v59 = vpop.f32.mrb[89].mxu1  ;;  %7751 = vmatmul.mubr.msk.f32.gmra.mrb[194].mxu1 %vm966_vm1, %v5108_v51  ;;  %3034 = vst.msk [vmem:[#allocation3 + $0x58] sm:$0xff] %vm966_vm1, %v2998_v43  ;;  %v5110_v5 = vld [vmem:[#allocation2 + $0x5e] sm:$0xff] }
 0x2e6   : > { %v9368_v54 = vpop.f32.mrb[175].mxu0  ;;  %v2501_v47 = vadd.f32 %v2386_v59, %v2071_v3  ;;  %7753 = vmatprep.mubr.msk.f32.mxu1 %vm966_vm1, %v5109_v9  ;;  %3033 = vst.msk [vmem:[#allocation3 + $0x50] sm:$0xff] %vm966_vm1, %v2997_v28  ;;  %v2570_v15 = vld [vmem:[#allocation3 + $0x68] sm:$0xff]  ;;  %v2073_v3 = vld [vmem:[#allocation3 + $0x90] sm:$0xff]  ;;  %v5111_v28 = vld [vmem:[#allocation2 + $0x66] sm:$0xff] }
 0x2e7   : > { %2538 = vst.msk [vmem:[#allocation3 + $0x88] sm:$0xff] %vm966_vm1, %v2502_v44  ;;  %v3000_v55 = vadd.f32 %v8985_v19, %v2570_v15  ;;  %v2569_v42 = vld [vmem:[#allocation3 + $0x60] sm:$0xff]  ;;  %v2076_v15 = vld [vmem:[#allocation3 + $0xa8] sm:$0xff] }
 0x2e8   : > { %2537 = vst.msk [vmem:[#allocation3 + $0x80] sm:$0xff] %vm966_vm1, %v2501_v47  ;;  %v7401_v25 = vpop.f32.mrb[90].mxu1  ;;  %v2999_v43 = vadd.f32 %v8988_v60, %v2569_v42 }
 0x2e9   : > { %v9377_v36 = vpop.f32.mrb[176].mxu0  ;;  %v2504_v51 = vadd.f32 %v7401_v25, %v2074_v63  ;;  %v2396_v59 = vpop.f32.mrb[91].mxu1  ;;  %7754 = vmatmul.mubr.msk.f32.gmra.mrb[196].mxu1 %vm966_vm1, %v5110_v5  ;;  %3036 = vst.msk [vmem:[#allocation3 + $0x68] sm:$0xff] %vm966_vm1, %v3000_v55  ;;  %v5112_v25 = vld [vmem:[#allocation2 + $0x6e] sm:$0xff] }
 0x2ea   : > { %v9380_v9 = vpop.f32.mrb[177].mxu0  ;;  %v2503_v19 = vadd.f32 %v2396_v59, %v2073_v3  ;;  %7756 = vmatprep.mubr.msk.f32.mxu1 %vm966_vm1, %v5111_v28  ;;  %3035 = vst.msk [vmem:[#allocation3 + $0x60] sm:$0xff] %vm966_vm1, %v2999_v43  ;;  %v2572_v44 = vld [vmem:[#allocation3 + $0x78] sm:$0xff]  ;;  %v2075_v3 = vld [vmem:[#allocation3 + $0xa0] sm:$0xff]  ;;  %v5113_v43 = vld [vmem:[#allocation2 + $0x76] sm:$0xff] }
 0x2eb   : > { %2540 = vst.msk [vmem:[#allocation3 + $0x98] sm:$0xff] %vm966_vm1, %v2504_v51  ;;  %v3002_v60 = vadd.f32 %v8995_v12, %v2572_v44  ;;  %v2571_v47 = vld [vmem:[#allocation3 + $0x70] sm:$0xff]  ;;  %v2078_v44 = vld [vmem:[#allocation3 + $0xb8] sm:$0xff] }
 0x2ec   : > { %2539 = vst.msk [vmem:[#allocation3 + $0x90] sm:$0xff] %vm966_vm1, %v2503_v19  ;;  %v7404_v42 = vpop.f32.mrb[92].mxu1  ;;  %v3001_v55 = vadd.f32 %v9004_v17, %v2571_v47 }
 0x2ed   : > { %v9389_v63 = vpop.f32.mrb[178].mxu0  ;;  %v2506_v5 = vadd.f32 %v7404_v42, %v2076_v15  ;;  %v2406_v59 = vpop.f32.mrb[93].mxu1  ;;  %7757 = vmatmul.mubr.msk.f32.gmra.mrb[198].mxu1 %vm966_vm1, %v5112_v25  ;;  %3038 = vst.msk [vmem:[#allocation3 + $0x78] sm:$0xff] %vm966_vm1, %v3002_v60  ;;  %v5114_v15 = vld [vmem:[#allocation2 + $0x7e] sm:$0xff] }
 0x2ee   : > { %v9392_v28 = vpop.f32.mrb[179].mxu0  ;;  %v2505_v12 = vadd.f32 %v2406_v59, %v2075_v3  ;;  %7759 = vmatprep.mubr.msk.f32.mxu1 %vm966_vm1, %v5113_v43  ;;  %3037 = vst.msk [vmem:[#allocation3 + $0x70] sm:$0xff] %vm966_vm1, %v3001_v55  ;;  %v2574_v51 = vld [vmem:[#allocation3 + $0x88] sm:$0xff]  ;;  %v2077_v60 = vld [vmem:[#allocation3 + $0xb0] sm:$0xff]  ;;  %v5115_v59 = vld [vmem:[#allocation2 + $0x86] sm:$0xff] }
 0x2ef   : > { %2542 = vst.msk [vmem:[#allocation3 + $0xa8] sm:$0xff] %vm966_vm1, %v2506_v5  ;;  %v3004_v17 = vadd.f32 %v9018_v31, %v2574_v51  ;;  %v2573_v19 = vld [vmem:[#allocation3 + $0x80] sm:$0xff] }
 0x2f0   : > { %2541 = vst.msk [vmem:[#allocation3 + $0xa0] sm:$0xff] %vm966_vm1, %v2505_v12  ;;  %v7407_v47 = vpop.f32.mrb[94].mxu1  ;;  %v3003_v42 = vadd.f32 %v9020_v32, %v2573_v19  ;;  %v2080_v32 = vld [vmem:[#allocation3 + $0xc8] sm:$0xff] }
 0x2f1   : > { %v2508_v25 = vadd.f32 %v7407_v47, %v2078_v44  ;;  %v2416_v3 = vpop.f32.mrb[95].mxu1  ;;  %7760 = vmatmul.mubr.msk.f32.gmra.mrb[200].mxu1 %vm966_vm1, %v5114_v15  ;;  %3040 = vst.msk [vmem:[#allocation3 + $0x88] sm:$0xff] %vm966_vm1, %v3004_v17  ;;  %v5116_v51 = vld [vmem:[#allocation2 + $0x8e] sm:$0xff]  ;;  %v5117_v15 = vld [vmem:[#allocation2 + $0x96] sm:$0xff] }
 0x2f2   : > { %v2507_v55 = vadd.f32 %v2416_v3, %v2077_v60  ;;  %7762 = vmatprep.mubr.msk.f32.mxu1 %vm966_vm1, %v5115_v59  ;;  %3039 = vst.msk [vmem:[#allocation3 + $0x80] sm:$0xff] %vm966_vm1, %v3003_v42  ;;  %v2576_v31 = vld [vmem:[#allocation3 + $0x98] sm:$0xff]  ;;  %v2079_v17 = vld [vmem:[#allocation3 + $0xc0] sm:$0xff] }
 0x2f3   : > { %2544 = vst.msk [vmem:[#allocation3 + $0xb8] sm:$0xff] %vm966_vm1, %v2508_v25  ;;  %v3006_v5 = vadd.f32 %v9028_v39, %v2576_v31  ;;  %v2575_v43 = vld [vmem:[#allocation3 + $0x90] sm:$0xff]  ;;  %v2082_v3 = vld [vmem:[#allocation3 + $0xd8] sm:$0xff] }
 0x2f4   : > { %2543 = vst.msk [vmem:[#allocation3 + $0xb0] sm:$0xff] %vm966_vm1, %v2507_v55  ;;  %v7410_v12 = vpop.f32.mrb[96].mxu1  ;;  %v3005_v19 = vadd.f32 %v9030_v41, %v2575_v43  ;;  %v5118_v25 = vld [vmem:[#allocation2 + $0x9e] sm:$0xff] }
 0x2f5   : > { %v2510_v44 = vadd.f32 %v7410_v12, %v2080_v32  ;;  %v2426_v47 = vpop.f32.mrb[97].mxu1  ;;  %7763 = vmatmul.mubr.msk.f32.gmra.mrb[202].mxu1 %vm966_vm1, %v5116_v51  ;;  %3042 = vst.msk [vmem:[#allocation3 + $0x98] sm:$0xff] %vm966_vm1, %v3006_v5  ;;  %v5641_v31 = vld [vmem:[%s9943_s4] sm:$0xff]  ;;  %v5642_v5 = vld [vmem:[%s9943_s4 + $0x8] sm:$0xff]  ;;  %v2081_v32 = vld [vmem:[#allocation3 + $0xd0] sm:$0xff] }
 0x2f6   : > { %v2509_v42 = vadd.f32 %v2426_v47, %v2079_v17  ;;  %7765 = vmatprep.mubr.msk.f32.mxu1 %vm966_vm1, %v5117_v15  ;;  %3041 = vst.msk [vmem:[#allocation3 + $0x90] sm:$0xff] %vm966_vm1, %v3005_v19  ;;  %v2578_v39 = vld [vmem:[#allocation3 + $0xa8] sm:$0xff]  ;;  %v7956_v51 = vpack.c.bf16 %v5642_v5, %v5641_v31  ;;  %v2086_v31 = vld [vmem:[#allocation3 + $0xf8] sm:$0xff] }
 0x2f7   : > { %2546 = vst.msk [vmem:[#allocation3 + $0xc8] sm:$0xff] %vm966_vm1, %v2510_v44  ;;  %v3008_v60 = vadd.f32 %v9044_v62, %v2578_v39  ;;  %v2577_v41 = vld [vmem:[#allocation3 + $0xa0] sm:$0xff]  ;;  %v2084_v47 = vld [vmem:[#allocation3 + $0xe8] sm:$0xff] }
 0x2f8   : > { %2545 = vst.msk [vmem:[#allocation3 + $0xc0] sm:$0xff] %vm966_vm1, %v2509_v42  ;;  %v7413_v59 = vpop.f32.mrb[98].mxu1  ;;  %v3007_v55 = vadd.f32 %v9052_v61, %v2577_v41  ;;  %v5119_v62 = vld [vmem:[#allocation2 + $0xa6] sm:$0xff]  ;;  %7957 = vmatprep.subr.bf16.mxu0 %v7956_v51  ;;  %v5120_v42 = vld [vmem:[#allocation2 + $0xae] sm:$0xff] }
 0x2f9   : > { %v2512_v43 = vadd.f32 %v7413_v59, %v2082_v3  ;;  %v2436_v12 = vpop.f32.mrb[99].mxu1  ;;  %7766 = vmatmul.mubr.msk.f32.gmra.mrb[204].mxu1 %vm966_vm1, %v5118_v25  ;;  %3044 = vst.msk [vmem:[#allocation3 + $0xa8] sm:$0xff] %vm966_vm1, %v3008_v60  ;;  %7959 = vmatpush3.bf16.msra.mxu0 %v7956_v51  ;;  %v2083_v60 = vld [vmem:[#allocation3 + $0xe0] sm:$0xff]  ;;  %v5121_v3 = vld [vmem:[#allocation2 + $0xb6] sm:$0xff] }
 0x2fa   : > { %v2511_v19 = vadd.f32 %v2436_v12, %v2081_v32  ;;  %7768 = vmatprep.mubr.msk.f32.mxu1 %vm966_vm1, %v5119_v62  ;;  %3043 = vst.msk [vmem:[#allocation3 + $0xa0] sm:$0xff] %vm966_vm1, %v3007_v55  ;;  %v2580_v61 = vld [vmem:[#allocation3 + $0xb8] sm:$0xff]  ;;  %v2085_v62 = vld [vmem:[#allocation3 + $0xf0] sm:$0xff] }
 0x2fb   : > { %2548 = vst.msk [vmem:[#allocation3 + $0xd8] sm:$0xff] %vm966_vm1, %v2512_v43  ;;  %v3010_v44 = vadd.f32 %v9063_v16, %v2580_v61  ;;  %v2579_v17 = vld [vmem:[#allocation3 + $0xb0] sm:$0xff] }
 0x2fc   : > { %2547 = vst.msk [vmem:[#allocation3 + $0xd0] sm:$0xff] %vm966_vm1, %v2511_v19  ;;  %v7416_v15 = vpop.f32.mrb[100].mxu1  ;;  %v3009_v39 = vadd.f32 %v9065_v20, %v2579_v17  ;;  %v5122_v43 = vld [vmem:[#allocation2 + $0xbe] sm:$0xff]  ;;  %v5123_v19 = vld [vmem:[#allocation2 + $0xc6] sm:$0xff] }
 0x2fd   : > { %v2514_v25 = vadd.f32 %v7416_v15, %v2084_v47  ;;  %v2446_v41 = vpop.f32.mrb[101].mxu1  ;;  %7769 = vmatmul.mubr.msk.f32.gmra.mrb[206].mxu1 %vm966_vm1, %v5120_v42  ;;  %3046 = vst.msk [vmem:[#allocation3 + $0xb8] sm:$0xff] %vm966_vm1, %v3010_v44  ;;  %v2087_v47 = vld [vmem:[#allocation3 + $0x100] sm:$0xff]  ;;  %v5125_v42 = vld [vmem:[#allocation2 + $0xd6] sm:$0xff] }
 0x2fe   : > { %v2513_v59 = vadd.f32 %v2446_v41, %v2083_v60  ;;  %7771 = vmatprep.mubr.msk.f32.mxu1 %vm966_vm1, %v5121_v3  ;;  %3045 = vst.msk [vmem:[#allocation3 + $0xb0] sm:$0xff] %vm966_vm1, %v3009_v39  ;;  %v2582_v16 = vld [vmem:[#allocation3 + $0xc8] sm:$0xff]  ;;  %v5126_v41 = vld [vmem:[#allocation2 + $0xde] sm:$0xff] }
 0x2ff   : > { %2550 = vst.msk [vmem:[#allocation3 + $0xe8] sm:$0xff] %vm966_vm1, %v2514_v25  ;;  %v3012_v55 = vadd.f32 %v9073_v34, %v2582_v16  ;;  %v2581_v20 = vld [vmem:[#allocation3 + $0xc0] sm:$0xff]  ;;  %v2088_v34 = vld [vmem:[#allocation3 + $0x108] sm:$0xff]  ;;  %v2090_v25 = vld [vmem:[#allocation3 + $0x118] sm:$0xff] }
 0x300   : > { %2549 = vst.msk [vmem:[#allocation3 + $0xe0] sm:$0xff] %vm966_vm1, %v2513_v59  ;;  %v7419_v5 = vpop.f32.mrb[102].mxu1  ;;  %v3011_v32 = vadd.f32 %v9075_v35, %v2581_v20  ;;  %v5124_v35 = vld [vmem:[#allocation2 + $0xce] sm:$0xff]  ;;  %v2089_v59 = vld [vmem:[#allocation3 + $0x110] sm:$0xff] }
 0x301   : > { %v2516_v12 = vadd.f32 %v7419_v5, %v2086_v31  ;;  %v2456_v51 = vpop.f32.mrb[103].mxu1  ;;  %7772 = vmatmul.mubr.msk.f32.gmra.mrb[208].mxu1 %vm966_vm1, %v5122_v43  ;;  %3048 = vst.msk [vmem:[#allocation3 + $0xc8] sm:$0xff] %vm966_vm1, %v3012_v55  ;;  %v5127_v55 = vld [vmem:[#allocation2 + $0xe6] sm:$0xff]  ;;  %v5128_v43 = vld [vmem:[#allocation2 + $0xee] sm:$0xff] }
 0x302   : > { %v2515_v61 = vadd.f32 %v2456_v51, %v2085_v62  ;;  %7774 = vmatprep.mubr.msk.f32.mxu1 %vm966_vm1, %v5123_v19  ;;  %3047 = vst.msk [vmem:[#allocation3 + $0xc0] sm:$0xff] %vm966_vm1, %v3011_v32  ;;  %v2584_v31 = vld [vmem:[#allocation3 + $0xd8] sm:$0xff]  ;;  %v5129_v51 = vld [vmem:[#allocation2 + $0xf6] sm:$0xff] }
 0x303   : > { %2552 = vst.msk [vmem:[#allocation3 + $0xf8] sm:$0xff] %vm966_vm1, %v2516_v12  ;;  %v2583_v12 = vld [vmem:[#allocation3 + $0xd0] sm:$0xff] }
 0x304   : > { %2551 = vst.msk [vmem:[#allocation3 + $0xf0] sm:$0xff] %vm966_vm1, %v2515_v61  ;;  %v7422_v44 = vpop.f32.mrb[104].mxu1 }
 0x305   : > { %v2518_v17 = vadd.f32 %v7422_v44, %v2088_v34  ;;  %v2466_v15 = vpop.f32.mrb[105].mxu1  ;;  %7775 = vmatmul.mubr.msk.f32.gmra.mrb[210].mxu1 %vm966_vm1, %v5124_v35  ;;  %v5130_v44 = vld [vmem:[#allocation2 + $0xfe] sm:$0xff] }
 0x306   : > { %v2517_v39 = vadd.f32 %v2466_v15, %v2087_v47  ;;  %7777 = vmatprep.mubr.msk.f32.mxu1 %vm966_vm1, %v5125_v42  ;;  %v2586_v61 = vld [vmem:[#allocation3 + $0xe8] sm:$0xff]  ;;  %v5131_v15 = vld [vmem:[#allocation2 + $0x106] sm:$0xff] }
 0x307   : > { %2554 = vst.msk [vmem:[#allocation3 + $0x108] sm:$0xff] %vm966_vm1, %v2518_v17  ;;  %v2585_v17 = vld [vmem:[#allocation3 + $0xe0] sm:$0xff] }
 0x308   : > { %2553 = vst.msk [vmem:[#allocation3 + $0x100] sm:$0xff] %vm966_vm1, %v2517_v39  ;;  %v7425_v60 = vpop.f32.mrb[106].mxu1 }
 0x309   : > { %v2520_v3 = vadd.f32 %v7425_v60, %v2090_v25  ;;  %v2476_v16 = vpop.f32.mrb[107].mxu1  ;;  %7778 = vmatmul.mubr.msk.f32.gmra.mrb[212].mxu1 %vm966_vm1, %v5126_v41  ;;  %v5132_v60 = vld [vmem:[#allocation2 + $0x10e] sm:$0xff] }
 0x30a   : > { %v2519_v20 = vadd.f32 %v2476_v16, %v2089_v59  ;;  %7780 = vmatprep.mubr.msk.f32.mxu1 %vm966_vm1, %v5127_v55  ;;  %v2588_v39 = vld [vmem:[#allocation3 + $0xf8] sm:$0xff]  ;;  %v5133_v16 = vld [vmem:[#allocation2 + $0x116] sm:$0xff] }
 0x30b   : > { %2556 = vst.msk [vmem:[#allocation3 + $0x118] sm:$0xff] %vm966_vm1, %v2520_v3  ;;  %v2587_v3 = vld [vmem:[#allocation3 + $0xf0] sm:$0xff] }
 0x30c   : > { %2555 = vst.msk [vmem:[#allocation3 + $0x110] sm:$0xff] %vm966_vm1, %v2519_v20  ;;  %v7475_v5 = vpop.f32.mrb[108].mxu1 }
 0x30d   : > { %v3014_v32 = vadd.f32 %v7475_v5, %v2584_v31  ;;  %v2938_v62 = vpop.f32.mrb[109].mxu1  ;;  %7781 = vmatmul.mubr.msk.f32.gmra.mrb[214].mxu1 %vm966_vm1, %v5128_v43  ;;  %v5134_v5 = vld [vmem:[#allocation2 + $0x11e] sm:$0xff] }
 0x30e   : > { %v3013_v19 = vadd.f32 %v2938_v62, %v2583_v12  ;;  %7783 = vmatprep.mubr.msk.f32.mxu1 %vm966_vm1, %v5129_v51  ;;  %v2590_v20 = vld [vmem:[#allocation3 + $0x108] sm:$0xff]  ;;  %v5135_v62 = vld [vmem:[#allocation2 + $0x126] sm:$0xff] }
 0x30f   : > { %3050 = vst.msk [vmem:[#allocation3 + $0xd8] sm:$0xff] %vm966_vm1, %v3014_v32  ;;  %v2589_v32 = vld [vmem:[#allocation3 + $0x100] sm:$0xff] }
 0x310   : > { %3049 = vst.msk [vmem:[#allocation3 + $0xd0] sm:$0xff] %vm966_vm1, %v3013_v19  ;;  %v7478_v34 = vpop.f32.mrb[110].mxu1  ;;  %v5136_v19 = vld [vmem:[#allocation2 + $0x12e] sm:$0xff] }
 0x311   : > { %v3016_v35 = vadd.f32 %v7478_v34, %v2586_v61  ;;  %v2948_v47 = vpop.f32.mrb[111].mxu1  ;;  %7784 = vmatmul.mubr.msk.f32.gmra.mrb[216].mxu1 %vm966_vm1, %v5130_v44  ;;  %v5643_v44 = vld [vmem:[%s9943_s4 + $0x10] sm:$0xff] }
 0x312   : > { %v3015_v42 = vadd.f32 %v2948_v47, %v2585_v17  ;;  %7786 = vmatprep.mubr.msk.f32.mxu1 %vm966_vm1, %v5131_v15  ;;  %v2592_v61 = vld [vmem:[#allocation3 + $0x118] sm:$0xff] }
 0x313   : > { %3052 = vst.msk [vmem:[#allocation3 + $0xe8] sm:$0xff] %vm966_vm1, %v3016_v35  ;;  %v5644_v35 = vld [vmem:[%s9943_s4 + $0x18] sm:$0xff] }
 0x314   : > { %3051 = vst.msk [vmem:[#allocation3 + $0xe0] sm:$0xff] %vm966_vm1, %v3015_v42  ;;  %v7481_v25 = vpop.f32.mrb[112].mxu1  ;;  %v2591_v47 = vld [vmem:[#allocation3 + $0x110] sm:$0xff] }
 0x315   : > { %v3018_v41 = vadd.f32 %v7481_v25, %v2588_v39  ;;  %v2958_v59 = vpop.f32.mrb[113].mxu1  ;;  %7787 = vmatmul.mubr.msk.f32.gmra.mrb[218].mxu1 %vm966_vm1, %v5132_v60  ;;  %v5137_v42 = vld [vmem:[#allocation2 + $0x136] sm:$0xff]  ;;  %v7960_v39 = vpack.c.bf16 %v5644_v35, %v5643_v44 }
 0x316   : > { %v3017_v55 = vadd.f32 %v2958_v59, %v2587_v3  ;;  %7789 = vmatprep.mubr.msk.f32.mxu1 %vm966_vm1, %v5133_v16  ;;  %v3060_v60 = vld [vmem:[#allocation3 + $0x8] sm:$0xff]  ;;  %v5138_v3 = vld [vmem:[#allocation2 + $0x13e] sm:$0xff]  ;;  %v3059_v16 = vld [vmem:[#allocation3] sm:$0xff] }
 0x317   : > { %3054 = vst.msk [vmem:[#allocation3 + $0xf8] sm:$0xff] %vm966_vm1, %v3018_v41  ;;  %7961 = vmatprep.subr.bf16.mxu0 %v7960_v39 }
 0x318   : > { %3053 = vst.msk [vmem:[#allocation3 + $0xf0] sm:$0xff] %vm966_vm1, %v3017_v55  ;;  %v7484_v31 = vpop.f32.mrb[114].mxu1  ;;  %7963 = vmatpush3.bf16.msra.mxu0 %v7960_v39 }
 0x319   : > { %v3020_v43 = vadd.f32 %v7484_v31, %v2590_v20  ;;  %v2968_v12 = vpop.f32.mrb[115].mxu1  ;;  %7790 = vmatmul.mubr.msk.f32.gmra.mrb[220].mxu1 %vm966_vm1, %v5134_v5  ;;  %v3062_v31 = vld [vmem:[#allocation3 + $0x18] sm:$0xff] }
 0x31a   : > { %v3019_v51 = vadd.f32 %v2968_v12, %v2589_v32  ;;  %7792 = vmatprep.mubr.msk.f32.mxu1 %vm966_vm1, %v5135_v62  ;;  %v3061_v32 = vld [vmem:[#allocation3 + $0x10] sm:$0xff] }
 0x31b   : > { %3056 = vst.msk [vmem:[#allocation3 + $0x108] sm:$0xff] %vm966_vm1, %v3020_v43 }
 0x31c   : > { %3055 = vst.msk [vmem:[#allocation3 + $0x100] sm:$0xff] %vm966_vm1, %v3019_v51  ;;  %v7487_v34 = vpop.f32.mrb[116].mxu1  ;;  %v3064_v51 = vld [vmem:[#allocation3 + $0x28] sm:$0xff] }
 0x31d   : > { %v3022_v17 = vadd.f32 %v7487_v34, %v2592_v61  ;;  %v2978_v15 = vpop.f32.mrb[117].mxu1  ;;  %7793 = vmatmul.mubr.msk.f32.gmra.mrb[222].mxu1 %vm966_vm1, %v5136_v19  ;;  %v3063_v34 = vld [vmem:[#allocation3 + $0x20] sm:$0xff] }
 0x31e   : > { %v3021_v25 = vadd.f32 %v2978_v15, %v2591_v47  ;;  %7795 = vmatprep.mubr.msk.f32.mxu1 %vm966_vm1, %v5137_v42  ;;  %v3066_v42 = vld [vmem:[#allocation3 + $0x38] sm:$0xff] }
 0x31f   : > { %3058 = vst.msk [vmem:[#allocation3 + $0x118] sm:$0xff] %vm966_vm1, %v3022_v17 }
 0x320   : > { %3057 = vst.msk [vmem:[#allocation3 + $0x110] sm:$0xff] %vm966_vm1, %v3021_v25  ;;  %v7498_v41 = vpop.f32.mrb[118].mxu1 }
 0x321   : > { %v3490_v59 = vadd.f32 %v7498_v41, %v3060_v60  ;;  %v3310_v55 = vpop.f32.mrb[119].mxu1  ;;  %7796 = vmatmul.mubr.msk.f32.gmra.mrb[224].mxu1 %vm966_vm1, %v5138_v3  ;;  %v3065_v41 = vld [vmem:[#allocation3 + $0x30] sm:$0xff] }
 0x322   : > { %v3489_v20 = vadd.f32 %v3310_v55, %v3059_v16 }
 0x323   : > { %3526 = vst.msk [vmem:[#allocation3 + $0x8] sm:$0xff] %vm966_vm1, %v3490_v59 }
 0x324   : > { %3525 = vst.msk [vmem:[#allocation3] sm:$0xff] %vm966_vm1, %v3489_v20  ;;  %v7501_v5 = vpop.f32.mrb[120].mxu1  ;;  %v3068_v20 = vld [vmem:[#allocation3 + $0x48] sm:$0xff] }
 0x325   : > { %v3492_v43 = vadd.f32 %v7501_v5, %v3062_v31  ;;  %v3320_v12 = vpop.f32.mrb[121].mxu1 }
 0x326   : > { %v3491_v62 = vadd.f32 %v3320_v12, %v3061_v32 }
 0x327   : > { %3528 = vst.msk [vmem:[#allocation3 + $0x18] sm:$0xff] %vm966_vm1, %v3492_v43  ;;  %v3067_v43 = vld [vmem:[#allocation3 + $0x40] sm:$0xff] }
 0x328   : > { %3527 = vst.msk [vmem:[#allocation3 + $0x10] sm:$0xff] %vm966_vm1, %v3491_v62  ;;  %v7504_v19 = vpop.f32.mrb[122].mxu1 }
 0x329   : > { %v3494_v61 = vadd.f32 %v7504_v19, %v3064_v51  ;;  %v3330_v44 = vpop.f32.mrb[123].mxu1  ;;  %v3070_v19 = vld [vmem:[#allocation3 + $0x58] sm:$0xff] }
 0x32a   : > { %v3493_v35 = vadd.f32 %v3330_v44, %v3063_v34  ;;  %v3562_v17 = vld [vmem:[#allocation3 + $0x8] sm:$0xff]  ;;  %v3069_v44 = vld [vmem:[#allocation3 + $0x50] sm:$0xff] }
 0x32b   : > { %3530 = vst.msk [vmem:[#allocation3 + $0x28] sm:$0xff] %vm966_vm1, %v3494_v61  ;;  %v3992_v47 = vadd.f32 %v9079_v46, %v3562_v17  ;;  %v3561_v15 = vld [vmem:[#allocation3] sm:$0xff] }
 0x32c   : > { %3529 = vst.msk [vmem:[#allocation3 + $0x20] sm:$0xff] %vm966_vm1, %v3493_v35  ;;  %v7507_v39 = vpop.f32.mrb[124].mxu1  ;;  %v3991_v25 = vadd.f32 %v9082_v50, %v3561_v15 }
 0x32d   : > { %v3496_v60 = vadd.f32 %v7507_v39, %v3066_v42  ;;  %v3340_v3 = vpop.f32.mrb[125].mxu1  ;;  %4028 = vst.msk [vmem:[#allocation3 + $0x8] sm:$0xff] %vm966_vm1, %v3992_v47  ;;  %v3072_v42 = vld [vmem:[#allocation3 + $0x68] sm:$0xff] }
 0x32e   : > { %v3495_v59 = vadd.f32 %v3340_v3, %v3065_v41  ;;  %4027 = vst.msk [vmem:[#allocation3] sm:$0xff] %vm966_vm1, %v3991_v25  ;;  %v3564_v16 = vld [vmem:[#allocation3 + $0x18] sm:$0xff] }
 0x32f   : > { %3532 = vst.msk [vmem:[#allocation3 + $0x38] sm:$0xff] %vm966_vm1, %v3496_v60  ;;  %v3994_v46 = vadd.f32 %v9087_v53, %v3564_v16  ;;  %v3563_v55 = vld [vmem:[#allocation3 + $0x10] sm:$0xff]  ;;  %v3071_v60 = vld [vmem:[#allocation3 + $0x60] sm:$0xff] }
 0x330   : > { %3531 = vst.msk [vmem:[#allocation3 + $0x30] sm:$0xff] %vm966_vm1, %v3495_v59  ;;  %v7510_v31 = vpop.f32.mrb[126].mxu1  ;;  %v3993_v50 = vadd.f32 %v9090_v11, %v3563_v55 }
 0x331   : > { %v3498_v5 = vadd.f32 %v7510_v31, %v3068_v20  ;;  %v3350_v32 = vpop.f32.mrb[127].mxu1  ;;  %4030 = vst.msk [vmem:[#allocation3 + $0x18] sm:$0xff] %vm966_vm1, %v3994_v46  ;;  %v3074_v46 = vld [vmem:[#allocation3 + $0x78] sm:$0xff]  ;;  %v3073_v31 = vld [vmem:[#allocation3 + $0x70] sm:$0xff] }
 0x332   : > { %v3497_v12 = vadd.f32 %v3350_v32, %v3067_v43  ;;  %4029 = vst.msk [vmem:[#allocation3 + $0x10] sm:$0xff] %vm966_vm1, %v3993_v50  ;;  %v3566_v62 = vld [vmem:[#allocation3 + $0x28] sm:$0xff] }
 0x333   : > { %3534 = vst.msk [vmem:[#allocation3 + $0x48] sm:$0xff] %vm966_vm1, %v3498_v5  ;;  %v3996_v53 = vadd.f32 %v9093_v1, %v3566_v62  ;;  %v3565_v51 = vld [vmem:[#allocation3 + $0x20] sm:$0xff] }
 0x334   : > { %3533 = vst.msk [vmem:[#allocation3 + $0x40] sm:$0xff] %vm966_vm1, %v3497_v12  ;;  %v7513_v61 = vpop.f32.mrb[128].mxu1  ;;  %v3995_v11 = vadd.f32 %v9096_v8, %v3565_v51  ;;  %v3076_v12 = vld [vmem:[#allocation3 + $0x88] sm:$0xff]  ;;  %v3075_v51 = vld [vmem:[#allocation3 + $0x80] sm:$0xff] }
 0x335   : > { %v3500_v34 = vadd.f32 %v7513_v61, %v3070_v19  ;;  %v3360_v35 = vpop.f32.mrb[129].mxu1  ;;  %4032 = vst.msk [vmem:[#allocation3 + $0x28] sm:$0xff] %vm966_vm1, %v3996_v53 }
 0x336   : > { %v3499_v17 = vadd.f32 %v3360_v35, %v3069_v44  ;;  %4031 = vst.msk [vmem:[#allocation3 + $0x20] sm:$0xff] %vm966_vm1, %v3995_v11  ;;  %v3568_v47 = vld [vmem:[#allocation3 + $0x38] sm:$0xff] }
 0x337   : > { %3536 = vst.msk [vmem:[#allocation3 + $0x58] sm:$0xff] %vm966_vm1, %v3500_v34  ;;  %v3998_v1 = vadd.f32 %v9101_v14, %v3568_v47  ;;  %v3567_v15 = vld [vmem:[#allocation3 + $0x30] sm:$0xff]  ;;  %v3078_v44 = vld [vmem:[#allocation3 + $0x98] sm:$0xff] }
 0x338   : > { %3535 = vst.msk [vmem:[#allocation3 + $0x50] sm:$0xff] %vm966_vm1, %v3499_v17  ;;  %v7516_v39 = vpop.f32.mrb[130].mxu1  ;;  %v3997_v8 = vadd.f32 %v9104_v21, %v3567_v15  ;;  %v3077_v47 = vld [vmem:[#allocation3 + $0x90] sm:$0xff] }
 0x339   : > { %v3502_v25 = vadd.f32 %v7516_v39, %v3072_v42  ;;  %v3370_v41 = vpop.f32.mrb[131].mxu1  ;;  %4034 = vst.msk [vmem:[#allocation3 + $0x38] sm:$0xff] %vm966_vm1, %v3998_v1 }
 0x33a   : > { %v3501_v3 = vadd.f32 %v3370_v41, %v3071_v60  ;;  %4033 = vst.msk [vmem:[#allocation3 + $0x30] sm:$0xff] %vm966_vm1, %v3997_v8  ;;  %v3570_v59 = vld [vmem:[#allocation3 + $0x48] sm:$0xff]  ;;  %v3079_v41 = vld [vmem:[#allocation3 + $0xa0] sm:$0xff] }
 0x33b   : > { %3538 = vst.msk [vmem:[#allocation3 + $0x68] sm:$0xff] %vm966_vm1, %v3502_v25  ;;  %v4000_v14 = vadd.f32 %v9107_v27, %v3570_v59  ;;  %v3569_v16 = vld [vmem:[#allocation3 + $0x40] sm:$0xff]  ;;  %v3080_v8 = vld [vmem:[#allocation3 + $0xa8] sm:$0xff] }
 0x33c   : > { %3537 = vst.msk [vmem:[#allocation3 + $0x60] sm:$0xff] %vm966_vm1, %v3501_v3  ;;  %v7519_v55 = vpop.f32.mrb[132].mxu1  ;;  %v3999_v21 = vadd.f32 %v9110_v23, %v3569_v16 }
 0x33d   : > { %v3504_v20 = vadd.f32 %v7519_v55, %v3074_v46  ;;  %v3380_v50 = vpop.f32.mrb[133].mxu1  ;;  %4036 = vst.msk [vmem:[#allocation3 + $0x48] sm:$0xff] %vm966_vm1, %v4000_v14  ;;  %v3082_v46 = vld [vmem:[#allocation3 + $0xb8] sm:$0xff] }
 0x33e   : > { %v3503_v5 = vadd.f32 %v3380_v50, %v3073_v31  ;;  %4035 = vst.msk [vmem:[#allocation3 + $0x40] sm:$0xff] %vm966_vm1, %v3999_v21  ;;  %v3572_v43 = vld [vmem:[#allocation3 + $0x58] sm:$0xff] }
 0x33f   : > { %3540 = vst.msk [vmem:[#allocation3 + $0x78] sm:$0xff] %vm966_vm1, %v3504_v20  ;;  %v4002_v27 = vadd.f32 %v9115_v45, %v3572_v43  ;;  %v3571_v32 = vld [vmem:[#allocation3 + $0x50] sm:$0xff] }
 0x340   : > { %3539 = vst.msk [vmem:[#allocation3 + $0x70] sm:$0xff] %vm966_vm1, %v3503_v5  ;;  %v7522_v62 = vpop.f32.mrb[134].mxu1  ;;  %v4001_v23 = vadd.f32 %v9118_v48, %v3571_v32  ;;  %v3081_v20 = vld [vmem:[#allocation3 + $0xb0] sm:$0xff] }
 0x341   : > { %v3506_v53 = vadd.f32 %v7522_v62, %v3076_v12  ;;  %v3390_v19 = vpop.f32.mrb[135].mxu1  ;;  %4038 = vst.msk [vmem:[#allocation3 + $0x58] sm:$0xff] %vm966_vm1, %v4002_v27  ;;  %v3084_v27 = vld [vmem:[#allocation3 + $0xc8] sm:$0xff]  ;;  %v3083_v62 = vld [vmem:[#allocation3 + $0xc0] sm:$0xff] }
 0x342   : > { %v3505_v61 = vadd.f32 %v3390_v19, %v3075_v51  ;;  %4037 = vst.msk [vmem:[#allocation3 + $0x50] sm:$0xff] %vm966_vm1, %v4001_v23  ;;  %v3574_v11 = vld [vmem:[#allocation3 + $0x68] sm:$0xff]  ;;  %v9983_v19 = vld [vmem:[#allocation7_spill] sm:$0xff] }
 0x343   : > { %3542 = vst.msk [vmem:[#allocation3 + $0x88] sm:$0xff] %vm966_vm1, %v3506_v53  ;;  %v4004_v45 = vadd.f32 %v9121_v56, %v3574_v11  ;;  %v3573_v34 = vld [vmem:[#allocation3 + $0x60] sm:$0xff]  ;;  %v3086_v11 = vld [vmem:[#allocation3 + $0xd8] sm:$0xff] }
 0x344   : > { %3541 = vst.msk [vmem:[#allocation3 + $0x80] sm:$0xff] %vm966_vm1, %v3505_v61  ;;  %v7525_v35 = vpop.f32.mrb[136].mxu1  ;;  %v4003_v48 = vadd.f32 %v9124_v6, %v3573_v34  ;;  %v9984_v34 = vld [vmem:[#allocation8_spill] sm:$0xff] }
 0x345   : > { %v3508_v17 = vadd.f32 %v7525_v35, %v3078_v44  ;;  %v3400_v1 = vpop.f32.mrb[137].mxu1  ;;  %4040 = vst.msk [vmem:[#allocation3 + $0x68] sm:$0xff] %vm966_vm1, %v4004_v45  ;;  %v3085_v35 = vld [vmem:[#allocation3 + $0xd0] sm:$0xff] }
 0x346   : > { %v3507_v15 = vadd.f32 %v3400_v1, %v3077_v47  ;;  %4039 = vst.msk [vmem:[#allocation3 + $0x60] sm:$0xff] %vm966_vm1, %v4003_v48  ;;  %v3576_v42 = vld [vmem:[#allocation3 + $0x78] sm:$0xff]  ;;  %v9985_v1 = vld [vmem:[#allocation9_spill] sm:$0xff] }
 0x347   : > { %3544 = vst.msk [vmem:[#allocation3 + $0x98] sm:$0xff] %vm966_vm1, %v3508_v17  ;;  %v4006_v56 = vadd.f32 %v9129_v13, %v3576_v42  ;;  %v3575_v39 = vld [vmem:[#allocation3 + $0x70] sm:$0xff] }
 0x348   : > { %3543 = vst.msk [vmem:[#allocation3 + $0x90] sm:$0xff] %vm966_vm1, %v3507_v15  ;;  %v7528_v25 = vpop.f32.mrb[138].mxu1  ;;  %v4005_v6 = vadd.f32 %v9132_v26, %v3575_v39 }
 0x349   : > { %v3510_v60 = vadd.f32 %v7528_v25, %v3080_v8  ;;  %v3410_v3 = vpop.f32.mrb[139].mxu1  ;;  %4042 = vst.msk [vmem:[#allocation3 + $0x78] sm:$0xff] %vm966_vm1, %v4006_v56  ;;  %v3088_v56 = vld [vmem:[#allocation3 + $0xe8] sm:$0xff]  ;;  %v9986_v8 = vld [vmem:[#allocation10_spill] sm:$0xff] }
 0x34a   : > { %v3509_v59 = vadd.f32 %v3410_v3, %v3079_v41  ;;  %4041 = vst.msk [vmem:[#allocation3 + $0x70] sm:$0xff] %vm966_vm1, %v4005_v6  ;;  %v3578_v14 = vld [vmem:[#allocation3 + $0x88] sm:$0xff] }
 0x34b   : > { %3546 = vst.msk [vmem:[#allocation3 + $0xa8] sm:$0xff] %vm966_vm1, %v3510_v60  ;;  %v4008_v13 = vadd.f32 %v9137_v38, %v3578_v14  ;;  %v3577_v16 = vld [vmem:[#allocation3 + $0x80] sm:$0xff] }
 0x34c   : > { %3545 = vst.msk [vmem:[#allocation3 + $0xa0] sm:$0xff] %vm966_vm1, %v3509_v59  ;;  %v7531_v55 = vpop.f32.mrb[140].mxu1  ;;  %v4007_v26 = vadd.f32 %v9140_v0, %v3577_v16  ;;  %v3087_v60 = vld [vmem:[#allocation3 + $0xe0] sm:$0xff] }
 0x34d   : > { %v3512_v21 = vadd.f32 %v7531_v55, %v3082_v46  ;;  %v3420_v31 = vpop.f32.mrb[141].mxu1  ;;  %4044 = vst.msk [vmem:[#allocation3 + $0x88] sm:$0xff] %vm966_vm1, %v4008_v13  ;;  %v9987_v14 = vld [vmem:[#allocation11_spill] sm:$0xff]  ;;  %v3090_v46 = vld [vmem:[#allocation3 + $0xf8] sm:$0xff] }
 0x34e   : > { %v3511_v50 = vadd.f32 %v3420_v31, %v3081_v20  ;;  %4043 = vst.msk [vmem:[#allocation3 + $0x80] sm:$0xff] %vm966_vm1, %v4007_v26  ;;  %v3580_v5 = vld [vmem:[#allocation3 + $0x98] sm:$0xff]  ;;  %v3089_v20 = vld [vmem:[#allocation3 + $0xf0] sm:$0xff] }
 0x34f   : > { %3548 = vst.msk [vmem:[#allocation3 + $0xb8] sm:$0xff] %vm966_vm1, %v3512_v21  ;;  %v4010_v38 = vadd.f32 %v9145_v4, %v3580_v5  ;;  %v3579_v43 = vld [vmem:[#allocation3 + $0x90] sm:$0xff] }
 0x350   : > { %3547 = vst.msk [vmem:[#allocation3 + $0xb0] sm:$0xff] %vm966_vm1, %v3511_v50  ;;  %v7534_v32 = vpop.f32.mrb[142].mxu1  ;;  %v4009_v0 = vadd.f32 %v9148_v40, %v3579_v43 }
 0x351   : > { %v3514_v12 = vadd.f32 %v7534_v32, %v3084_v27  ;;  %v3430_v23 = vpop.f32.mrb[143].mxu1  ;;  %4046 = vst.msk [vmem:[#allocation3 + $0x98] sm:$0xff] %vm966_vm1, %v4010_v38  ;;  %v3092_v27 = vld [vmem:[#allocation3 + $0x108] sm:$0xff] }
 0x352   : > { %v3513_v53 = vadd.f32 %v3430_v23, %v3083_v62  ;;  %4045 = vst.msk [vmem:[#allocation3 + $0x90] sm:$0xff] %vm966_vm1, %v4009_v0  ;;  %v3582_v51 = vld [vmem:[#allocation3 + $0xa8] sm:$0xff] }
 0x353   : > { %3550 = vst.msk [vmem:[#allocation3 + $0xc8] sm:$0xff] %vm966_vm1, %v3514_v12  ;;  %v4012_v4 = vadd.f32 %v9983_v19, %v3582_v51  ;;  %v3581_v61 = vld [vmem:[#allocation3 + $0xa0] sm:$0xff]  ;;  %v9988_v51 = vld [vmem:[#allocation12_spill] sm:$0xff] }
 0x354   : > { %3549 = vst.msk [vmem:[#allocation3 + $0xc0] sm:$0xff] %vm966_vm1, %v3513_v53  ;;  %v7537_v45 = vpop.f32.mrb[144].mxu1  ;;  %v4011_v40 = vadd.f32 %v9984_v34, %v3581_v61  ;;  %v3091_v12 = vld [vmem:[#allocation3 + $0x100] sm:$0xff]  ;;  %v3093_v34 = vld [vmem:[#allocation3 + $0x110] sm:$0xff] }
 0x355   : > { %v3516_v44 = vadd.f32 %v7537_v45, %v3086_v11  ;;  %v3440_v48 = vpop.f32.mrb[145].mxu1  ;;  %4048 = vst.msk [vmem:[#allocation3 + $0xa8] sm:$0xff] %vm966_vm1, %v4012_v4  ;;  %v3094_v4 = vld [vmem:[#allocation3 + $0x118] sm:$0xff]  ;;  %v9989_v11 = vld [vmem:[#allocation13_spill] sm:$0xff] }
 0x356   : > { %v3515_v17 = vadd.f32 %v3440_v48, %v3085_v35  ;;  %4047 = vst.msk [vmem:[#allocation3 + $0xa0] sm:$0xff] %vm966_vm1, %v4011_v40  ;;  %v3584_v47 = vld [vmem:[#allocation3 + $0xb8] sm:$0xff] }
 0x357   : > { %3552 = vst.msk [vmem:[#allocation3 + $0xd8] sm:$0xff] %vm966_vm1, %v3516_v44  ;;  %v4014_v15 = vadd.f32 %v9985_v1, %v3584_v47  ;;  %v3583_v42 = vld [vmem:[#allocation3 + $0xb0] sm:$0xff]  ;;  %v9990_v48 = vld [vmem:[#allocation14_spill] sm:$0xff]  ;;  %v4064_v1 = vld [vmem:[#allocation3 + $0x8] sm:$0xff] }
 0x358   : > { %3551 = vst.msk [vmem:[#allocation3 + $0xd0] sm:$0xff] %vm966_vm1, %v3515_v17  ;;  %v7540_v39 = vpop.f32.mrb[146].mxu1  ;;  %v4013_v25 = vadd.f32 %v9986_v8, %v3583_v42  ;;  %v9991_v42 = vld [vmem:[#allocation15_spill] sm:$0xff] }
 0x359   : > { %v3518_v6 = vadd.f32 %v7540_v39, %v3088_v56  ;;  %v3450_v41 = vpop.f32.mrb[147].mxu1  ;;  %4050 = vst.msk [vmem:[#allocation3 + $0xb8] sm:$0xff] %vm966_vm1, %v4014_v15  ;;  %v4063_v8 = vld [vmem:[#allocation3] sm:$0xff] }
 0x35a   : > { %v3517_v3 = vadd.f32 %v3450_v41, %v3087_v60  ;;  %4049 = vst.msk [vmem:[#allocation3 + $0xb0] sm:$0xff] %vm966_vm1, %v4013_v25  ;;  %v3586_v59 = vld [vmem:[#allocation3 + $0xc8] sm:$0xff] }
 0x35b   : > { %3554 = vst.msk [vmem:[#allocation3 + $0xe8] sm:$0xff] %vm966_vm1, %v3518_v6  ;;  %v4016_v13 = vadd.f32 %v9987_v14, %v3586_v59  ;;  %v3585_v16 = vld [vmem:[#allocation3 + $0xc0] sm:$0xff]  ;;  %v9992_v41 = vld [vmem:[#allocation16_spill] sm:$0xff]  ;;  %v4066_v14 = vld [vmem:[#allocation3 + $0x18] sm:$0xff] }
 0x35c   : > { %3553 = vst.msk [vmem:[#allocation3 + $0xe0] sm:$0xff] %vm966_vm1, %v3517_v3  ;;  %v7543_v55 = vpop.f32.mrb[148].mxu1  ;;  %v4015_v26 = vadd.f32 %v9178_v22, %v3585_v16  ;;  %v9993_v16 = vld [vmem:[#allocation17_spill] sm:$0xff] }
 0x35d   : > { %v3520_v21 = vadd.f32 %v7543_v55, %v3090_v46  ;;  %v3460_v31 = vpop.f32.mrb[149].mxu1  ;;  %4052 = vst.msk [vmem:[#allocation3 + $0xc8] sm:$0xff] %vm966_vm1, %v4016_v13 }
 0x35e   : > { %v3519_v50 = vadd.f32 %v3460_v31, %v3089_v20  ;;  %4051 = vst.msk [vmem:[#allocation3 + $0xc0] sm:$0xff] %vm966_vm1, %v4015_v26  ;;  %v3588_v5 = vld [vmem:[#allocation3 + $0xd8] sm:$0xff]  ;;  %v4065_v26 = vld [vmem:[#allocation3 + $0x10] sm:$0xff] }
 0x35f   : > { %3556 = vst.msk [vmem:[#allocation3 + $0xf8] sm:$0xff] %vm966_vm1, %v3520_v21  ;;  %v4018_v38 = vadd.f32 %v9183_v10, %v3588_v5  ;;  %v3587_v43 = vld [vmem:[#allocation3 + $0xd0] sm:$0xff] }
 0x360   : > { %3555 = vst.msk [vmem:[#allocation3 + $0xf0] sm:$0xff] %vm966_vm1, %v3519_v50  ;;  %v7546_v32 = vpop.f32.mrb[150].mxu1  ;;  %v4017_v22 = vadd.f32 %v9185_v49, %v3587_v43  ;;  %v9994_v50 = vld [vmem:[#allocation18_spill] sm:$0xff]  ;;  %v4068_v43 = vld [vmem:[#allocation3 + $0x28] sm:$0xff] }
 0x361   : > { %v3522_v0 = vadd.f32 %v7546_v32, %v3092_v27  ;;  %v3470_v62 = vpop.f32.mrb[151].mxu1  ;;  %4054 = vst.msk [vmem:[#allocation3 + $0xd8] sm:$0xff] %vm966_vm1, %v4018_v38  ;;  %v9995_v32 = vld [vmem:[#allocation19_spill] sm:$0xff] }
 0x362   : > { %v3521_v23 = vadd.f32 %v3470_v62, %v3091_v12  ;;  %4053 = vst.msk [vmem:[#allocation3 + $0xd0] sm:$0xff] %vm966_vm1, %v4017_v22  ;;  %v3590_v53 = vld [vmem:[#allocation3 + $0xe8] sm:$0xff]  ;;  %v4067_v12 = vld [vmem:[#allocation3 + $0x20] sm:$0xff] }
 0x363   : > { %3558 = vst.msk [vmem:[#allocation3 + $0x108] sm:$0xff] %vm966_vm1, %v3522_v0  ;;  %v4020_v10 = vadd.f32 %v9988_v51, %v3590_v53  ;;  %v3589_v19 = vld [vmem:[#allocation3 + $0xe0] sm:$0xff]  ;;  %v9996_v51 = vld [vmem:[#allocation20_spill] sm:$0xff] }
 0x364   : > { %3557 = vst.msk [vmem:[#allocation3 + $0x100] sm:$0xff] %vm966_vm1, %v3521_v23  ;;  %v7549_v61 = vpop.f32.mrb[152].mxu1  ;;  %v4019_v49 = vadd.f32 %v9989_v11, %v3589_v19  ;;  %v9997_v11 = vld [vmem:[#allocation21_spill] sm:$0xff] }
 0x365   : > { %v3524_v45 = vadd.f32 %v7549_v61, %v3094_v4  ;;  %v3480_v40 = vpop.f32.mrb[153].mxu1  ;;  %4056 = vst.msk [vmem:[#allocation3 + $0xe8] sm:$0xff] %vm966_vm1, %v4020_v10  ;;  %v4070_v4 = vld [vmem:[#allocation3 + $0x38] sm:$0xff] }
 0x366   : > { %v3523_v44 = vadd.f32 %v3480_v40, %v3093_v34  ;;  %4055 = vst.msk [vmem:[#allocation3 + $0xe0] sm:$0xff] %vm966_vm1, %v4019_v49  ;;  %v3592_v35 = vld [vmem:[#allocation3 + $0xf8] sm:$0xff]  ;;  %v4069_v34 = vld [vmem:[#allocation3 + $0x30] sm:$0xff] }
 0x367   : > { %3560 = vst.msk [vmem:[#allocation3 + $0x118] sm:$0xff] %vm966_vm1, %v3524_v45  ;;  %v4022_v17 = vadd.f32 %v9990_v48, %v3592_v35  ;;  %v3591_v47 = vld [vmem:[#allocation3 + $0xf0] sm:$0xff]  ;;  %v9998_v48 = vld [vmem:[#allocation22_spill] sm:$0xff] }
 0x368   : > { %3559 = vst.msk [vmem:[#allocation3 + $0x110] sm:$0xff] %vm966_vm1, %v3523_v44  ;;  %v7622_v15 = vpop.f32.mrb[154].mxu1  ;;  %v4021_v56 = vadd.f32 %v9991_v42, %v3591_v47  ;;  %v9999_v42 = vld [vmem:[#allocation23_spill] sm:$0xff] }
 0x369   : > { %v4494_v39 = vadd.f32 %v7622_v15, %v4064_v1  ;;  %v4314_v25 = vpop.f32.mrb[155].mxu1  ;;  %4058 = vst.msk [vmem:[#allocation3 + $0xf8] sm:$0xff] %vm966_vm1, %v4022_v17  ;;  %v4072_v1 = vld [vmem:[#allocation3 + $0x48] sm:$0xff] }
 0x36a   : > { %v4493_v6 = vadd.f32 %v4314_v25, %v4063_v8  ;;  %4057 = vst.msk [vmem:[#allocation3 + $0xf0] sm:$0xff] %vm966_vm1, %v4021_v56  ;;  %v3594_v60 = vld [vmem:[#allocation3 + $0x108] sm:$0xff]  ;;  %v4071_v8 = vld [vmem:[#allocation3 + $0x40] sm:$0xff] }
 0x36b   : > { %4530 = vst.msk [vmem:[#allocation3 + $0x8] sm:$0xff] %vm966_vm1, %v4494_v39  ;;  %v4024_v3 = vadd.f32 %v9992_v41, %v3594_v60  ;;  %v3593_v59 = vld [vmem:[#allocation3 + $0x100] sm:$0xff]  ;;  %v10000_v41 = vld [vmem:[#allocation24_spill] sm:$0xff] }
 0x36c   : > { %4529 = vst.msk [vmem:[#allocation3] sm:$0xff] %vm966_vm1, %v4493_v6  ;;  %v7625_v13 = vpop.f32.mrb[156].mxu1  ;;  %v4023_v46 = vadd.f32 %v9993_v16, %v3593_v59  ;;  %v10001_v16 = vld [vmem:[#allocation25_spill] sm:$0xff] }
 0x36d   : > { %v4496_v55 = vadd.f32 %v7625_v13, %v4066_v14  ;;  %v4324_v21 = vpop.f32.mrb[157].mxu1  ;;  %4060 = vst.msk [vmem:[#allocation3 + $0x108] sm:$0xff] %vm966_vm1, %v4024_v3  ;;  %v4074_v14 = vld [vmem:[#allocation3 + $0x58] sm:$0xff] }
 0x36e   : > { %v4495_v20 = vadd.f32 %v4324_v21, %v4065_v26  ;;  %4059 = vst.msk [vmem:[#allocation3 + $0x100] sm:$0xff] %vm966_vm1, %v4023_v46  ;;  %v3596_v31 = vld [vmem:[#allocation3 + $0x118] sm:$0xff]  ;;  %v4073_v26 = vld [vmem:[#allocation3 + $0x50] sm:$0xff] }
 0x36f   : > { %4532 = vst.msk [vmem:[#allocation3 + $0x18] sm:$0xff] %vm966_vm1, %v4496_v55  ;;  %v4026_v5 = vadd.f32 %v9994_v50, %v3596_v31  ;;  %v3595_v38 = vld [vmem:[#allocation3 + $0x110] sm:$0xff]  ;;  %v10002_v50 = vld [vmem:[#allocation26_spill] sm:$0xff] }
 0x370   : > { %4531 = vst.msk [vmem:[#allocation3 + $0x10] sm:$0xff] %vm966_vm1, %v4495_v20  ;;  %v7628_v27 = vpop.f32.mrb[158].mxu1  ;;  %v4025_v22 = vadd.f32 %v9995_v32, %v3595_v38  ;;  %v10003_v32 = vld [vmem:[#allocation27_spill] sm:$0xff] }
 0x371   : > { %v4498_v0 = vadd.f32 %v7628_v27, %v4068_v43  ;;  %v4334_v62 = vpop.f32.mrb[159].mxu1  ;;  %4062 = vst.msk [vmem:[#allocation3 + $0x118] sm:$0xff] %vm966_vm1, %v4026_v5  ;;  %v4076_v43 = vld [vmem:[#allocation3 + $0x68] sm:$0xff] }
 0x372   : > { %v4497_v23 = vadd.f32 %v4334_v62, %v4067_v12  ;;  %4061 = vst.msk [vmem:[#allocation3 + $0x110] sm:$0xff] %vm966_vm1, %v4025_v22  ;;  %v4566_v53 = vld [vmem:[#allocation3 + $0x8] sm:$0xff]  ;;  %v4075_v12 = vld [vmem:[#allocation3 + $0x60] sm:$0xff] }
 0x373   : > { %4534 = vst.msk [vmem:[#allocation3 + $0x28] sm:$0xff] %vm966_vm1, %v4498_v0  ;;  %v4996_v10 = vadd.f32 %v9996_v51, %v4566_v53  ;;  %v4565_v19 = vld [vmem:[#allocation3] sm:$0xff]  ;;  %v10004_v51 = vld [vmem:[#allocation28_spill] sm:$0xff] }
 0x374   : > { %4533 = vst.msk [vmem:[#allocation3 + $0x20] sm:$0xff] %vm966_vm1, %v4497_v23  ;;  %v7631_v61 = vpop.f32.mrb[160].mxu1  ;;  %v4995_v49 = vadd.f32 %v9997_v11, %v4565_v19  ;;  %v10005_v11 = vld [vmem:[#allocation29_spill] sm:$0xff] }
 0x375   : > { %v4500_v45 = vadd.f32 %v7631_v61, %v4070_v4  ;;  %v4344_v40 = vpop.f32.mrb[161].mxu1  ;;  %5032 = vst.msk [vmem:[#allocation3 + $0x8] sm:$0xff] %vm966_vm1, %v4996_v10  ;;  %v4078_v4 = vld [vmem:[#allocation3 + $0x78] sm:$0xff] }
 0x376   : > { %v4499_v44 = vadd.f32 %v4344_v40, %v4069_v34  ;;  %5031 = vst.msk [vmem:[#allocation3] sm:$0xff] %vm966_vm1, %v4995_v49  ;;  %v4568_v35 = vld [vmem:[#allocation3 + $0x18] sm:$0xff]  ;;  %v4077_v34 = vld [vmem:[#allocation3 + $0x70] sm:$0xff] }
 0x377   : > { %4536 = vst.msk [vmem:[#allocation3 + $0x38] sm:$0xff] %vm966_vm1, %v4500_v45  ;;  %v4998_v17 = vadd.f32 %v9998_v48, %v4568_v35  ;;  %v4567_v47 = vld [vmem:[#allocation3 + $0x10] sm:$0xff]  ;;  %v10006_v48 = vld [vmem:[#allocation30_spill] sm:$0xff] }
 0x378   : > { %4535 = vst.msk [vmem:[#allocation3 + $0x30] sm:$0xff] %vm966_vm1, %v4499_v44  ;;  %v7634_v15 = vpop.f32.mrb[162].mxu1  ;;  %v4997_v56 = vadd.f32 %v9999_v42, %v4567_v47  ;;  %v10007_v42 = vld [vmem:[#allocation31_spill] sm:$0xff] }
 0x379   : > { %v4502_v39 = vadd.f32 %v7634_v15, %v4072_v1  ;;  %v4354_v25 = vpop.f32.mrb[163].mxu1  ;;  %5034 = vst.msk [vmem:[#allocation3 + $0x18] sm:$0xff] %vm966_vm1, %v4998_v17  ;;  %v4080_v1 = vld [vmem:[#allocation3 + $0x88] sm:$0xff] }
 0x37a   : > { %v4501_v6 = vadd.f32 %v4354_v25, %v4071_v8  ;;  %5033 = vst.msk [vmem:[#allocation3 + $0x10] sm:$0xff] %vm966_vm1, %v4997_v56  ;;  %v4570_v60 = vld [vmem:[#allocation3 + $0x28] sm:$0xff]  ;;  %v4079_v8 = vld [vmem:[#allocation3 + $0x80] sm:$0xff] }
 0x37b   : > { %4538 = vst.msk [vmem:[#allocation3 + $0x48] sm:$0xff] %vm966_vm1, %v4502_v39  ;;  %v5000_v3 = vadd.f32 %v10000_v41, %v4570_v60  ;;  %v4569_v59 = vld [vmem:[#allocation3 + $0x20] sm:$0xff]  ;;  %v10008_v41 = vld [vmem:[#allocation32_spill] sm:$0xff] }
 0x37c   : > { %4537 = vst.msk [vmem:[#allocation3 + $0x40] sm:$0xff] %vm966_vm1, %v4501_v6  ;;  %v7637_v13 = vpop.f32.mrb[164].mxu1  ;;  %v4999_v46 = vadd.f32 %v10001_v16, %v4569_v59  ;;  %v10009_v16 = vld [vmem:[#allocation33_spill] sm:$0xff] }
 0x37d   : > { %v4504_v55 = vadd.f32 %v7637_v13, %v4074_v14  ;;  %v4364_v21 = vpop.f32.mrb[165].mxu1  ;;  %5036 = vst.msk [vmem:[#allocation3 + $0x28] sm:$0xff] %vm966_vm1, %v5000_v3  ;;  %v4082_v14 = vld [vmem:[#allocation3 + $0x98] sm:$0xff] }
 0x37e   : > { %v4503_v20 = vadd.f32 %v4364_v21, %v4073_v26  ;;  %5035 = vst.msk [vmem:[#allocation3 + $0x20] sm:$0xff] %vm966_vm1, %v4999_v46  ;;  %v4572_v31 = vld [vmem:[#allocation3 + $0x38] sm:$0xff]  ;;  %v4081_v26 = vld [vmem:[#allocation3 + $0x90] sm:$0xff] }
 0x37f   : > { %4540 = vst.msk [vmem:[#allocation3 + $0x58] sm:$0xff] %vm966_vm1, %v4504_v55  ;;  %v5002_v5 = vadd.f32 %v10002_v50, %v4572_v31  ;;  %v4571_v38 = vld [vmem:[#allocation3 + $0x30] sm:$0xff]  ;;  %v10010_v50 = vld [vmem:[#allocation34_spill] sm:$0xff] }
 0x380   : > { %4539 = vst.msk [vmem:[#allocation3 + $0x50] sm:$0xff] %vm966_vm1, %v4503_v20  ;;  %v7640_v27 = vpop.f32.mrb[166].mxu1  ;;  %v5001_v22 = vadd.f32 %v10003_v32, %v4571_v38  ;;  %v10011_v32 = vld [vmem:[#allocation35_spill] sm:$0xff] }
 0x381   : > { %v4506_v0 = vadd.f32 %v7640_v27, %v4076_v43  ;;  %v4374_v62 = vpop.f32.mrb[167].mxu1  ;;  %5038 = vst.msk [vmem:[#allocation3 + $0x38] sm:$0xff] %vm966_vm1, %v5002_v5  ;;  %v4084_v43 = vld [vmem:[#allocation3 + $0xa8] sm:$0xff] }
 0x382   : > { %v4505_v23 = vadd.f32 %v4374_v62, %v4075_v12  ;;  %5037 = vst.msk [vmem:[#allocation3 + $0x30] sm:$0xff] %vm966_vm1, %v5001_v22  ;;  %v4574_v53 = vld [vmem:[#allocation3 + $0x48] sm:$0xff]  ;;  %v4083_v12 = vld [vmem:[#allocation3 + $0xa0] sm:$0xff] }
 0x383   : > { %4542 = vst.msk [vmem:[#allocation3 + $0x68] sm:$0xff] %vm966_vm1, %v4506_v0  ;;  %v5004_v10 = vadd.f32 %v10004_v51, %v4574_v53  ;;  %v4573_v19 = vld [vmem:[#allocation3 + $0x40] sm:$0xff]  ;;  %v10012_v51 = vld [vmem:[#allocation36_spill] sm:$0xff] }
 0x384   : > { %4541 = vst.msk [vmem:[#allocation3 + $0x60] sm:$0xff] %vm966_vm1, %v4505_v23  ;;  %v7643_v61 = vpop.f32.mrb[168].mxu1  ;;  %v5003_v49 = vadd.f32 %v10005_v11, %v4573_v19  ;;  %v10013_v11 = vld [vmem:[#allocation37_spill] sm:$0xff] }
 0x385   : > { %v4508_v45 = vadd.f32 %v7643_v61, %v4078_v4  ;;  %v4384_v40 = vpop.f32.mrb[169].mxu1  ;;  %5040 = vst.msk [vmem:[#allocation3 + $0x48] sm:$0xff] %vm966_vm1, %v5004_v10  ;;  %v4086_v4 = vld [vmem:[#allocation3 + $0xb8] sm:$0xff] }
 0x386   : > { %v4507_v44 = vadd.f32 %v4384_v40, %v4077_v34  ;;  %5039 = vst.msk [vmem:[#allocation3 + $0x40] sm:$0xff] %vm966_vm1, %v5003_v49  ;;  %v4576_v35 = vld [vmem:[#allocation3 + $0x58] sm:$0xff]  ;;  %v4085_v34 = vld [vmem:[#allocation3 + $0xb0] sm:$0xff] }
 0x387   : > { %4544 = vst.msk [vmem:[#allocation3 + $0x78] sm:$0xff] %vm966_vm1, %v4508_v45  ;;  %v5006_v17 = vadd.f32 %v10006_v48, %v4576_v35  ;;  %v4575_v47 = vld [vmem:[#allocation3 + $0x50] sm:$0xff]  ;;  %v10014_v48 = vld [vmem:[#allocation38_spill] sm:$0xff] }
 0x388   : > { %4543 = vst.msk [vmem:[#allocation3 + $0x70] sm:$0xff] %vm966_vm1, %v4507_v44  ;;  %v7646_v15 = vpop.f32.mrb[170].mxu1  ;;  %v5005_v56 = vadd.f32 %v10007_v42, %v4575_v47  ;;  %v10015_v42 = vld [vmem:[#allocation39_spill] sm:$0xff] }
 0x389   : > { %v4510_v39 = vadd.f32 %v7646_v15, %v4080_v1  ;;  %v4394_v25 = vpop.f32.mrb[171].mxu1  ;;  %5042 = vst.msk [vmem:[#allocation3 + $0x58] sm:$0xff] %vm966_vm1, %v5006_v17  ;;  %v4088_v1 = vld [vmem:[#allocation3 + $0xc8] sm:$0xff] }
 0x38a   : > { %v4509_v6 = vadd.f32 %v4394_v25, %v4079_v8  ;;  %5041 = vst.msk [vmem:[#allocation3 + $0x50] sm:$0xff] %vm966_vm1, %v5005_v56  ;;  %v4578_v60 = vld [vmem:[#allocation3 + $0x68] sm:$0xff]  ;;  %v4087_v8 = vld [vmem:[#allocation3 + $0xc0] sm:$0xff] }
 0x38b   : > { %4546 = vst.msk [vmem:[#allocation3 + $0x88] sm:$0xff] %vm966_vm1, %v4510_v39  ;;  %v5008_v3 = vadd.f32 %v10008_v41, %v4578_v60  ;;  %v4577_v59 = vld [vmem:[#allocation3 + $0x60] sm:$0xff] }
 0x38c   : > { %4545 = vst.msk [vmem:[#allocation3 + $0x80] sm:$0xff] %vm966_vm1, %v4509_v6  ;;  %v7649_v13 = vpop.f32.mrb[172].mxu1  ;;  %v5007_v46 = vadd.f32 %v10009_v16, %v4577_v59  ;;  %v4090_v59 = vld [vmem:[#allocation3 + $0xd8] sm:$0xff] }
 0x38d   : > { %v4512_v55 = vadd.f32 %v7649_v13, %v4082_v14  ;;  %v4404_v21 = vpop.f32.mrb[173].mxu1  ;;  %5044 = vst.msk [vmem:[#allocation3 + $0x68] sm:$0xff] %vm966_vm1, %v5008_v3 }
 0x38e   : > { %v4511_v20 = vadd.f32 %v4404_v21, %v4081_v26  ;;  %5043 = vst.msk [vmem:[#allocation3 + $0x60] sm:$0xff] %vm966_vm1, %v5007_v46  ;;  %v4580_v31 = vld [vmem:[#allocation3 + $0x78] sm:$0xff]  ;;  %v4089_v46 = vld [vmem:[#allocation3 + $0xd0] sm:$0xff] }
 0x38f   : > { %4548 = vst.msk [vmem:[#allocation3 + $0x98] sm:$0xff] %vm966_vm1, %v4512_v55  ;;  %v5010_v5 = vadd.f32 %v10010_v50, %v4580_v31  ;;  %v4579_v38 = vld [vmem:[#allocation3 + $0x70] sm:$0xff]  ;;  %v4092_v31 = vld [vmem:[#allocation3 + $0xe8] sm:$0xff] }
 0x390   : > { %4547 = vst.msk [vmem:[#allocation3 + $0x90] sm:$0xff] %vm966_vm1, %v4511_v20  ;;  %v7652_v27 = vpop.f32.mrb[174].mxu1  ;;  %v5009_v22 = vadd.f32 %v10011_v32, %v4579_v38  ;;  %v4091_v38 = vld [vmem:[#allocation3 + $0xe0] sm:$0xff] }
 0x391   : > { %v4514_v0 = vadd.f32 %v7652_v27, %v4084_v43  ;;  %v4414_v62 = vpop.f32.mrb[175].mxu1  ;;  %5046 = vst.msk [vmem:[#allocation3 + $0x78] sm:$0xff] %vm966_vm1, %v5010_v5 }
 0x392   : > { %v4513_v23 = vadd.f32 %v4414_v62, %v4083_v12  ;;  %5045 = vst.msk [vmem:[#allocation3 + $0x70] sm:$0xff] %vm966_vm1, %v5009_v22  ;;  %v4582_v53 = vld [vmem:[#allocation3 + $0x88] sm:$0xff] }
 0x393   : > { %4550 = vst.msk [vmem:[#allocation3 + $0xa8] sm:$0xff] %vm966_vm1, %v4514_v0  ;;  %v5012_v10 = vadd.f32 %v10012_v51, %v4582_v53  ;;  %v4581_v19 = vld [vmem:[#allocation3 + $0x80] sm:$0xff]  ;;  %v4094_v0 = vld [vmem:[#allocation3 + $0xf8] sm:$0xff] }
 0x394   : > { %4549 = vst.msk [vmem:[#allocation3 + $0xa0] sm:$0xff] %vm966_vm1, %v4513_v23  ;;  %v7655_v61 = vpop.f32.mrb[176].mxu1  ;;  %v5011_v49 = vadd.f32 %v10013_v11, %v4581_v19  ;;  %v4093_v23 = vld [vmem:[#allocation3 + $0xf0] sm:$0xff] }
 0x395   : > { %v4516_v45 = vadd.f32 %v7655_v61, %v4086_v4  ;;  %v4424_v40 = vpop.f32.mrb[177].mxu1  ;;  %5048 = vst.msk [vmem:[#allocation3 + $0x88] sm:$0xff] %vm966_vm1, %v5012_v10  ;;  %v4096_v4 = vld [vmem:[#allocation3 + $0x108] sm:$0xff] }
 0x396   : > { %v4515_v44 = vadd.f32 %v4424_v40, %v4085_v34  ;;  %5047 = vst.msk [vmem:[#allocation3 + $0x80] sm:$0xff] %vm966_vm1, %v5011_v49  ;;  %v4584_v35 = vld [vmem:[#allocation3 + $0x98] sm:$0xff]  ;;  %v4095_v49 = vld [vmem:[#allocation3 + $0x100] sm:$0xff] }
 0x397   : > { %4552 = vst.msk [vmem:[#allocation3 + $0xb8] sm:$0xff] %vm966_vm1, %v4516_v45  ;;  %v5014_v17 = vadd.f32 %v10014_v48, %v4584_v35  ;;  %v4583_v47 = vld [vmem:[#allocation3 + $0x90] sm:$0xff]  ;;  %v4098_v35 = vld [vmem:[#allocation3 + $0x118] sm:$0xff] }
 0x398   : > { %4551 = vst.msk [vmem:[#allocation3 + $0xb0] sm:$0xff] %vm966_vm1, %v4515_v44  ;;  %v7658_v15 = vpop.f32.mrb[178].mxu1  ;;  %v5013_v56 = vadd.f32 %v10015_v42, %v4583_v47  ;;  %v4097_v47 = vld [vmem:[#allocation3 + $0x110] sm:$0xff] }
 0x399   : > { %v4518_v39 = vadd.f32 %v7658_v15, %v4088_v1  ;;  %v4434_v25 = vpop.f32.mrb[179].mxu1  ;;  %5050 = vst.msk [vmem:[#allocation3 + $0x98] sm:$0xff] %vm966_vm1, %v5014_v17 }
 0x39a   : > { %v4517_v6 = vadd.f32 %v4434_v25, %v4087_v8  ;;  %5049 = vst.msk [vmem:[#allocation3 + $0x90] sm:$0xff] %vm966_vm1, %v5013_v56  ;;  %v4586_v60 = vld [vmem:[#allocation3 + $0xa8] sm:$0xff] }
 0x39b   : > { %4554 = vst.msk [vmem:[#allocation3 + $0xc8] sm:$0xff] %vm966_vm1, %v4518_v39  ;;  %v5016_v41 = vadd.f32 %v9305_v33, %v4586_v60  ;;  %v4585_v3 = vld [vmem:[#allocation3 + $0xa0] sm:$0xff]  ;;  %v5068_v39 = vld [vmem:[#allocation3 + $0x8] sm:$0xff] }
 0x39c   : > { %4553 = vst.msk [vmem:[#allocation3 + $0xc0] sm:$0xff] %vm966_vm1, %v4517_v6  ;;  %v7661_v14 = vpop.f32.mrb[180].mxu1  ;;  %v5015_v13 = vadd.f32 %v9309_v52, %v4585_v3  ;;  %v5067_v6 = vld [vmem:[#allocation3] sm:$0xff] }
 0x39d   : > { %v4520_v16 = vadd.f32 %v7661_v14, %v4090_v59  ;;  %v4444_v55 = vpop.f32.mrb[181].mxu1  ;;  %5052 = vst.msk [vmem:[#allocation3 + $0xa8] sm:$0xff] %vm966_vm1, %v5016_v41  ;;  %v5070_v14 = vld [vmem:[#allocation3 + $0x18] sm:$0xff] }
 0x39e   : > { %v4519_v26 = vadd.f32 %v4444_v55, %v4089_v46  ;;  %5051 = vst.msk [vmem:[#allocation3 + $0xa0] sm:$0xff] %vm966_vm1, %v5015_v13  ;;  %v4588_v21 = vld [vmem:[#allocation3 + $0xb8] sm:$0xff]  ;;  %v5069_v46 = vld [vmem:[#allocation3 + $0x10] sm:$0xff] }
 0x39f   : > { %4556 = vst.msk [vmem:[#allocation3 + $0xd8] sm:$0xff] %vm966_vm1, %v4520_v16  ;;  %v5018_v33 = vadd.f32 %v9317_v30, %v4588_v21  ;;  %v4587_v20 = vld [vmem:[#allocation3 + $0xb0] sm:$0xff] }
 0x3a0   : > { %4555 = vst.msk [vmem:[#allocation3 + $0xd0] sm:$0xff] %vm966_vm1, %v4519_v26  ;;  %v7664_v50 = vpop.f32.mrb[182].mxu1  ;;  %v5017_v52 = vadd.f32 %v9321_v2, %v4587_v20  ;;  %v5072_v20 = vld [vmem:[#allocation3 + $0x28] sm:$0xff] }
 0x3a1   : > { %v4522_v5 = vadd.f32 %v7664_v50, %v4092_v31  ;;  %v4454_v43 = vpop.f32.mrb[183].mxu1  ;;  %5054 = vst.msk [vmem:[#allocation3 + $0xb8] sm:$0xff] %vm966_vm1, %v5018_v33 }
 0x3a2   : > { %v4521_v27 = vadd.f32 %v4454_v43, %v4091_v38  ;;  %5053 = vst.msk [vmem:[#allocation3 + $0xb0] sm:$0xff] %vm966_vm1, %v5017_v52  ;;  %v4590_v32 = vld [vmem:[#allocation3 + $0xc8] sm:$0xff]  ;;  %v5071_v52 = vld [vmem:[#allocation3 + $0x20] sm:$0xff] }
 0x3a3   : > { %4558 = vst.msk [vmem:[#allocation3 + $0xe8] sm:$0xff] %vm966_vm1, %v4522_v5  ;;  %v5020_v30 = vadd.f32 %v9329_v29, %v4590_v32  ;;  %v4589_v22 = vld [vmem:[#allocation3 + $0xc0] sm:$0xff] }
 0x3a4   : > { %4557 = vst.msk [vmem:[#allocation3 + $0xe0] sm:$0xff] %vm966_vm1, %v4521_v27  ;;  %v7667_v12 = vpop.f32.mrb[184].mxu1  ;;  %v5019_v2 = vadd.f32 %v9333_v58, %v4589_v22 }
 0x3a5   : > { %v4524_v62 = vadd.f32 %v7667_v12, %v4094_v0  ;;  %v4464_v53 = vpop.f32.mrb[185].mxu1  ;;  %5056 = vst.msk [vmem:[#allocation3 + $0xc8] sm:$0xff] %vm966_vm1, %v5020_v30  ;;  %v5073_v0 = vld [vmem:[#allocation3 + $0x30] sm:$0xff] }
 0x3a6   : > { %v4523_v51 = vadd.f32 %v4464_v53, %v4093_v23  ;;  %5055 = vst.msk [vmem:[#allocation3 + $0xc0] sm:$0xff] %vm966_vm1, %v5019_v2  ;;  %v4592_v10 = vld [vmem:[#allocation3 + $0xd8] sm:$0xff]  ;;  %v5076_v53 = vld [vmem:[#allocation3 + $0x48] sm:$0xff] }
 0x3a7   : > { %4560 = vst.msk [vmem:[#allocation3 + $0xf8] sm:$0xff] %vm966_vm1, %v4524_v62  ;;  %v5022_v29 = vadd.f32 %v9341_v57, %v4592_v10  ;;  %v4591_v19 = vld [vmem:[#allocation3 + $0xd0] sm:$0xff] }
 0x3a8   : > { %4559 = vst.msk [vmem:[#allocation3 + $0xf0] sm:$0xff] %vm966_vm1, %v4523_v51  ;;  %v7670_v61 = vpop.f32.mrb[186].mxu1  ;;  %v5021_v58 = vadd.f32 %v9344_v18, %v4591_v19  ;;  %v5075_v19 = vld [vmem:[#allocation3 + $0x40] sm:$0xff] }
 0x3a9   : > { %v4526_v11 = vadd.f32 %v7670_v61, %v4096_v4  ;;  %v4474_v45 = vpop.f32.mrb[187].mxu1  ;;  %5058 = vst.msk [vmem:[#allocation3 + $0xd8] sm:$0xff] %vm966_vm1, %v5022_v29 }
 0x3aa   : > { %v4525_v34 = vadd.f32 %v4474_v45, %v4095_v49  ;;  %5057 = vst.msk [vmem:[#allocation3 + $0xd0] sm:$0xff] %vm966_vm1, %v5021_v58  ;;  %v4594_v40 = vld [vmem:[#allocation3 + $0xe8] sm:$0xff]  ;;  %v5078_v45 = vld [vmem:[#allocation3 + $0x58] sm:$0xff] }
 0x3ab   : > { %4562 = vst.msk [vmem:[#allocation3 + $0x108] sm:$0xff] %vm966_vm1, %v4526_v11  ;;  %v5024_v57 = vadd.f32 %v9353_v24, %v4594_v40  ;;  %v4593_v44 = vld [vmem:[#allocation3 + $0xe0] sm:$0xff] }
 0x3ac   : > { %4561 = vst.msk [vmem:[#allocation3 + $0x100] sm:$0xff] %vm966_vm1, %v4525_v34  ;;  %v7673_v48 = vpop.f32.mrb[188].mxu1  ;;  %v5023_v18 = vadd.f32 %v9356_v37, %v4593_v44  ;;  %v5077_v44 = vld [vmem:[#allocation3 + $0x50] sm:$0xff] }
 0x3ad   : > { %v4528_v17 = vadd.f32 %v7673_v48, %v4098_v35  ;;  %v4484_v1 = vpop.f32.mrb[189].mxu1  ;;  %5060 = vst.msk [vmem:[#allocation3 + $0xe8] sm:$0xff] %vm966_vm1, %v5024_v57 }
 0x3ae   : > { %v4527_v15 = vadd.f32 %v4484_v1, %v4097_v47  ;;  %5059 = vst.msk [vmem:[#allocation3 + $0xe0] sm:$0xff] %vm966_vm1, %v5023_v18  ;;  %v4596_v42 = vld [vmem:[#allocation3 + $0xf8] sm:$0xff]  ;;  %v5080_v1 = vld [vmem:[#allocation3 + $0x68] sm:$0xff] }
 0x3af   : > { %4564 = vst.msk [vmem:[#allocation3 + $0x118] sm:$0xff] %vm966_vm1, %v4528_v17  ;;  %v5026_v24 = vadd.f32 %v9365_v7, %v4596_v42  ;;  %v4595_v56 = vld [vmem:[#allocation3 + $0xf0] sm:$0xff] }
 0x3b0   : > { %4563 = vst.msk [vmem:[#allocation3 + $0x110] sm:$0xff] %vm966_vm1, %v4527_v15  ;;  %v7746_v8 = vpop.f32.mrb[190].mxu1  ;;  %v5025_v37 = vadd.f32 %v9368_v54, %v4595_v56  ;;  %v5079_v56 = vld [vmem:[#allocation3 + $0x60] sm:$0xff] }
 0x3b1   : > { %v5498_v25 = vadd.f32 %v7746_v8, %v5068_v39  ;;  %v5318_v60 = vpop.f32.mrb[191].mxu1  ;;  %5062 = vst.msk [vmem:[#allocation3 + $0xf8] sm:$0xff] %vm966_vm1, %v5026_v24 }
 0x3b2   : > { %v5497_v41 = vadd.f32 %v5318_v60, %v5067_v6  ;;  %5061 = vst.msk [vmem:[#allocation3 + $0xf0] sm:$0xff] %vm966_vm1, %v5025_v37  ;;  %v4598_v3 = vld [vmem:[#allocation3 + $0x108] sm:$0xff]  ;;  %v5082_v60 = vld [vmem:[#allocation3 + $0x78] sm:$0xff] }
 0x3b3   : > { %5534 = vst.msk [vmem:[#allocation3 + $0x8] sm:$0xff] %vm966_vm1, %v5498_v25  ;;  %v5028_v7 = vadd.f32 %v9377_v36, %v4598_v3  ;;  %v4597_v59 = vld [vmem:[#allocation3 + $0x100] sm:$0xff] }
 0x3b4   : > { %5533 = vst.msk [vmem:[#allocation3] sm:$0xff] %vm966_vm1, %v5497_v41  ;;  %v7749_v13 = vpop.f32.mrb[192].mxu1  ;;  %v5027_v54 = vadd.f32 %v9380_v9, %v4597_v59  ;;  %v5081_v59 = vld [vmem:[#allocation3 + $0x70] sm:$0xff] }
 0x3b5   : > { %v5500_v16 = vadd.f32 %v7749_v13, %v5070_v14  ;;  %v5328_v55 = vpop.f32.mrb[193].mxu1  ;;  %5064 = vst.msk [vmem:[#allocation3 + $0x108] sm:$0xff] %vm966_vm1, %v5028_v7 }
 0x3b6   : > { %v5499_v26 = vadd.f32 %v5328_v55, %v5069_v46  ;;  %5063 = vst.msk [vmem:[#allocation3 + $0x100] sm:$0xff] %vm966_vm1, %v5027_v54  ;;  %v4600_v21 = vld [vmem:[#allocation3 + $0x118] sm:$0xff]  ;;  %v5084_v55 = vld [vmem:[#allocation3 + $0x88] sm:$0xff] }
 0x3b7   : > { %5536 = vst.msk [vmem:[#allocation3 + $0x18] sm:$0xff] %vm966_vm1, %v5500_v16  ;;  %v5030_v36 = vadd.f32 %v9389_v63, %v4600_v21  ;;  %v4599_v33 = vld [vmem:[#allocation3 + $0x110] sm:$0xff]  ;;  %v5074_v63 = vld [vmem:[#allocation3 + $0x38] sm:$0xff] }
 0x3b8   : > { %5535 = vst.msk [vmem:[#allocation3 + $0x10] sm:$0xff] %vm966_vm1, %v5499_v26  ;;  %v7752_v31 = vpop.f32.mrb[194].mxu1  ;;  %v5029_v9 = vadd.f32 %v9392_v28, %v4599_v33  ;;  %v5083_v33 = vld [vmem:[#allocation3 + $0x80] sm:$0xff] }
 0x3b9   : > { %v5502_v50 = vadd.f32 %v7752_v31, %v5072_v20  ;;  %v5338_v5 = vpop.f32.mrb[195].mxu1  ;;  %5066 = vst.msk [vmem:[#allocation3 + $0x118] sm:$0xff] %vm966_vm1, %v5030_v36 }
 0x3ba   : > { %v5501_v38 = vadd.f32 %v5338_v5, %v5071_v52  ;;  %v5570_v43 = vld [vmem:[#allocation3 + $0x8] sm:$0xff]  ;;  %5065 = vst.msk [vmem:[#allocation3 + $0x110] sm:$0xff] %vm966_vm1, %v5029_v9  ;;  %v5086_v5 = vld [vmem:[#allocation3 + $0x98] sm:$0xff] }
 0x3bb   : > { %5538 = vst.msk [vmem:[#allocation3 + $0x28] sm:$0xff] %vm966_vm1, %v5502_v50  ;;  %v5569_v27 = vld [vmem:[#allocation3] sm:$0xff]  ;;  %v5606_v12 = vmax.f32 %v5570_v43, 0.0 }
 0x3bc   : > { %5537 = vst.msk [vmem:[#allocation3 + $0x20] sm:$0xff] %vm966_vm1, %v5501_v38  ;;  %v7755_v32 = vpop.f32.mrb[196].mxu1  ;;  %v5605_v30 = vmax.f32 %v5569_v27, 0.0 }
 0x3bd   : > { %v5504_v22 = vadd.f32 %v7755_v32, %v5074_v63  ;;  %v5348_v28 = vpop.f32.mrb[197].mxu1  ;;  %v5085_v63 = vld [vmem:[#allocation3 + $0x90] sm:$0xff] }
 0x3be   : > { %v5503_v2 = vadd.f32 %v5348_v28, %v5073_v0  ;;  %7806 = vmatprep.mubr.msk.f32.mxu0 %vm966_vm1, %v5605_v30  ;;  %v5572_v62 = vld [vmem:[#allocation3 + $0x18] sm:$0xff] }
 0x3bf   : > { %5540 = vst.msk [vmem:[#allocation3 + $0x38] sm:$0xff] %vm966_vm1, %v5504_v22  ;;  %7807 = vmatmul.mubr.msk.f32.vlgmr.msra.gmra.mrb[180].mxu0 %vm966_vm1, %v5606_v12  ;;  %v5571_v23 = vld [vmem:[#allocation3 + $0x10] sm:$0xff]  ;;  %v5608_v61 = vmax.f32 %v5572_v62, 0.0  ;;  %v5088_v12 = vld [vmem:[#allocation3 + $0xa8] sm:$0xff] }
 0x3c0   : > { %5539 = vst.msk [vmem:[#allocation3 + $0x30] sm:$0xff] %vm966_vm1, %v5503_v2  ;;  %v7758_v51 = vpop.f32.mrb[198].mxu1  ;;  %v5607_v10 = vmax.f32 %v5571_v23, 0.0 }
 0x3c1   : > { %v5506_v29 = vadd.f32 %v7758_v51, %v5076_v53  ;;  %v5358_v4 = vpop.f32.mrb[199].mxu1  ;;  %v5087_v53 = vld [vmem:[#allocation3 + $0xa0] sm:$0xff] }
 0x3c2   : > { %v5505_v58 = vadd.f32 %v5358_v4, %v5075_v19  ;;  %7809 = vmatprep.mubr.msk.f32.mxu0 %vm966_vm1, %v5607_v10  ;;  %v5574_v11 = vld [vmem:[#allocation3 + $0x28] sm:$0xff] }
 0x3c3   : > { %5542 = vst.msk [vmem:[#allocation3 + $0x48] sm:$0xff] %vm966_vm1, %v5506_v29  ;;  %7810 = vmatmul.mubr.msk.f32.gmra.mrb[182].mxu0 %vm966_vm1, %v5608_v61  ;;  %v5573_v49 = vld [vmem:[#allocation3 + $0x20] sm:$0xff]  ;;  %v5610_v48 = vmax.f32 %v5574_v11, 0.0  ;;  %v5090_v61 = vld [vmem:[#allocation3 + $0xb8] sm:$0xff] }
 0x3c4   : > { %5541 = vst.msk [vmem:[#allocation3 + $0x40] sm:$0xff] %vm966_vm1, %v5505_v58  ;;  %v7761_v34 = vpop.f32.mrb[200].mxu1  ;;  %v5609_v40 = vmax.f32 %v5573_v49, 0.0 }
 0x3c5   : > { %v5508_v57 = vadd.f32 %v7761_v34, %v5078_v45  ;;  %v5368_v35 = vpop.f32.mrb[201].mxu1  ;;  %v5089_v45 = vld [vmem:[#allocation3 + $0xb0] sm:$0xff] }
 0x3c6   : > { %v5507_v18 = vadd.f32 %v5368_v35, %v5077_v44  ;;  %7812 = vmatprep.mubr.msk.f32.mxu0 %vm966_vm1, %v5609_v40  ;;  %v5576_v17 = vld [vmem:[#allocation3 + $0x38] sm:$0xff] }
 0x3c7   : > { %5544 = vst.msk [vmem:[#allocation3 + $0x58] sm:$0xff] %vm966_vm1, %v5508_v57  ;;  %7813 = vmatmul.mubr.msk.f32.gmra.mrb[184].mxu0 %vm966_vm1, %v5610_v48  ;;  %v5575_v47 = vld [vmem:[#allocation3 + $0x30] sm:$0xff]  ;;  %v5612_v8 = vmax.f32 %v5576_v17, 0.0  ;;  %v5092_v48 = vld [vmem:[#allocation3 + $0xc8] sm:$0xff] }
 0x3c8   : > { %5543 = vst.msk [vmem:[#allocation3 + $0x50] sm:$0xff] %vm966_vm1, %v5507_v18  ;;  %v7764_v15 = vpop.f32.mrb[202].mxu1  ;;  %v5611_v42 = vmax.f32 %v5575_v47, 0.0 }
 0x3c9   : > { %v5510_v24 = vadd.f32 %v7764_v15, %v5080_v1  ;;  %v5378_v39 = vpop.f32.mrb[203].mxu1  ;;  %v5091_v1 = vld [vmem:[#allocation3 + $0xc0] sm:$0xff] }
 0x3ca   : > { %v5509_v37 = vadd.f32 %v5378_v39, %v5079_v56  ;;  %7815 = vmatprep.mubr.msk.f32.mxu0 %vm966_vm1, %v5611_v42  ;;  %v5578_v25 = vld [vmem:[#allocation3 + $0x48] sm:$0xff] }
 0x3cb   : > { %5546 = vst.msk [vmem:[#allocation3 + $0x68] sm:$0xff] %vm966_vm1, %v5510_v24  ;;  %7816 = vmatmul.mubr.msk.f32.gmra.mrb[186].mxu0 %vm966_vm1, %v5612_v8  ;;  %v5577_v6 = vld [vmem:[#allocation3 + $0x40] sm:$0xff]  ;;  %v5614_v13 = vmax.f32 %v5578_v25, 0.0  ;;  %v5094_v8 = vld [vmem:[#allocation3 + $0xd8] sm:$0xff] }
 0x3cc   : > { %5545 = vst.msk [vmem:[#allocation3 + $0x60] sm:$0xff] %vm966_vm1, %v5509_v37  ;;  %v7767_v41 = vpop.f32.mrb[204].mxu1  ;;  %v5613_v3 = vmax.f32 %v5577_v6, 0.0 }
 0x3cd   : > { %v5512_v7 = vadd.f32 %v7767_v41, %v5082_v60  ;;  %v5388_v14 = vpop.f32.mrb[205].mxu1  ;;  %v5093_v60 = vld [vmem:[#allocation3 + $0xd0] sm:$0xff] }
 0x3ce   : > { %v5511_v54 = vadd.f32 %v5388_v14, %v5081_v59  ;;  %7818 = vmatprep.mubr.msk.f32.mxu0 %vm966_vm1, %v5613_v3  ;;  %v5580_v16 = vld [vmem:[#allocation3 + $0x58] sm:$0xff] }
 0x3cf   : > { %5548 = vst.msk [vmem:[#allocation3 + $0x78] sm:$0xff] %vm966_vm1, %v5512_v7  ;;  %7819 = vmatmul.mubr.msk.f32.gmra.mrb[188].mxu0 %vm966_vm1, %v5614_v13  ;;  %v5579_v46 = vld [vmem:[#allocation3 + $0x50] sm:$0xff]  ;;  %v5616_v31 = vmax.f32 %v5580_v16, 0.0  ;;  %v5096_v13 = vld [vmem:[#allocation3 + $0xe8] sm:$0xff] }
 0x3d0   : > { %5547 = vst.msk [vmem:[#allocation3 + $0x70] sm:$0xff] %vm966_vm1, %v5511_v54  ;;  %v7770_v26 = vpop.f32.mrb[206].mxu1  ;;  %v5615_v21 = vmax.f32 %v5579_v46, 0.0 }
 0x3d1   : > { %v5514_v36 = vadd.f32 %v7770_v26, %v5084_v55  ;;  %v5398_v20 = vpop.f32.mrb[207].mxu1  ;;  %v5095_v55 = vld [vmem:[#allocation3 + $0xe0] sm:$0xff] }
 0x3d2   : > { %v5513_v9 = vadd.f32 %v5398_v20, %v5083_v33  ;;  %7821 = vmatprep.mubr.msk.f32.mxu0 %vm966_vm1, %v5615_v21  ;;  %v5582_v50 = vld [vmem:[#allocation3 + $0x68] sm:$0xff] }
 0x3d3   : > { %5550 = vst.msk [vmem:[#allocation3 + $0x88] sm:$0xff] %vm966_vm1, %v5514_v36  ;;  %7822 = vmatmul.mubr.msk.f32.gmra.mrb[190].mxu0 %vm966_vm1, %v5616_v31  ;;  %v5581_v52 = vld [vmem:[#allocation3 + $0x60] sm:$0xff]  ;;  %v5618_v30 = vmax.f32 %v5582_v50, 0.0  ;;  %v5098_v31 = vld [vmem:[#allocation3 + $0xf8] sm:$0xff] }
 0x3d4   : > { %5549 = vst.msk [vmem:[#allocation3 + $0x80] sm:$0xff] %vm966_vm1, %v5513_v9  ;;  %v7773_v38 = vpop.f32.mrb[208].mxu1  ;;  %v5617_v43 = vmax.f32 %v5581_v52, 0.0 }
 0x3d5   : > { %v5516_v27 = vadd.f32 %v7773_v38, %v5086_v5  ;;  %v5408_v32 = vpop.f32.mrb[209].mxu1  ;;  %v5097_v5 = vld [vmem:[#allocation3 + $0xf0] sm:$0xff] }
 0x3d6   : > { %v5515_v22 = vadd.f32 %v5408_v32, %v5085_v63  ;;  %7824 = vmatprep.mubr.msk.f32.mxu0 %vm966_vm1, %v5617_v43  ;;  %v5584_v0 = vld [vmem:[#allocation3 + $0x78] sm:$0xff] }
 0x3d7   : > { %5552 = vst.msk [vmem:[#allocation3 + $0x98] sm:$0xff] %vm966_vm1, %v5516_v27  ;;  %7825 = vmatmul.mubr.msk.f32.gmra.mrb[192].mxu0 %vm966_vm1, %v5618_v30  ;;  %v5583_v28 = vld [vmem:[#allocation3 + $0x70] sm:$0xff]  ;;  %v5620_v10 = vmax.f32 %v5584_v0, 0.0  ;;  %v5100_v30 = vld [vmem:[#allocation3 + $0x108] sm:$0xff] }
 0x3d8   : > { %5551 = vst.msk [vmem:[#allocation3 + $0x90] sm:$0xff] %vm966_vm1, %v5515_v22  ;;  %v7776_v2 = vpop.f32.mrb[210].mxu1  ;;  %v5619_v62 = vmax.f32 %v5583_v28, 0.0 }
 0x3d9   : > { %v5518_v23 = vadd.f32 %v7776_v2, %v5088_v12  ;;  %v5418_v51 = vpop.f32.mrb[211].mxu1  ;;  %v5099_v12 = vld [vmem:[#allocation3 + $0x100] sm:$0xff] }
 0x3da   : > { %v5517_v29 = vadd.f32 %v5418_v51, %v5087_v53  ;;  %7827 = vmatprep.mubr.msk.f32.mxu0 %vm966_vm1, %v5619_v62  ;;  %v5586_v19 = vld [vmem:[#allocation3 + $0x88] sm:$0xff] }
 0x3db   : > { %5554 = vst.msk [vmem:[#allocation3 + $0xa8] sm:$0xff] %vm966_vm1, %v5518_v23  ;;  %7828 = vmatmul.mubr.msk.f32.gmra.mrb[194].mxu0 %vm966_vm1, %v5620_v10  ;;  %v5585_v4 = vld [vmem:[#allocation3 + $0x80] sm:$0xff]  ;;  %v5622_v40 = vmax.f32 %v5586_v19, 0.0  ;;  %v5102_v10 = vld [vmem:[#allocation3 + $0x118] sm:$0xff] }
 0x3dc   : > { %5553 = vst.msk [vmem:[#allocation3 + $0xa0] sm:$0xff] %vm966_vm1, %v5517_v29  ;;  %v7779_v58 = vpop.f32.mrb[212].mxu1  ;;  %v5621_v11 = vmax.f32 %v5585_v4, 0.0 }
 0x3dd   : > { %v5520_v49 = vadd.f32 %v7779_v58, %v5090_v61  ;;  %v5428_v34 = vpop.f32.mrb[213].mxu1  ;;  %v5101_v61 = vld [vmem:[#allocation3 + $0x110] sm:$0xff] }
 0x3de   : > { %v5519_v57 = vadd.f32 %v5428_v34, %v5089_v45  ;;  %7830 = vmatprep.mubr.msk.f32.mxu0 %vm966_vm1, %v5621_v11  ;;  %v5588_v44 = vld [vmem:[#allocation3 + $0x98] sm:$0xff] }
 0x3df   : > { %5556 = vst.msk [vmem:[#allocation3 + $0xb8] sm:$0xff] %vm966_vm1, %v5520_v49  ;;  %7831 = vmatmul.mubr.msk.f32.gmra.mrb[196].mxu0 %vm966_vm1, %v5622_v40  ;;  %v5587_v35 = vld [vmem:[#allocation3 + $0x90] sm:$0xff]  ;;  %v5624_v42 = vmax.f32 %v5588_v44, 0.0 }
 0x3e0   : > { %5555 = vst.msk [vmem:[#allocation3 + $0xb0] sm:$0xff] %vm966_vm1, %v5519_v57  ;;  %v7782_v18 = vpop.f32.mrb[214].mxu1  ;;  %v5623_v17 = vmax.f32 %v5587_v35, 0.0 }
 0x3e1   : > { %v5522_v47 = vadd.f32 %v7782_v18, %v5092_v48  ;;  %v5438_v15 = vpop.f32.mrb[215].mxu1 }
 0x3e2   : > { %v5521_v24 = vadd.f32 %v5438_v15, %v5091_v1  ;;  %7833 = vmatprep.mubr.msk.f32.mxu0 %vm966_vm1, %v5623_v17  ;;  %v5590_v56 = vld [vmem:[#allocation3 + $0xa8] sm:$0xff] }
 0x3e3   : > { %5558 = vst.msk [vmem:[#allocation3 + $0xc8] sm:$0xff] %vm966_vm1, %v5522_v47  ;;  %7834 = vmatmul.mubr.msk.f32.gmra.mrb[198].mxu0 %vm966_vm1, %v5624_v42  ;;  %v5589_v39 = vld [vmem:[#allocation3 + $0xa0] sm:$0xff]  ;;  %v5626_v3 = vmax.f32 %v5590_v56, 0.0  ;;  %v9773_v42 = vld [vmem:[%s9946_s7] ss:$0 sm:$0xff] }
 0x3e4   : > { %5557 = vst.msk [vmem:[#allocation3 + $0xc0] sm:$0xff] %vm966_vm1, %v5521_v24  ;;  %v7785_v37 = vpop.f32.mrb[216].mxu1  ;;  %v5625_v25 = vmax.f32 %v5589_v39, 0.0  ;;  %v5646_v24 = vld [vmem:[%s8285_s12 + $0x1b] sm:$0xff] }
 0x3e5   : > { %v5524_v6 = vadd.f32 %v7785_v37, %v5094_v8  ;;  %v5448_v41 = vpop.f32.mrb[217].mxu1  ;;  %v5645_v8 = vld [vmem:[%s8285_s12 + $0x13] sm:$0xff] }
 0x3e6   : > { %v5523_v7 = vadd.f32 %v5448_v41, %v5093_v60  ;;  %7836 = vmatprep.mubr.msk.f32.mxu0 %vm966_vm1, %v5625_v25  ;;  %v5592_v59 = vld [vmem:[#allocation3 + $0xb8] sm:$0xff]  ;;  %v5648_v41 = vld [vmem:[%s8285_s12 + $0x2b] sm:$0xff] }
 0x3e7   : > { %5560 = vst.msk [vmem:[#allocation3 + $0xd8] sm:$0xff] %vm966_vm1, %v5524_v6  ;;  %7837 = vmatmul.mubr.msk.f32.gmra.mrb[200].mxu0 %vm966_vm1, %v5626_v3  ;;  %v5591_v14 = vld [vmem:[#allocation3 + $0xb0] sm:$0xff]  ;;  %v5628_v21 = vmax.f32 %v5592_v59, 0.0 }
 0x3e8   : > { %5559 = vst.msk [vmem:[#allocation3 + $0xd0] sm:$0xff] %vm966_vm1, %v5523_v7  ;;  %v7788_v54 = vpop.f32.mrb[218].mxu1  ;;  %v5627_v16 = vmax.f32 %v5591_v14, 0.0  ;;  %v5647_v14 = vld [vmem:[%s8285_s12 + $0x23] sm:$0xff] }
 0x3e9   : > { %v5526_v46 = vadd.f32 %v7788_v54, %v5096_v13  ;;  %v5458_v26 = vpop.f32.mrb[219].mxu1 }
 0x3ea   : > { %v5525_v36 = vadd.f32 %v5458_v26, %v5095_v55  ;;  %7839 = vmatprep.mubr.msk.f32.mxu0 %vm966_vm1, %v5627_v16  ;;  %v5594_v33 = vld [vmem:[#allocation3 + $0xc8] sm:$0xff]  ;;  %v5650_v26 = vld [vmem:[%s8285_s12 + $0x3b] sm:$0xff] }
 0x3eb   : > { %5562 = vst.msk [vmem:[#allocation3 + $0xe8] sm:$0xff] %vm966_vm1, %v5526_v46  ;;  %7840 = vmatmul.mubr.msk.f32.gmra.mrb[202].mxu0 %vm966_vm1, %v5628_v21  ;;  %v5593_v20 = vld [vmem:[#allocation3 + $0xc0] sm:$0xff]  ;;  %v5630_v43 = vmax.f32 %v5594_v33, 0.0 }
 0x3ec   : > { %5561 = vst.msk [vmem:[#allocation3 + $0xe0] sm:$0xff] %vm966_vm1, %v5525_v36  ;;  %v7791_v9 = vpop.f32.mrb[220].mxu1  ;;  %v5629_v50 = vmax.f32 %v5593_v20, 0.0  ;;  %v5649_v20 = vld [vmem:[%s8285_s12 + $0x33] sm:$0xff] }
 0x3ed   : > { %v5528_v52 = vadd.f32 %v7791_v9, %v5098_v31  ;;  %v5468_v38 = vpop.f32.mrb[221].mxu1 }
 0x3ee   : > { %v5527_v27 = vadd.f32 %v5468_v38, %v5097_v5  ;;  %7842 = vmatprep.mubr.msk.f32.mxu0 %vm966_vm1, %v5629_v50  ;;  %v5596_v63 = vld [vmem:[#allocation3 + $0xd8] sm:$0xff]  ;;  %v5652_v38 = vld [vmem:[%s8285_s12 + $0x4b] sm:$0xff] }
 0x3ef   : > { %5564 = vst.msk [vmem:[#allocation3 + $0xf8] sm:$0xff] %vm966_vm1, %v5528_v52  ;;  %7843 = vmatmul.mubr.msk.f32.gmra.mrb[204].mxu0 %vm966_vm1, %v5630_v43  ;;  %v5595_v32 = vld [vmem:[#allocation3 + $0xd0] sm:$0xff]  ;;  %v5632_v62 = vmax.f32 %v5596_v63, 0.0 }
 0x3f0   : > { %5563 = vst.msk [vmem:[#allocation3 + $0xf0] sm:$0xff] %vm966_vm1, %v5527_v27  ;;  %v7794_v22 = vpop.f32.mrb[222].mxu1  ;;  %v5631_v0 = vmax.f32 %v5595_v32, 0.0  ;;  %v5651_v32 = vld [vmem:[%s8285_s12 + $0x43] sm:$0xff] }
 0x3f1   : > { %v5530_v28 = vadd.f32 %v7794_v22, %v5100_v30  ;;  %v5478_v2 = vpop.f32.mrb[223].mxu1 }
 0x3f2   : > { %v5529_v23 = vadd.f32 %v5478_v2, %v5099_v12  ;;  %7845 = vmatprep.mubr.msk.f32.mxu0 %vm966_vm1, %v5631_v0  ;;  %v5598_v53 = vld [vmem:[#allocation3 + $0xe8] sm:$0xff]  ;;  %v5654_v2 = vld [vmem:[%s8285_s12 + $0x5b] sm:$0xff] }
 0x3f3   : > { %5566 = vst.msk [vmem:[#allocation3 + $0x108] sm:$0xff] %vm966_vm1, %v5530_v28  ;;  %7846 = vmatmul.mubr.msk.f32.gmra.mrb[206].mxu0 %vm966_vm1, %v5632_v62  ;;  %v5597_v51 = vld [vmem:[#allocation3 + $0xe0] sm:$0xff]  ;;  %v5634_v11 = vmax.f32 %v5598_v53, 0.0 }
 0x3f4   : > { %5565 = vst.msk [vmem:[#allocation3 + $0x100] sm:$0xff] %vm966_vm1, %v5529_v23  ;;  %v7797_v29 = vpop.f32.mrb[224].mxu1  ;;  %v5633_v19 = vmax.f32 %v5597_v51, 0.0  ;;  %v5653_v51 = vld [vmem:[%s8285_s12 + $0x53] sm:$0xff] }
 0x3f5   : > { %v5532_v4 = vadd.f32 %v7797_v29, %v5102_v10  ;;  %v5488_v58 = vpop.f32.mrb[225].mxu1 }
 0x3f6   : > { %v5531_v49 = vadd.f32 %v5488_v58, %v5101_v61  ;;  %7848 = vmatprep.mubr.msk.f32.mxu0 %vm966_vm1, %v5633_v19  ;;  %v5600_v45 = vld [vmem:[#allocation3 + $0xf8] sm:$0xff]  ;;  %v5656_v58 = vld [vmem:[%s8285_s12 + $0x6b] sm:$0xff] }
 0x3f7   : > { %5568 = vst.msk [vmem:[#allocation3 + $0x118] sm:$0xff] %vm966_vm1, %v5532_v4  ;;  %7849 = vmatmul.mubr.msk.f32.gmra.mrb[208].mxu0 %vm966_vm1, %v5634_v11  ;;  %v5599_v34 = vld [vmem:[#allocation3 + $0xf0] sm:$0xff]  ;;  %v5636_v57 = vmax.f32 %v5600_v45, 0.0 }
 0x3f8   : > { %5567 = vst.msk [vmem:[#allocation3 + $0x110] sm:$0xff] %vm966_vm1, %v5531_v49  ;;  %v5635_v40 = vmax.f32 %v5599_v34, 0.0  ;;  %v5655_v34 = vld [vmem:[%s8285_s12 + $0x63] sm:$0xff] }
 0x3fa   : > { %7851 = vmatprep.mubr.msk.f32.mxu0 %vm966_vm1, %v5635_v40  ;;  %v5602_v44 = vld [vmem:[#allocation3 + $0x108] sm:$0xff] }
 0x3fb   : > { %7852 = vmatmul.mubr.msk.f32.gmra.mrb[210].mxu0 %vm966_vm1, %v5636_v57  ;;  %v5601_v35 = vld [vmem:[#allocation3 + $0x100] sm:$0xff]  ;;  %v5638_v18 = vmax.f32 %v5602_v44, 0.0 }
 0x3fc   : > { %v5637_v48 = vmax.f32 %v5601_v35, 0.0 }
 0x3fe   : > { %7854 = vmatprep.mubr.msk.f32.mxu0 %vm966_vm1, %v5637_v48  ;;  %v5604_v17 = vld [vmem:[#allocation3 + $0x118] sm:$0xff] }
 0x3ff   : > { %7855 = vmatmul.mubr.msk.f32.gmra.mrb[212].mxu0 %vm966_vm1, %v5638_v18  ;;  %v5603_v47 = vld [vmem:[#allocation3 + $0x110] sm:$0xff]  ;;  %v5640_v15 = vmax.f32 %v5604_v17, 0.0 }
 0x400   : > { %v5639_v1 = vmax.f32 %v5603_v47, 0.0  ;;  %v5658_v18 = vld [vmem:[%s8285_s12 + $0x7b] sm:$0xff] }
 0x402   : > { %7857 = vmatprep.mubr.msk.f32.mxu0 %vm966_vm1, %v5639_v1 }
 0x403   : > { %7858 = vmatmul.mubr.msk.f32.gmra.mrb[214].mxu0 %vm966_vm1, %v5640_v15  ;;  %v5657_v15 = vld [vmem:[%s8285_s12 + $0x73] sm:$0xff] }
 0x492   : > { %v7808_v56 = vpop.f32.mrb[180].mxu0 }
 0x493   : > { %v5868_v39 = vadd.f32 %v7808_v56, %v9773_v42  ;;  %v5862_v37 = vpop.f32.mrb[181].mxu0 }
 0x494   : > { %v5863_v25 = vadd.f32 %v9773_v42, %v5862_v37 }
 0x495   : > { %v6042_v6 = vadd.f32 %v5868_v39, %v5646_v24 }
 0x496   : > { %v6041_v60 = vadd.f32 %v5863_v25, %v5645_v8  ;;  %v7811_v3 = vpop.f32.mrb[182].mxu0  ;;  %v5660_v25 = vld [vmem:[%s8285_s12 + $0x8b] sm:$0xff] }
 0x497   : > { %v6078_v7 = vmax.f32 %v6042_v6, 0.0  ;;  %v5878_v59 = vadd.f32 %v7811_v3, %v9773_v42  ;;  %v5872_v13 = vpop.f32.mrb[183].mxu0  ;;  %v5659_v3 = vld [vmem:[%s8285_s12 + $0x83] sm:$0xff] }
 0x498   : > { %v6077_v54 = vmax.f32 %v6041_v60, 0.0  ;;  %v5873_v16 = vadd.f32 %v9773_v42, %v5872_v13 }
 0x499   : > { %6114 = vst [vmem:[%s9785_s17 + $0x8] sm:$0xff] %v6078_v7  ;;  %v6044_v46 = vadd.f32 %v5878_v59, %v5648_v41 }
 0x49a   : > { %6113 = vst [vmem:[%s9785_s17] sm:$0xff] %v6077_v54  ;;  %v6043_v55 = vadd.f32 %v5873_v16, %v5647_v14  ;;  %v7814_v21 = vpop.f32.mrb[184].mxu0  ;;  %v5662_v16 = vld [vmem:[%s8285_s12 + $0x9b] sm:$0xff] }
 0x49b   : > { %v6080_v36 = vmax.f32 %v6044_v46, 0.0  ;;  %v5888_v33 = vadd.f32 %v7814_v21, %v9773_v42  ;;  %v5882_v31 = vpop.f32.mrb[185].mxu0  ;;  %v5661_v21 = vld [vmem:[%s8285_s12 + $0x93] sm:$0xff] }
 0x49c   : > { %v6079_v9 = vmax.f32 %v6043_v55, 0.0  ;;  %v5883_v50 = vadd.f32 %v9773_v42, %v5882_v31 }
 0x49d   : > { %6116 = vst [vmem:[%s9785_s17 + $0x18] sm:$0xff] %v6080_v36  ;;  %v6046_v52 = vadd.f32 %v5888_v33, %v5650_v26 }
 0x49e   : > { %6115 = vst [vmem:[%s9785_s17 + $0x10] sm:$0xff] %v6079_v9  ;;  %v6045_v5 = vadd.f32 %v5883_v50, %v5649_v20  ;;  %v7817_v43 = vpop.f32.mrb[186].mxu0  ;;  %v5664_v50 = vld [vmem:[%s8285_s12 + $0xab] sm:$0xff] }
 0x49f   : > { %v6082_v27 = vmax.f32 %v6046_v52, 0.0  ;;  %v5898_v63 = vadd.f32 %v7817_v43, %v9773_v42  ;;  %v5892_v30 = vpop.f32.mrb[187].mxu0  ;;  %v5663_v43 = vld [vmem:[%s8285_s12 + $0xa3] sm:$0xff] }
 0x4a0   : > { %v6081_v22 = vmax.f32 %v6045_v5, 0.0  ;;  %v5893_v0 = vadd.f32 %v9773_v42, %v5892_v30 }
 0x4a1   : > { %6118 = vst [vmem:[%s9785_s17 + $0x28] sm:$0xff] %v6082_v27  ;;  %v6048_v28 = vadd.f32 %v5898_v63, %v5652_v38 }
 0x4a2   : > { %6117 = vst [vmem:[%s9785_s17 + $0x20] sm:$0xff] %v6081_v22  ;;  %v6047_v12 = vadd.f32 %v5893_v0, %v5651_v32  ;;  %v7820_v62 = vpop.f32.mrb[188].mxu0  ;;  %v5666_v0 = vld [vmem:[%s8285_s12 + $0xbb] sm:$0xff] }
 0x4a3   : > { %v6084_v23 = vmax.f32 %v6048_v28, 0.0  ;;  %v5908_v53 = vadd.f32 %v7820_v62, %v9773_v42  ;;  %v5902_v10 = vpop.f32.mrb[189].mxu0  ;;  %v5665_v62 = vld [vmem:[%s8285_s12 + $0xb3] sm:$0xff] }
 0x4a4   : > { %v6083_v29 = vmax.f32 %v6047_v12, 0.0  ;;  %v5903_v19 = vadd.f32 %v9773_v42, %v5902_v10 }
 0x4a5   : > { %6120 = vst [vmem:[%s9785_s17 + $0x38] sm:$0xff] %v6084_v23  ;;  %v6050_v4 = vadd.f32 %v5908_v53, %v5654_v2 }
 0x4a6   : > { %6119 = vst [vmem:[%s9785_s17 + $0x30] sm:$0xff] %v6083_v29  ;;  %v6049_v61 = vadd.f32 %v5903_v19, %v5653_v51  ;;  %v7823_v11 = vpop.f32.mrb[190].mxu0  ;;  %v5668_v19 = vld [vmem:[%s8285_s12 + $0xcb] sm:$0xff] }
 0x4a7   : > { %v6086_v49 = vmax.f32 %v6050_v4, 0.0  ;;  %v5918_v45 = vadd.f32 %v7823_v11, %v9773_v42  ;;  %v5912_v40 = vpop.f32.mrb[191].mxu0  ;;  %v5667_v11 = vld [vmem:[%s8285_s12 + $0xc3] sm:$0xff] }
 0x4a8   : > { %v6085_v57 = vmax.f32 %v6049_v61, 0.0  ;;  %v5913_v44 = vadd.f32 %v9773_v42, %v5912_v40 }
 0x4a9   : > { %6122 = vst [vmem:[%s9785_s17 + $0x48] sm:$0xff] %v6086_v49  ;;  %v6052_v35 = vadd.f32 %v5918_v45, %v5656_v58 }
 0x4aa   : > { %6121 = vst [vmem:[%s9785_s17 + $0x40] sm:$0xff] %v6085_v57  ;;  %v6051_v48 = vadd.f32 %v5913_v44, %v5655_v34  ;;  %v7826_v17 = vpop.f32.mrb[192].mxu0  ;;  %v5670_v44 = vld [vmem:[%s8285_s12 + $0xdb] sm:$0xff] }
 0x4ab   : > { %v6088_v47 = vmax.f32 %v6052_v35, 0.0  ;;  %v5928_v1 = vadd.f32 %v7826_v17, %v9773_v42  ;;  %v5922_v24 = vpop.f32.mrb[193].mxu0  ;;  %v5669_v17 = vld [vmem:[%s8285_s12 + $0xd3] sm:$0xff] }
 0x4ac   : > { %v6087_v56 = vmax.f32 %v6051_v48, 0.0  ;;  %v5923_v39 = vadd.f32 %v9773_v42, %v5922_v24 }
 0x4ad   : > { %6124 = vst [vmem:[%s9785_s17 + $0x58] sm:$0xff] %v6088_v47  ;;  %v6054_v8 = vadd.f32 %v5928_v1, %v5658_v18 }
 0x4ae   : > { %6123 = vst [vmem:[%s9785_s17 + $0x50] sm:$0xff] %v6087_v56  ;;  %v6053_v37 = vadd.f32 %v5923_v39, %v5657_v15  ;;  %v7829_v6 = vpop.f32.mrb[194].mxu0  ;;  %v5672_v39 = vld [vmem:[%s8285_s12 + $0xeb] sm:$0xff] }
 0x4af   : > { %v6090_v60 = vmax.f32 %v6054_v8, 0.0  ;;  %v5938_v41 = vadd.f32 %v7829_v6, %v9773_v42  ;;  %v5932_v7 = vpop.f32.mrb[195].mxu0  ;;  %v5671_v6 = vld [vmem:[%s8285_s12 + $0xe3] sm:$0xff] }
 0x4b0   : > { %v6089_v59 = vmax.f32 %v6053_v37, 0.0  ;;  %v5933_v14 = vadd.f32 %v9773_v42, %v5932_v7 }
 0x4b1   : > { %6126 = vst [vmem:[%s9785_s17 + $0x68] sm:$0xff] %v6090_v60  ;;  %v6056_v13 = vadd.f32 %v5938_v41, %v5660_v25 }
 0x4b2   : > { %6125 = vst [vmem:[%s9785_s17 + $0x60] sm:$0xff] %v6089_v59  ;;  %v6055_v54 = vadd.f32 %v5933_v14, %v5659_v3  ;;  %v7832_v46 = vpop.f32.mrb[196].mxu0  ;;  %v5674_v14 = vld [vmem:[%s8285_s12 + $0xfb] sm:$0xff] }
 0x4b3   : > { %v6092_v55 = vmax.f32 %v6056_v13, 0.0  ;;  %v5948_v26 = vadd.f32 %v7832_v46, %v9773_v42  ;;  %v5942_v36 = vpop.f32.mrb[197].mxu0  ;;  %v5673_v46 = vld [vmem:[%s8285_s12 + $0xf3] sm:$0xff] }
 0x4b4   : > { %v6091_v33 = vmax.f32 %v6055_v54, 0.0  ;;  %v5943_v20 = vadd.f32 %v9773_v42, %v5942_v36 }
 0x4b5   : > { %6128 = vst [vmem:[%s9785_s17 + $0x78] sm:$0xff] %v6092_v55  ;;  %v6058_v31 = vadd.f32 %v5948_v26, %v5662_v16 }
 0x4b6   : > { %6127 = vst [vmem:[%s9785_s17 + $0x70] sm:$0xff] %v6091_v33  ;;  %v6057_v9 = vadd.f32 %v5943_v20, %v5661_v21  ;;  %v7835_v52 = vpop.f32.mrb[198].mxu0  ;;  %v5676_v20 = vld [vmem:[%s8285_s12 + $0x10b] sm:$0xff] }
 0x4b7   : > { %v6094_v5 = vmax.f32 %v6058_v31, 0.0  ;;  %v5958_v38 = vadd.f32 %v7835_v52, %v9773_v42  ;;  %v5952_v27 = vpop.f32.mrb[199].mxu0  ;;  %v5675_v52 = vld [vmem:[%s8285_s12 + $0x103] sm:$0xff] }
 0x4b8   : > { %v6093_v63 = vmax.f32 %v6057_v9, 0.0  ;;  %v5953_v32 = vadd.f32 %v9773_v42, %v5952_v27 }
 0x4b9   : > { %6130 = vst [vmem:[%s9785_s17 + $0x88] sm:$0xff] %v6094_v5  ;;  %v6060_v30 = vadd.f32 %v5958_v38, %v5664_v50 }
 0x4ba   : > { %6129 = vst [vmem:[%s9785_s17 + $0x80] sm:$0xff] %v6093_v63  ;;  %v6059_v22 = vadd.f32 %v5953_v32, %v5663_v43  ;;  %v7838_v28 = vpop.f32.mrb[200].mxu0  ;;  %v5678_v32 = vld [vmem:[%s8285_s12 + $0x11b] sm:$0xff] }
 0x4bb   : > { %v6096_v12 = vmax.f32 %v6060_v30, 0.0  ;;  %v5968_v2 = vadd.f32 %v7838_v28, %v9773_v42  ;;  %v5962_v23 = vpop.f32.mrb[201].mxu0  ;;  %v5677_v28 = vld [vmem:[%s8285_s12 + $0x113] sm:$0xff] }
 0x4bc   : > { %v6095_v53 = vmax.f32 %v6059_v22, 0.0  ;;  %v5963_v51 = vadd.f32 %v9773_v42, %v5962_v23 }
 0x4bd   : > { %6132 = vst [vmem:[%s9785_s17 + $0x98] sm:$0xff] %v6096_v12  ;;  %v6062_v10 = vadd.f32 %v5968_v2, %v5666_v0 }
 0x4be   : > { %6131 = vst [vmem:[%s9785_s17 + $0x90] sm:$0xff] %v6095_v53  ;;  %v6061_v29 = vadd.f32 %v5963_v51, %v5665_v62  ;;  %v7841_v4 = vpop.f32.mrb[202].mxu0  ;;  %v5680_v51 = vld [vmem:[%s8285_s12 + $0x12b] sm:$0xff] }
 0x4bf   : > { %v6098_v61 = vmax.f32 %v6062_v10, 0.0  ;;  %v5978_v58 = vadd.f32 %v7841_v4, %v9773_v42  ;;  %v5972_v49 = vpop.f32.mrb[203].mxu0  ;;  %v5679_v4 = vld [vmem:[%s8285_s12 + $0x123] sm:$0xff]  ;;  %s8019_s12 = scalar_lea.vmem %s9892_s19, 4608 }
 0x4c0   : > { %v6097_v45 = vmax.f32 %v6061_v29, 0.0  ;;  %v5973_v34 = vadd.f32 %v9773_v42, %v5972_v49  ;;  %p8020_p11 = scmp.ne.s32.totalorder %s9892_s19, %s8019_s12  ;;  %p8027_p1 = scmp.lt.s32.totalorder %s8025_s10, %s8019_s12 }
 0x4c1   : > { %6134 = vst [vmem:[%s9785_s17 + $0xa8] sm:$0xff] %v6098_v61  ;;  %v6064_v40 = vadd.f32 %v5978_v58, %v5668_v19 }
 0x4c2   : > { %6133 = vst [vmem:[%s9785_s17 + $0xa0] sm:$0xff] %v6097_v45  ;;  %v6063_v57 = vadd.f32 %v5973_v34, %v5667_v11  ;;  %v7844_v35 = vpop.f32.mrb[204].mxu0  ;;  %p8021_p12 = pnand %p8020_p11, %p8173_p5  ;;  %p8028_p2 = por %p8027_p1, %p8026_p0 }
 0x4c3   : > { %v6100_v48 = vmax.f32 %v6064_v40, 0.0  ;;  %v5988_v18 = vadd.f32 %v7844_v35, %v9773_v42  ;;  %v5982_v47 = vpop.f32.mrb[205].mxu0 }
 0x4c4   : > { %v6099_v1 = vmax.f32 %v6063_v57, 0.0  ;;  %v5983_v15 = vadd.f32 %v9773_v42, %v5982_v47  ;;  %p8022_p13 = pneg %p8021_p12 }
 0x4c5   : > { %6136 = vst [vmem:[%s9785_s17 + $0xb8] sm:$0xff] %v6100_v48  ;;  %v6066_v24 = vadd.f32 %v5988_v18, %v5670_v44 }
 0x4c6   : > { %6135 = vst [vmem:[%s9785_s17 + $0xb0] sm:$0xff] %v6099_v1  ;;  %v6065_v56 = vadd.f32 %v5983_v15, %v5669_v17  ;;  %v7847_v8 = vpop.f32.mrb[206].mxu0  ;;  %p8029_p3 = pnand %p8028_p2, %p8022_p13 }
 0x4c7   : > { %v6102_v37 = vmax.f32 %v6066_v24, 0.0  ;;  %v5998_v25 = vadd.f32 %v7847_v8, %v9773_v42  ;;  %v5992_v60 = vpop.f32.mrb[207].mxu0 }
 0x4c8   : > { %v6101_v41 = vmax.f32 %v6065_v56, 0.0  ;;  %v5993_v3 = vadd.f32 %v9773_v42, %v5992_v60 }
 0x4c9   : > { %6138 = vst [vmem:[%s9785_s17 + $0xc8] sm:$0xff] %v6102_v37  ;;  %v6068_v7 = vadd.f32 %v5998_v25, %v5672_v39 }
 0x4ca   : > { %6137 = vst [vmem:[%s9785_s17 + $0xc0] sm:$0xff] %v6101_v41  ;;  %v6067_v59 = vadd.f32 %v5993_v3, %v5671_v6  ;;  %v7850_v13 = vpop.f32.mrb[208].mxu0 }
 0x4cb   : > { %v6104_v54 = vmax.f32 %v6068_v7, 0.0  ;;  %v6008_v16 = vadd.f32 %v7850_v13, %v9773_v42  ;;  %v6002_v55 = vpop.f32.mrb[209].mxu0 }
 0x4cc   : > { %v6103_v26 = vmax.f32 %v6067_v59, 0.0  ;;  %v6003_v21 = vadd.f32 %v9773_v42, %v6002_v55 }
 0x4cd   : > { %6140 = vst [vmem:[%s9785_s17 + $0xd8] sm:$0xff] %v6104_v54  ;;  %v6070_v36 = vadd.f32 %v6008_v16, %v5674_v14 }
 0x4ce   : > { %6139 = vst [vmem:[%s9785_s17 + $0xd0] sm:$0xff] %v6103_v26  ;;  %v6069_v33 = vadd.f32 %v6003_v21, %v5673_v46  ;;  %v7853_v31 = vpop.f32.mrb[210].mxu0 }
 0x4cf   : > { %v6106_v9 = vmax.f32 %v6070_v36, 0.0  ;;  %v6018_v50 = vadd.f32 %v7853_v31, %v9773_v42  ;;  %v6012_v5 = vpop.f32.mrb[211].mxu0 }
 0x4d0   : > { %v6105_v38 = vmax.f32 %v6069_v33, 0.0  ;;  %v6013_v43 = vadd.f32 %v9773_v42, %v6012_v5 }
 0x4d1   : > { %6142 = vst [vmem:[%s9785_s17 + $0xe8] sm:$0xff] %v6106_v9  ;;  %v6072_v27 = vadd.f32 %v6018_v50, %v5676_v20 }
 0x4d2   : > { %6141 = vst [vmem:[%s9785_s17 + $0xe0] sm:$0xff] %v6105_v38  ;;  %v6071_v63 = vadd.f32 %v6013_v43, %v5675_v52  ;;  %v7856_v30 = vpop.f32.mrb[212].mxu0 }
 0x4d3   : > { %v6108_v22 = vmax.f32 %v6072_v27, 0.0  ;;  %v6028_v0 = vadd.f32 %v7856_v30, %v9773_v42  ;;  %v6022_v12 = vpop.f32.mrb[213].mxu0 }
 0x4d4   : > { %v6107_v2 = vmax.f32 %v6071_v63, 0.0  ;;  %v6023_v62 = vadd.f32 %v9773_v42, %v6022_v12 }
 0x4d5   : > { %6144 = vst [vmem:[%s9785_s17 + $0xf8] sm:$0xff] %v6108_v22  ;;  %v6074_v23 = vadd.f32 %v6028_v0, %v5678_v32 }
 0x4d6   : > { %6143 = vst [vmem:[%s9785_s17 + $0xf0] sm:$0xff] %v6107_v2  ;;  %v6073_v53 = vadd.f32 %v6023_v62, %v5677_v28  ;;  %v7859_v10 = vpop.f32.mrb[214].mxu0 }
 0x4d7   : > { %v6110_v29 = vmax.f32 %v6074_v23, 0.0  ;;  %v6038_v19 = vadd.f32 %v7859_v10, %v9773_v42  ;;  %v6032_v61 = vpop.f32.mrb[215].mxu0 }
 0x4d8   : > { %v6109_v58 = vmax.f32 %v6073_v53, 0.0  ;;  %v6033_v11 = vadd.f32 %v9773_v42, %v6032_v61 }
 0x4d9   : > { %6146 = vst [vmem:[%s9785_s17 + $0x108] sm:$0xff] %v6110_v29  ;;  %v6076_v49 = vadd.f32 %v6038_v19, %v5680_v51 }
 0x4da   : > { %6145 = vst [vmem:[%s9785_s17 + $0x100] sm:$0xff] %v6109_v58  ;;  %v6075_v45 = vadd.f32 %v6033_v11, %v5679_v4 }
 0x4db   : > { %v6112_v34 = vmax.f32 %v6076_v49, 0.0 }
 0x4dc   : > { %v6111_v40 = vmax.f32 %v6075_v45, 0.0 }
 0x4dd   : > { %6148 = vst [vmem:[%s9785_s17 + $0x118] sm:$0xff] %v6112_v34 }
 0x4de   : > { %6147 = vst [vmem:[%s9785_s17 + $0x110] sm:$0xff] %v6111_v40 }
 0x4df   : > { %8032 = shalt.err (!%p8029_p3)
}
 0x4e0   : > { %s8033_s26 = scalar_lea.hbm %s9890_s22, 4608  ;;  %s8037_s17 = scalar_lea.hbm %s9947_s8, 9216 }
 0x4e1   : > { %p8034_p4 = scmp.ne.s32.totalorder %s9890_s22, %s8033_s26  ;;  %p8038_p9 = scmp.lt.u32.totalorder %s9890_s22, %s9947_s8 }
 0x4e2   : > { %p8039_p10 = scmp.lt.u32.totalorder %s8037_s17, %s8033_s26  ;;  %p8041_p12 = scmp.lt.u32.totalorder %s8033_s26, %s9890_s22 }
 0x4e3   : > { %p8035_p7 = pnand %p8034_p4, %p8173_p5 }
 0x4e4   : > { %p8040_p11 = por %p8039_p10, %p8038_p9 }
 0x4e5   : > { %p8036_p8 = pneg %p8035_p7 }
 0x4e6   : > { %p8042_p13 = por %p8041_p12, %p8040_p11 }
 0x4e8   : > { %p8043_p0 = pnand %p8042_p13, %p8036_p8 }
 0x4ea   : > { %8046 = shalt.err (!%p8043_p0)
}
 0x4eb   : > { %s8088_s20 = smov 128   ;;  %s8089_s12 = smov 8  }
 0x4ec   : > { %7971 = dma.vmem_to_hbm [thread:$0]  (%p8173_p5), %s9892_s19, 4608, %s9890_s22, %s9898_s9, %s8088_s20, %s8088_s20, %s8089_s12  }
 0x4ed PF: > { %p7977_p1 = scmp.ge.s32.totalorder %s8081_s30, 2  ;;  %s6178_s23 = sand.u32 1, %s8069_s27  }
 0x4ee   : > { %s6179_s25 = scalar_lea.sflag [#allocation5], %s6178_s23 }
 0x4ef   : > { %p7974_p2 = pnand %p7977_p1, %p8177_p6 }
 0x4f1   : > { %8064 = dma.done.wait (!%p7974_p2), %s6179_s25, 4608  }
 0x4f2   : > { %8066 = vsyncadd (!%p7974_p2), %s6179_s25, 4294962688  ;;  %p18_p3 = scmp.ge.s32.totalorder %s8160_s11, 4   ;;  %s10016_s27 = smov %s8073_s28 }
 0x4f3   : > { %s10017_s28 = smov %s8077_s29  ;;  %s10018_s29 = smov %s8171_s14 }
 0x4f4   : > { %s10019_s30 = smov %s8160_s11  ;;  %20 = sbr.rel (!%p18_p3) target bundleno = 3 (0x3), region = 95 }
 0x4fb   :  { %6184 = vsyncpa [#allocation5], 1 }
 0x4fc   :  { %6186 = vsyncpa [#allocation5 + $0x1], 1 }

</bundles_post_ra>
